<compile_context>
chip_gen: v6e
topology: v6e:2x2x1
jax: 0.10.0
libtpu: 0.0.40
codegen_flags: <defaults>
</compile_context>

<pallas_src>
import numpy as np
import jax
import jax.numpy as jnp
from jax.experimental import pallas as pl
from jax.experimental.pallas import tpu as pltpu

LAM = 0.01         # sparsity_threshold (softshrink lambda)
NEG_SLOPE = 0.01   # nn.LeakyReLU default negative_slope
KPAD = 64          # rfft bins padded 61 -> 64 (tile-aligned sublane slices)
FC1 = 64           # first fc layer width (fixed by the module)


def _softshrink(v, lam=LAM):
    return jnp.where(v > lam, v - lam, jnp.where(v < -lam, v + lam, 0.0))


def _leaky_relu(v, slope=NEG_SLOPE):
    return jnp.where(v >= 0.0, v, slope * v)


def fgn_kernel(x_ref, emb_ref, mask_ref, f_ref, a_ref, gs_ref, gb_ref,
               w1bd_ref, ew_ref, nsum_ref, hsum_ref, bfc1_ref,
               w2bd_ref, bfc2_ref, w3bd_ref, bm_ref, out_ref):
    # ---- tokenEmb: x (T, B*E) * embeddings tiled over batch lane blocks
    xe = x_ref[...] * emb_ref[...]                              # (T, B*E)

    # ---- rfft (ortho): ONE stacked DFT matmul; rows [0:64)=real, [64:128)=imag
    zri = jnp.dot(f_ref[...], xe, preferred_element_type=jnp.float32)   # (128, B*E)
    zr = zri[0:KPAD, :]
    zi = zri[KPAD:2 * KPAD, :]

    bias_r, bias_i = zr, zi                                     # bias taken BEFORE mask
    m = mask_ref[...]                                           # (1, B*E)
    xr = zr * m
    xi = zi * m

    gs = gs_ref[...]                                            # (6, B*E) diag(w1..w3)
    gb = gb_ref[...]                                            # (6, B*E) b1..b3
    d1r, d1i = gs[0:1, :], gs[1:2, :]
    d2r, d2i = gs[2:3, :], gs[3:4, :]
    d3r, d3i = gs[4:5, :], gs[5:6, :]
    b1r, b1i = gb[0:1, :], gb[1:2, :]
    b2r, b2i = gb[2:3, :], gb[3:4, :]
    b3r, b3i = gb[4:5, :], gb[5:6, :]

    # ---- fourierGC (einsum 'bli,ii->bli' == elementwise diag scale)
    o1r = jnp.maximum(xr * d1r - xi * d1i + b1r, 0.0)
    o1i = jnp.maximum(xi * d1r + xr * d1i + b1i, 0.0)
    yr = _softshrink(o1r)
    yi = _softshrink(o1i)

    o2r = jnp.maximum(o1r * d2r - o1i * d2i + b2r, 0.0)
    o2i = jnp.maximum(o1i * d2r + o1r * d2i + b2i, 0.0)
    xr2 = _softshrink(o2r) + yr
    xi2 = _softshrink(o2i) + yi

    o3r = jnp.maximum(o2r * d3r - o2i * d3i + b3r, 0.0)
    o3i = jnp.maximum(o2i * d3r + o2r * d3i + b3i, 0.0)
    zr2 = _softshrink(o3r) + xr2 + bias_r                       # + pre-mask spectrum
    zi2 = _softshrink(o3i) + xi2 + bias_i

    # Padded bins (rows 61..63) carry relu(bias) garbage after the chain above,
    # but the matching columns of the inverse-DFT matrix are zero, so they
    # never reach the time domain.

    # ---- irfft (ortho, n=T): ONE stacked matmul on [real ; imag]
    zri2 = jnp.concatenate([zr2, zi2], axis=0)                  # (128, B*E)
    xt = jnp.dot(a_ref[...], zri2, preferred_element_type=jnp.float32)  # (T, B*E)

    # ---- reshape(B,N,L,E).permute(0,1,3,2) @ embeddings_10, fused with fc[0]:
    # contract E first (block-diagonal over batch lane blocks), weight by the
    # emb10[t % L, h] pattern elementwise, then sum node blocks (rows) and the
    # 8 heads (lane blocks).  Three matmuls, no loops.
    u = jnp.dot(xt, w1bd_ref[...], preferred_element_type=jnp.float32)   # (T, B*512)
    uw = u * ew_ref[...]
    r = jnp.dot(nsum_ref[...], uw, preferred_element_type=jnp.float32)   # (N, B*512)
    h1p = jnp.dot(r, hsum_ref[...], preferred_element_type=jnp.float32)  # (N, B*64)
    h1 = _leaky_relu(h1p + bfc1_ref[...])

    # ---- fc[2] (block-diagonal over batch) and fc[4] folded with the final mean
    h2 = _leaky_relu(
        jnp.dot(h1, w2bd_ref[...], preferred_element_type=jnp.float32)
        + bfc2_ref[...])                                                  # (N, B*HID)
    out_ref[...] = (jnp.dot(h2, w3bd_ref[...], preferred_element_type=jnp.float32)
                    + bm_ref[...])                                        # (N, B)


def fgn_forward(x, params):
    B, L, N = x.shape
    T = N * L
    E = params["emb_t"].shape[1] // B

    # glue: (B,L,N) -> (B,N,L) -> (B,T) -> (T,B) -> lane-dense broadcast over E
    x_seq = jnp.transpose(x, (0, 2, 1)).reshape(B, T)
    x_bcast = jnp.repeat(jnp.transpose(x_seq), E, axis=1)       # (T, B*E)

    def full(shape):
        nd = len(shape)
        return pl.BlockSpec(shape, lambda i, _nd=nd: (0,) * _nd)

    in_arrays = [
        x_bcast, params["emb_t"], params["mask_t"], params["fstack"],
        params["astack"], params["gc_scale"], params["gc_bias"],
        params["w1bd"], params["ew"], params["nsum"], params["hsum"],
        params["bfc1_t"], params["w2bd"], params["bfc2_t"],
        params["w3bd"], params["bm_t"],
    ]
    in_specs = [full(tuple(a.shape)) for a in in_arrays]

    out = pl.pallas_call(
        fgn_kernel,
        out_shape=jax.ShapeDtypeStruct((N, B), jnp.float32),
        grid_spec=pltpu.PrefetchScalarGridSpec(
            num_scalar_prefetch=0,
            grid=(1,),
            in_specs=in_specs,
            out_specs=pl.BlockSpec((N, B), lambda i: (0, 0)),
        ),
        compiler_params=pltpu.CompilerParams(
            dimension_semantics=("arbitrary",)),
    )(*in_arrays)
    return jnp.transpose(out)                                   # (B, N)


def init_params(key, *, pre_length=30, embed_size=128, seq_length=30,
                hidden_size=256, N=4, B=2):
    E, L = embed_size, seq_length
    T = N * L
    K = T // 2 + 1
    assert K <= KPAD and T % 8 == 0 and E % 128 == 0
    keys = jax.random.split(key, 12)
    scale = 0.02

    emb = jax.random.normal(keys[0], (1, E), jnp.float32)
    w1 = scale * jax.random.normal(keys[1], (2, E, E), jnp.float32)
    b1 = scale * jax.random.normal(keys[2], (2, E), jnp.float32)
    w2 = scale * jax.random.normal(keys[3], (2, E, E), jnp.float32)
    b2 = scale * jax.random.normal(keys[4], (2, E), jnp.float32)
    w3 = scale * jax.random.normal(keys[5], (2, E, E), jnp.float32)
    b3 = scale * jax.random.normal(keys[6], (2, E), jnp.float32)
    emb10 = jax.random.normal(keys[7], (L, 8), jnp.float32)

    def linear(k, fan_in, fan_out):                             # synthetic init
        bound = 1.0 / np.sqrt(fan_in)
        kw, kb = jax.random.split(k)
        W = jax.random.uniform(kw, (fan_out, fan_in), jnp.float32, -bound, bound)
        bv = jax.random.uniform(kb, (fan_out,), jnp.float32, -bound, bound)
        return W, bv

    Wf1, bf1 = linear(keys[8], E * 8, FC1)
    Wf2, bf2 = linear(keys[9], FC1, hidden_size)
    Wf3, bf3 = linear(keys[10], hidden_size, pre_length)

    # filter mask: rand in (0,1) => (>0) & (<1) == all ones (fixed draw)
    u = jax.random.uniform(keys[11], (1, E), jnp.float32)
    mask = ((u > 0.0) & (u < 1.0)).astype(jnp.float32)

    # ---- DFT matrices (ortho norm)
    t = np.arange(T)
    kk = np.arange(K)
    ang = 2.0 * np.pi * np.outer(kk, t) / T
    fr = (np.cos(ang) / np.sqrt(T)).astype(np.float32)          # (K, T)
    fi = (-np.sin(ang) / np.sqrt(T)).astype(np.float32)
    c = np.full((K,), 2.0)
    c[0] = 1.0
    c[-1] = 1.0                                                 # T even -> Nyquist once
    ang2 = 2.0 * np.pi * np.outer(t, kk) / T
    ar = (c[None, :] * np.cos(ang2) / np.sqrt(T)).astype(np.float32)   # (T, K)
    ai = (-c[None, :] * np.sin(ang2) / np.sqrt(T)).astype(np.float32)

    fstack = np.zeros((2 * KPAD, T), np.float32)                # [real ; imag], K padded
    fstack[:K] = fr
    fstack[KPAD:KPAD + K] = fi
    astack = np.zeros((T, 2 * KPAD), np.float32)                # [real | imag] columns
    astack[:, :K] = ar
    astack[:, KPAD:KPAD + K] = ai

    # ---- fourierGC diag scales / biases, tiled over batch lane blocks
    w1n, w2n, w3n = np.asarray(w1), np.asarray(w2), np.asarray(w3)
    gc_scale = np.stack([np.diagonal(w1n[0]), np.diagonal(w1n[1]),
                         np.diagonal(w2n[0]), np.diagonal(w2n[1]),
                         np.diagonal(w3n[0]), np.diagonal(w3n[1])], axis=0)
    gc_bias = np.stack([np.asarray(b1)[0], np.asarray(b1)[1],
                        np.asarray(b2)[0], np.asarray(b2)[1],
                        np.asarray(b3)[0], np.asarray(b3)[1]], axis=0)
    gc_scale_t = np.tile(gc_scale.astype(np.float32), (1, B))
    gc_bias_t = np.tile(gc_bias.astype(np.float32), (1, B))
    emb_t = np.tile(np.asarray(emb), (1, B)).astype(np.float32)
    mask_t = np.tile(np.asarray(mask), (1, B)).astype(np.float32)

    # ---- fused reshape/permute/emb10/fc[0] constants
    HW = 8 * FC1                                                # 512 per batch block
    Wf1n = np.asarray(Wf1)                                      # (64, E*8), idx e*8+h
    W1r = Wf1n.reshape(FC1, E, 8).transpose(1, 2, 0).reshape(E, HW)   # [e, h*64+o]
    w1bd = np.zeros((B * E, B * HW), np.float32)
    for b in range(B):
        w1bd[b * E:(b + 1) * E, b * HW:(b + 1) * HW] = W1r
    emb10n = np.asarray(emb10)                                  # (L, 8)
    ew = np.repeat(emb10n[np.arange(T) % L, :], FC1, axis=1)    # (T, HW): emb10[t%L, h]
    ew = np.tile(ew, (1, B)).astype(np.float32)                 # (T, B*HW)
    nsum = np.zeros((N, T), np.float32)                         # node-block row sums
    for n in range(N):
        nsum[n, n * L:(n + 1) * L] = 1.0
    hsum = np.zeros((B * HW, B * FC1), np.float32)              # head lane-block sums
    eye = np.eye(FC1, dtype=np.float32)
    for b in range(B):
        for h in range(8):
            hsum[b * HW + h * FC1:b * HW + (h + 1) * FC1,
                 b * FC1:(b + 1) * FC1] = eye
    bfc1_t = np.tile(np.asarray(bf1).reshape(1, FC1), (1, B)).astype(np.float32)

    # ---- fc[2] block-diagonal over batch; fc[4] folded with the final mean
    w2bd = np.zeros((B * FC1, B * hidden_size), np.float32)
    Wf2T = np.asarray(Wf2).T                                    # (64, HID)
    for b in range(B):
        w2bd[b * FC1:(b + 1) * FC1, b * hidden_size:(b + 1) * hidden_size] = Wf2T
    bfc2_t = np.tile(np.asarray(bf2).reshape(1, hidden_size), (1, B)).astype(np.float32)
    w3m = np.asarray(Wf3).mean(axis=0)                          # (HID,)
    w3bd = np.zeros((B * hidden_size, B), np.float32)
    for b in range(B):
        w3bd[b * hidden_size:(b + 1) * hidden_size, b] = w3m
    bm_t = np.full((1, B), float(np.asarray(bf3).mean()), np.float32)

    packed = dict(
        emb_t=jnp.asarray(emb_t), mask_t=jnp.asarray(mask_t),
        fstack=jnp.asarray(fstack), astack=jnp.asarray(astack),
        gc_scale=jnp.asarray(gc_scale_t), gc_bias=jnp.asarray(gc_bias_t),
        w1bd=jnp.asarray(w1bd), ew=jnp.asarray(ew),
        nsum=jnp.asarray(nsum), hsum=jnp.asarray(hsum),
        bfc1_t=jnp.asarray(bfc1_t), w2bd=jnp.asarray(w2bd),
        bfc2_t=jnp.asarray(bfc2_t), w3bd=jnp.asarray(w3bd),
        bm_t=jnp.asarray(bm_t),
    )
    raw = dict(emb=emb, mask=mask, w1=w1, b1=b1, w2=w2, b2=b2, w3=w3, b3=b3,
               emb10=emb10, Wf1=Wf1, bf1=bf1, Wf2=Wf2, bf2=bf2, Wf3=Wf3, bf3=bf3,
               fr=jnp.asarray(fr), fi=jnp.asarray(fi),
               ar=jnp.asarray(ar), ai=jnp.asarray(ai))
    return packed, raw


def reference_forward(x, raw):
    """Pure-JAX mirror of the PyTorch forward (same DFT matrices), for checking."""
    B, L, N = x.shape
    T = N * L
    E = raw["emb"].shape[1]
    xs = jnp.transpose(x, (0, 2, 1)).reshape(B, T)
    xe = xs[:, :, None] * raw["emb"][0][None, None, :]              # (B, T, E)
    zr = jnp.einsum('kt,bte->bke', raw["fr"], xe)
    zi = jnp.einsum('kt,bte->bke', raw["fi"], xe)
    bias_r, bias_i = zr, zi
    m = raw["mask"][0]
    xr, xi = zr * m, zi * m
    d = lambda w: jnp.diagonal(w)
    o1r = jax.nn.relu(xr * d(raw["w1"][0]) - xi * d(raw["w1"][1]) + raw["b1"][0])
    o1i = jax.nn.relu(xi * d(raw["w1"][0]) + xr * d(raw["w1"][1]) + raw["b1"][1])
    yr, yi = _softshrink(o1r), _softshrink(o1i)
    o2r = jax.nn.relu(o1r * d(raw["w2"][0]) - o1i * d(raw["w2"][1]) + raw["b2"][0])
    o2i = jax.nn.relu(o1i * d(raw["w2"][0]) + o1r * d(raw["w2"][1]) + raw["b2"][1])
    xr2, xi2 = _softshrink(o2r) + yr, _softshrink(o2i) + yi
    o3r = jax.nn.relu(o2r * d(raw["w3"][0]) - o2i * d(raw["w3"][1]) + raw["b3"][0])
    o3i = jax.nn.relu(o2i * d(raw["w3"][0]) + o2r * d(raw["w3"][1]) + raw["b3"][1])
    zr2 = _softshrink(o3r) + xr2 + bias_r
    zi2 = _softshrink(o3i) + xi2 + bias_i
    xt = (jnp.einsum('tk,bke->bte', raw["ar"], zr2) +
          jnp.einsum('tk,bke->bte', raw["ai"], zi2))                 # (B, T, E)
    x4 = xt.reshape(B, N, L, E).transpose(0, 1, 3, 2)                # (B, N, E, L)
    q = jnp.einsum('bnel,lh->bneh', x4, raw["emb10"]).reshape(B, N, E * 8)
    h1 = _leaky_relu(q @ raw["Wf1"].T + raw["bf1"])
    h2 = _leaky_relu(h1 @ raw["Wf2"].T + raw["bf2"])
    res = h2 @ raw["Wf3"].T + raw["bf3"]
    return res.mean(-1)


if __name__ == "__main__":
    # CCA_SSG.forward(x) == FGN(30, 128, 176, 30, 256)(x).
    # Small shapes: batch=2, seq_length=30 (fixed by embeddings_10), nodes N=4.
    B, L, N = 2, 30, 4
    key = jax.random.PRNGKey(0)
    kx, kp = jax.random.split(key)
    x = jax.random.normal(kx, (B, L, N), jnp.float32)
    packed, raw = init_params(kp, N=N, B=B)

    out = fgn_forward(x, packed)
    out = jax.block_until_ready(out)
    assert out.shape == (B, N), out.shape
    assert bool(jnp.all(jnp.isfinite(out)))

    ref = jax.block_until_ready(reference_forward(x, raw))
    max_diff = float(jnp.max(jnp.abs(out - ref)))
    assert jnp.allclose(out, ref, atol=2e-3, rtol=2e-3), f"max abs diff {max_diff:e}"
    print("KERNEL_OK")
</pallas_src>

<mosaic_0001>
module attributes {stable_mosaic.version = 11 : i64} {
  func.func @fgn_kernel(%arg0: i32, %arg1: memref<120x256xf32, #tpu.memory_space<vmem>>, %arg2: memref<1x256xf32, #tpu.memory_space<vmem>>, %arg3: memref<1x256xf32, #tpu.memory_space<vmem>>, %arg4: memref<128x120xf32, #tpu.memory_space<vmem>>, %arg5: memref<120x128xf32, #tpu.memory_space<vmem>>, %arg6: memref<6x256xf32, #tpu.memory_space<vmem>>, %arg7: memref<6x256xf32, #tpu.memory_space<vmem>>, %arg8: memref<256x1024xf32, #tpu.memory_space<vmem>>, %arg9: memref<120x1024xf32, #tpu.memory_space<vmem>>, %arg10: memref<4x120xf32, #tpu.memory_space<vmem>>, %arg11: memref<1024x128xf32, #tpu.memory_space<vmem>>, %arg12: memref<1x128xf32, #tpu.memory_space<vmem>>, %arg13: memref<128x512xf32, #tpu.memory_space<vmem>>, %arg14: memref<1x512xf32, #tpu.memory_space<vmem>>, %arg15: memref<512x2xf32, #tpu.memory_space<vmem>>, %arg16: memref<1x2xf32, #tpu.memory_space<vmem>>, %arg17: memref<4x2xf32, #tpu.memory_space<vmem>>) attributes {dimension_semantics = [#tpu.dimension_semantics<arbitrary>], iteration_bounds = array<i64: 1>, scalar_prefetch = 0 : i64, scratch_operands = 0 : i64, tpu.core_type = #tpu.core_type<tc>, window_params = [{pipeline_mode = #tpu.pipeline_mode<synchronous>, transform_indices = @transform_0, window_bounds = array<i64: 120, 256>}, {pipeline_mode = #tpu.pipeline_mode<synchronous>, transform_indices = @transform_1, window_bounds = array<i64: 1, 256>}, {pipeline_mode = #tpu.pipeline_mode<synchronous>, transform_indices = @transform_2, window_bounds = array<i64: 1, 256>}, {pipeline_mode = #tpu.pipeline_mode<synchronous>, transform_indices = @transform_3, window_bounds = array<i64: 128, 120>}, {pipeline_mode = #tpu.pipeline_mode<synchronous>, transform_indices = @transform_4, window_bounds = array<i64: 120, 128>}, {pipeline_mode = #tpu.pipeline_mode<synchronous>, transform_indices = @transform_5, window_bounds = array<i64: 6, 256>}, {pipeline_mode = #tpu.pipeline_mode<synchronous>, transform_indices = @transform_6, window_bounds = array<i64: 6, 256>}, {pipeline_mode = #tpu.pipeline_mode<synchronous>, transform_indices = @transform_7, window_bounds = array<i64: 256, 1024>}, {pipeline_mode = #tpu.pipeline_mode<synchronous>, transform_indices = @transform_8, window_bounds = array<i64: 120, 1024>}, {pipeline_mode = #tpu.pipeline_mode<synchronous>, transform_indices = @transform_9, window_bounds = array<i64: 4, 120>}, {pipeline_mode = #tpu.pipeline_mode<synchronous>, transform_indices = @transform_10, window_bounds = array<i64: 1024, 128>}, {pipeline_mode = #tpu.pipeline_mode<synchronous>, transform_indices = @transform_11, window_bounds = array<i64: 1, 128>}, {pipeline_mode = #tpu.pipeline_mode<synchronous>, transform_indices = @transform_12, window_bounds = array<i64: 128, 512>}, {pipeline_mode = #tpu.pipeline_mode<synchronous>, transform_indices = @transform_13, window_bounds = array<i64: 1, 512>}, {pipeline_mode = #tpu.pipeline_mode<synchronous>, transform_indices = @transform_14, window_bounds = array<i64: 512, 2>}, {pipeline_mode = #tpu.pipeline_mode<synchronous>, transform_indices = @transform_15, window_bounds = array<i64: 1, 2>}, {pipeline_mode = #tpu.pipeline_mode<synchronous>, transform_indices = @transform_16, window_bounds = array<i64: 4, 2>}]} {
    %c0 = arith.constant 0 : index
    %c0_0 = arith.constant 0 : index
    %0 = vector.load %arg1[%c0, %c0_0] : memref<120x256xf32, #tpu.memory_space<vmem>>, vector<120x256xf32>
    %c0_1 = arith.constant 0 : index
    %c0_2 = arith.constant 0 : index
    %1 = vector.load %arg2[%c0_1, %c0_2] : memref<1x256xf32, #tpu.memory_space<vmem>>, vector<1x256xf32>
    %2 = vector.broadcast %1 : vector<1x256xf32> to vector<120x256xf32>
    %3 = arith.mulf %0, %2 : vector<120x256xf32>
    %c0_3 = arith.constant 0 : index
    %c0_4 = arith.constant 0 : index
    %4 = vector.load %arg4[%c0_3, %c0_4] : memref<128x120xf32, #tpu.memory_space<vmem>>, vector<128x120xf32>
    %cst = arith.constant dense<0.000000e+00> : vector<128x256xf32>
    %5 = tpu.matmul %4, %3, %cst {dimension_numbers = #tpu.dot_dimension_numbers<[1], [0], [0], [1], [0, 0, 1, 1], [], []>} : vector<128x120xf32>, vector<120x256xf32>, vector<128x256xf32> -> vector<128x256xf32>
    %6 = vector.extract_strided_slice %5 {offsets = [0, 0], sizes = [64, 256], strides = [1, 1]} : vector<128x256xf32> to vector<64x256xf32>
    %7 = vector.extract_strided_slice %5 {offsets = [64, 0], sizes = [64, 256], strides = [1, 1]} : vector<128x256xf32> to vector<64x256xf32>
    %c0_5 = arith.constant 0 : index
    %c0_6 = arith.constant 0 : index
    %8 = vector.load %arg3[%c0_5, %c0_6] : memref<1x256xf32, #tpu.memory_space<vmem>>, vector<1x256xf32>
    %9 = vector.broadcast %8 : vector<1x256xf32> to vector<64x256xf32>
    %10 = arith.mulf %6, %9 : vector<64x256xf32>
    %11 = vector.broadcast %8 : vector<1x256xf32> to vector<64x256xf32>
    %12 = arith.mulf %7, %11 : vector<64x256xf32>
    %c0_7 = arith.constant 0 : index
    %c0_8 = arith.constant 0 : index
    %13 = vector.load %arg6[%c0_7, %c0_8] : memref<6x256xf32, #tpu.memory_space<vmem>>, vector<6x256xf32>
    %c0_9 = arith.constant 0 : index
    %c0_10 = arith.constant 0 : index
    %14 = vector.load %arg7[%c0_9, %c0_10] : memref<6x256xf32, #tpu.memory_space<vmem>>, vector<6x256xf32>
    %15 = vector.extract_strided_slice %13 {offsets = [0, 0], sizes = [1, 256], strides = [1, 1]} : vector<6x256xf32> to vector<1x256xf32>
    %16 = vector.extract_strided_slice %13 {offsets = [1, 0], sizes = [1, 256], strides = [1, 1]} : vector<6x256xf32> to vector<1x256xf32>
    %17 = vector.extract_strided_slice %13 {offsets = [2, 0], sizes = [1, 256], strides = [1, 1]} : vector<6x256xf32> to vector<1x256xf32>
    %18 = vector.extract_strided_slice %13 {offsets = [3, 0], sizes = [1, 256], strides = [1, 1]} : vector<6x256xf32> to vector<1x256xf32>
    %19 = vector.extract_strided_slice %13 {offsets = [4, 0], sizes = [1, 256], strides = [1, 1]} : vector<6x256xf32> to vector<1x256xf32>
    %20 = vector.extract_strided_slice %13 {offsets = [5, 0], sizes = [1, 256], strides = [1, 1]} : vector<6x256xf32> to vector<1x256xf32>
    %21 = vector.extract_strided_slice %14 {offsets = [0, 0], sizes = [1, 256], strides = [1, 1]} : vector<6x256xf32> to vector<1x256xf32>
    %22 = vector.extract_strided_slice %14 {offsets = [1, 0], sizes = [1, 256], strides = [1, 1]} : vector<6x256xf32> to vector<1x256xf32>
    %23 = vector.extract_strided_slice %14 {offsets = [2, 0], sizes = [1, 256], strides = [1, 1]} : vector<6x256xf32> to vector<1x256xf32>
    %24 = vector.extract_strided_slice %14 {offsets = [3, 0], sizes = [1, 256], strides = [1, 1]} : vector<6x256xf32> to vector<1x256xf32>
    %25 = vector.extract_strided_slice %14 {offsets = [4, 0], sizes = [1, 256], strides = [1, 1]} : vector<6x256xf32> to vector<1x256xf32>
    %26 = vector.extract_strided_slice %14 {offsets = [5, 0], sizes = [1, 256], strides = [1, 1]} : vector<6x256xf32> to vector<1x256xf32>
    %27 = vector.broadcast %15 : vector<1x256xf32> to vector<64x256xf32>
    %28 = arith.mulf %10, %27 : vector<64x256xf32>
    %29 = vector.broadcast %16 : vector<1x256xf32> to vector<64x256xf32>
    %30 = arith.mulf %12, %29 : vector<64x256xf32>
    %31 = arith.subf %28, %30 : vector<64x256xf32>
    %32 = vector.broadcast %21 : vector<1x256xf32> to vector<64x256xf32>
    %33 = arith.addf %31, %32 : vector<64x256xf32>
    %cst_11 = arith.constant 0.000000e+00 : f32
    %34 = vector.broadcast %cst_11 : f32 to vector<64x256xf32>
    %35 = arith.maximumf %33, %34 : vector<64x256xf32>
    %36 = vector.broadcast %15 : vector<1x256xf32> to vector<64x256xf32>
    %37 = arith.mulf %12, %36 : vector<64x256xf32>
    %38 = vector.broadcast %16 : vector<1x256xf32> to vector<64x256xf32>
    %39 = arith.mulf %10, %38 : vector<64x256xf32>
    %40 = arith.addf %37, %39 : vector<64x256xf32>
    %41 = vector.broadcast %22 : vector<1x256xf32> to vector<64x256xf32>
    %42 = arith.addf %40, %41 : vector<64x256xf32>
    %cst_12 = arith.constant 0.000000e+00 : f32
    %43 = vector.broadcast %cst_12 : f32 to vector<64x256xf32>
    %44 = arith.maximumf %42, %43 : vector<64x256xf32>
    %cst_13 = arith.constant 0.00999999977 : f32
    %45 = vector.broadcast %cst_13 : f32 to vector<64x256xf32>
    %46 = arith.cmpf ogt, %35, %45 : vector<64x256xf32>
    %cst_14 = arith.constant 0.00999999977 : f32
    %47 = vector.broadcast %cst_14 : f32 to vector<64x256xf32>
    %48 = arith.subf %35, %47 : vector<64x256xf32>
    %cst_15 = arith.constant -0.00999999977 : f32
    %49 = vector.broadcast %cst_15 : f32 to vector<64x256xf32>
    %50 = arith.cmpf olt, %35, %49 : vector<64x256xf32>
    %cst_16 = arith.constant 0.00999999977 : f32
    %51 = vector.broadcast %cst_16 : f32 to vector<64x256xf32>
    %52 = arith.addf %35, %51 : vector<64x256xf32>
    %cst_17 = arith.constant 0.000000e+00 : f32
    %53 = vector.broadcast %cst_17 : f32 to vector<64x256xf32>
    %54 = arith.select %50, %52, %53 : vector<64x256xi1>, vector<64x256xf32>
    %55 = arith.select %46, %48, %54 : vector<64x256xi1>, vector<64x256xf32>
    %cst_18 = arith.constant 0.00999999977 : f32
    %56 = vector.broadcast %cst_18 : f32 to vector<64x256xf32>
    %57 = arith.cmpf ogt, %44, %56 : vector<64x256xf32>
    %cst_19 = arith.constant 0.00999999977 : f32
    %58 = vector.broadcast %cst_19 : f32 to vector<64x256xf32>
    %59 = arith.subf %44, %58 : vector<64x256xf32>
    %cst_20 = arith.constant -0.00999999977 : f32
    %60 = vector.broadcast %cst_20 : f32 to vector<64x256xf32>
    %61 = arith.cmpf olt, %44, %60 : vector<64x256xf32>
    %cst_21 = arith.constant 0.00999999977 : f32
    %62 = vector.broadcast %cst_21 : f32 to vector<64x256xf32>
    %63 = arith.addf %44, %62 : vector<64x256xf32>
    %cst_22 = arith.constant 0.000000e+00 : f32
    %64 = vector.broadcast %cst_22 : f32 to vector<64x256xf32>
    %65 = arith.select %61, %63, %64 : vector<64x256xi1>, vector<64x256xf32>
    %66 = arith.select %57, %59, %65 : vector<64x256xi1>, vector<64x256xf32>
    %67 = vector.broadcast %17 : vector<1x256xf32> to vector<64x256xf32>
    %68 = arith.mulf %35, %67 : vector<64x256xf32>
    %69 = vector.broadcast %18 : vector<1x256xf32> to vector<64x256xf32>
    %70 = arith.mulf %44, %69 : vector<64x256xf32>
    %71 = arith.subf %68, %70 : vector<64x256xf32>
    %72 = vector.broadcast %23 : vector<1x256xf32> to vector<64x256xf32>
    %73 = arith.addf %71, %72 : vector<64x256xf32>
    %cst_23 = arith.constant 0.000000e+00 : f32
    %74 = vector.broadcast %cst_23 : f32 to vector<64x256xf32>
    %75 = arith.maximumf %73, %74 : vector<64x256xf32>
    %76 = vector.broadcast %17 : vector<1x256xf32> to vector<64x256xf32>
    %77 = arith.mulf %44, %76 : vector<64x256xf32>
    %78 = vector.broadcast %18 : vector<1x256xf32> to vector<64x256xf32>
    %79 = arith.mulf %35, %78 : vector<64x256xf32>
    %80 = arith.addf %77, %79 : vector<64x256xf32>
    %81 = vector.broadcast %24 : vector<1x256xf32> to vector<64x256xf32>
    %82 = arith.addf %80, %81 : vector<64x256xf32>
    %cst_24 = arith.constant 0.000000e+00 : f32
    %83 = vector.broadcast %cst_24 : f32 to vector<64x256xf32>
    %84 = arith.maximumf %82, %83 : vector<64x256xf32>
    %cst_25 = arith.constant 0.00999999977 : f32
    %85 = vector.broadcast %cst_25 : f32 to vector<64x256xf32>
    %86 = arith.cmpf ogt, %75, %85 : vector<64x256xf32>
    %cst_26 = arith.constant 0.00999999977 : f32
    %87 = vector.broadcast %cst_26 : f32 to vector<64x256xf32>
    %88 = arith.subf %75, %87 : vector<64x256xf32>
    %cst_27 = arith.constant -0.00999999977 : f32
    %89 = vector.broadcast %cst_27 : f32 to vector<64x256xf32>
    %90 = arith.cmpf olt, %75, %89 : vector<64x256xf32>
    %cst_28 = arith.constant 0.00999999977 : f32
    %91 = vector.broadcast %cst_28 : f32 to vector<64x256xf32>
    %92 = arith.addf %75, %91 : vector<64x256xf32>
    %cst_29 = arith.constant 0.000000e+00 : f32
    %93 = vector.broadcast %cst_29 : f32 to vector<64x256xf32>
    %94 = arith.select %90, %92, %93 : vector<64x256xi1>, vector<64x256xf32>
    %95 = arith.select %86, %88, %94 : vector<64x256xi1>, vector<64x256xf32>
    %96 = arith.addf %95, %55 : vector<64x256xf32>
    %cst_30 = arith.constant 0.00999999977 : f32
    %97 = vector.broadcast %cst_30 : f32 to vector<64x256xf32>
    %98 = arith.cmpf ogt, %84, %97 : vector<64x256xf32>
    %cst_31 = arith.constant 0.00999999977 : f32
    %99 = vector.broadcast %cst_31 : f32 to vector<64x256xf32>
    %100 = arith.subf %84, %99 : vector<64x256xf32>
    %cst_32 = arith.constant -0.00999999977 : f32
    %101 = vector.broadcast %cst_32 : f32 to vector<64x256xf32>
    %102 = arith.cmpf olt, %84, %101 : vector<64x256xf32>
    %cst_33 = arith.constant 0.00999999977 : f32
    %103 = vector.broadcast %cst_33 : f32 to vector<64x256xf32>
    %104 = arith.addf %84, %103 : vector<64x256xf32>
    %cst_34 = arith.constant 0.000000e+00 : f32
    %105 = vector.broadcast %cst_34 : f32 to vector<64x256xf32>
    %106 = arith.select %102, %104, %105 : vector<64x256xi1>, vector<64x256xf32>
    %107 = arith.select %98, %100, %106 : vector<64x256xi1>, vector<64x256xf32>
    %108 = arith.addf %107, %66 : vector<64x256xf32>
    %109 = vector.broadcast %19 : vector<1x256xf32> to vector<64x256xf32>
    %110 = arith.mulf %75, %109 : vector<64x256xf32>
    %111 = vector.broadcast %20 : vector<1x256xf32> to vector<64x256xf32>
    %112 = arith.mulf %84, %111 : vector<64x256xf32>
    %113 = arith.subf %110, %112 : vector<64x256xf32>
    %114 = vector.broadcast %25 : vector<1x256xf32> to vector<64x256xf32>
    %115 = arith.addf %113, %114 : vector<64x256xf32>
    %cst_35 = arith.constant 0.000000e+00 : f32
    %116 = vector.broadcast %cst_35 : f32 to vector<64x256xf32>
    %117 = arith.maximumf %115, %116 : vector<64x256xf32>
    %118 = vector.broadcast %19 : vector<1x256xf32> to vector<64x256xf32>
    %119 = arith.mulf %84, %118 : vector<64x256xf32>
    %120 = vector.broadcast %20 : vector<1x256xf32> to vector<64x256xf32>
    %121 = arith.mulf %75, %120 : vector<64x256xf32>
    %122 = arith.addf %119, %121 : vector<64x256xf32>
    %123 = vector.broadcast %26 : vector<1x256xf32> to vector<64x256xf32>
    %124 = arith.addf %122, %123 : vector<64x256xf32>
    %cst_36 = arith.constant 0.000000e+00 : f32
    %125 = vector.broadcast %cst_36 : f32 to vector<64x256xf32>
    %126 = arith.maximumf %124, %125 : vector<64x256xf32>
    %cst_37 = arith.constant 0.00999999977 : f32
    %127 = vector.broadcast %cst_37 : f32 to vector<64x256xf32>
    %128 = arith.cmpf ogt, %117, %127 : vector<64x256xf32>
    %cst_38 = arith.constant 0.00999999977 : f32
    %129 = vector.broadcast %cst_38 : f32 to vector<64x256xf32>
    %130 = arith.subf %117, %129 : vector<64x256xf32>
    %cst_39 = arith.constant -0.00999999977 : f32
    %131 = vector.broadcast %cst_39 : f32 to vector<64x256xf32>
    %132 = arith.cmpf olt, %117, %131 : vector<64x256xf32>
    %cst_40 = arith.constant 0.00999999977 : f32
    %133 = vector.broadcast %cst_40 : f32 to vector<64x256xf32>
    %134 = arith.addf %117, %133 : vector<64x256xf32>
    %cst_41 = arith.constant 0.000000e+00 : f32
    %135 = vector.broadcast %cst_41 : f32 to vector<64x256xf32>
    %136 = arith.select %132, %134, %135 : vector<64x256xi1>, vector<64x256xf32>
    %137 = arith.select %128, %130, %136 : vector<64x256xi1>, vector<64x256xf32>
    %138 = arith.addf %137, %96 : vector<64x256xf32>
    %139 = arith.addf %138, %6 : vector<64x256xf32>
    %cst_42 = arith.constant 0.00999999977 : f32
    %140 = vector.broadcast %cst_42 : f32 to vector<64x256xf32>
    %141 = arith.cmpf ogt, %126, %140 : vector<64x256xf32>
    %cst_43 = arith.constant 0.00999999977 : f32
    %142 = vector.broadcast %cst_43 : f32 to vector<64x256xf32>
    %143 = arith.subf %126, %142 : vector<64x256xf32>
    %cst_44 = arith.constant -0.00999999977 : f32
    %144 = vector.broadcast %cst_44 : f32 to vector<64x256xf32>
    %145 = arith.cmpf olt, %126, %144 : vector<64x256xf32>
    %cst_45 = arith.constant 0.00999999977 : f32
    %146 = vector.broadcast %cst_45 : f32 to vector<64x256xf32>
    %147 = arith.addf %126, %146 : vector<64x256xf32>
    %cst_46 = arith.constant 0.000000e+00 : f32
    %148 = vector.broadcast %cst_46 : f32 to vector<64x256xf32>
    %149 = arith.select %145, %147, %148 : vector<64x256xi1>, vector<64x256xf32>
    %150 = arith.select %141, %143, %149 : vector<64x256xi1>, vector<64x256xf32>
    %151 = arith.addf %150, %108 : vector<64x256xf32>
    %152 = arith.addf %151, %7 : vector<64x256xf32>
    %153 = tpu.concatenate %139, %152 in 0 : vector<64x256xf32>, vector<64x256xf32> -> vector<128x256xf32>
    %c0_47 = arith.constant 0 : index
    %c0_48 = arith.constant 0 : index
    %154 = vector.load %arg5[%c0_47, %c0_48] : memref<120x128xf32, #tpu.memory_space<vmem>>, vector<120x128xf32>
    %cst_49 = arith.constant dense<0.000000e+00> : vector<120x256xf32>
    %155 = tpu.matmul %154, %153, %cst_49 {dimension_numbers = #tpu.dot_dimension_numbers<[1], [0], [0], [1], [0, 0, 1, 1], [], []>} : vector<120x128xf32>, vector<128x256xf32>, vector<120x256xf32> -> vector<120x256xf32>
    %c0_50 = arith.constant 0 : index
    %c0_51 = arith.constant 0 : index
    %156 = vector.load %arg8[%c0_50, %c0_51] : memref<256x1024xf32, #tpu.memory_space<vmem>>, vector<256x1024xf32>
    %cst_52 = arith.constant dense<0.000000e+00> : vector<120x1024xf32>
    %157 = tpu.matmul %155, %156, %cst_52 {dimension_numbers = #tpu.dot_dimension_numbers<[1], [0], [0], [1], [0, 0, 1, 1], [], []>} : vector<120x256xf32>, vector<256x1024xf32>, vector<120x1024xf32> -> vector<120x1024xf32>
    %c0_53 = arith.constant 0 : index
    %c0_54 = arith.constant 0 : index
    %158 = vector.load %arg9[%c0_53, %c0_54] : memref<120x1024xf32, #tpu.memory_space<vmem>>, vector<120x1024xf32>
    %159 = arith.mulf %157, %158 : vector<120x1024xf32>
    %c0_55 = arith.constant 0 : index
    %c0_56 = arith.constant 0 : index
    %160 = vector.load %arg10[%c0_55, %c0_56] : memref<4x120xf32, #tpu.memory_space<vmem>>, vector<4x120xf32>
    %cst_57 = arith.constant dense<0.000000e+00> : vector<4x1024xf32>
    %161 = tpu.matmul %160, %159, %cst_57 {dimension_numbers = #tpu.dot_dimension_numbers<[1], [0], [0], [1], [0, 0, 1, 1], [], []>} : vector<4x120xf32>, vector<120x1024xf32>, vector<4x1024xf32> -> vector<4x1024xf32>
    %c0_58 = arith.constant 0 : index
    %c0_59 = arith.constant 0 : index
    %162 = vector.load %arg11[%c0_58, %c0_59] : memref<1024x128xf32, #tpu.memory_space<vmem>>, vector<1024x128xf32>
    %cst_60 = arith.constant dense<0.000000e+00> : vector<4x128xf32>
    %163 = tpu.matmul %161, %162, %cst_60 {dimension_numbers = #tpu.dot_dimension_numbers<[1], [0], [0], [1], [0, 0, 1, 1], [], []>} : vector<4x1024xf32>, vector<1024x128xf32>, vector<4x128xf32> -> vector<4x128xf32>
    %c0_61 = arith.constant 0 : index
    %c0_62 = arith.constant 0 : index
    %164 = vector.load %arg12[%c0_61, %c0_62] : memref<1x128xf32, #tpu.memory_space<vmem>>, vector<1x128xf32>
    %165 = vector.broadcast %164 : vector<1x128xf32> to vector<4x128xf32>
    %166 = arith.addf %163, %165 : vector<4x128xf32>
    %cst_63 = arith.constant 0.000000e+00 : f32
    %167 = vector.broadcast %cst_63 : f32 to vector<4x128xf32>
    %168 = arith.cmpf oge, %166, %167 : vector<4x128xf32>
    %cst_64 = arith.constant 0.00999999977 : f32
    %169 = vector.broadcast %cst_64 : f32 to vector<4x128xf32>
    %170 = arith.mulf %169, %166 : vector<4x128xf32>
    %171 = arith.select %168, %166, %170 : vector<4x128xi1>, vector<4x128xf32>
    %c0_65 = arith.constant 0 : index
    %c0_66 = arith.constant 0 : index
    %172 = vector.load %arg13[%c0_65, %c0_66] : memref<128x512xf32, #tpu.memory_space<vmem>>, vector<128x512xf32>
    %cst_67 = arith.constant dense<0.000000e+00> : vector<4x512xf32>
    %173 = tpu.matmul %171, %172, %cst_67 {dimension_numbers = #tpu.dot_dimension_numbers<[1], [0], [0], [1], [0, 0, 1, 1], [], []>} : vector<4x128xf32>, vector<128x512xf32>, vector<4x512xf32> -> vector<4x512xf32>
    %c0_68 = arith.constant 0 : index
    %c0_69 = arith.constant 0 : index
    %174 = vector.load %arg14[%c0_68, %c0_69] : memref<1x512xf32, #tpu.memory_space<vmem>>, vector<1x512xf32>
    %175 = vector.broadcast %174 : vector<1x512xf32> to vector<4x512xf32>
    %176 = arith.addf %173, %175 : vector<4x512xf32>
    %cst_70 = arith.constant 0.000000e+00 : f32
    %177 = vector.broadcast %cst_70 : f32 to vector<4x512xf32>
    %178 = arith.cmpf oge, %176, %177 : vector<4x512xf32>
    %cst_71 = arith.constant 0.00999999977 : f32
    %179 = vector.broadcast %cst_71 : f32 to vector<4x512xf32>
    %180 = arith.mulf %179, %176 : vector<4x512xf32>
    %181 = arith.select %178, %176, %180 : vector<4x512xi1>, vector<4x512xf32>
    %c0_72 = arith.constant 0 : index
    %c0_73 = arith.constant 0 : index
    %182 = vector.load %arg15[%c0_72, %c0_73] : memref<512x2xf32, #tpu.memory_space<vmem>>, vector<512x2xf32>
    %cst_74 = arith.constant dense<0.000000e+00> : vector<4x2xf32>
    %183 = tpu.matmul %181, %182, %cst_74 {dimension_numbers = #tpu.dot_dimension_numbers<[1], [0], [0], [1], [0, 0, 1, 1], [], []>} : vector<4x512xf32>, vector<512x2xf32>, vector<4x2xf32> -> vector<4x2xf32>
    %c0_75 = arith.constant 0 : index
    %c0_76 = arith.constant 0 : index
    %184 = vector.load %arg16[%c0_75, %c0_76] : memref<1x2xf32, #tpu.memory_space<vmem>>, vector<1x2xf32>
    %185 = vector.broadcast %184 : vector<1x2xf32> to vector<4x2xf32>
    %186 = arith.addf %183, %185 : vector<4x2xf32>
    %c0_77 = arith.constant 0 : index
    %c0_78 = arith.constant 0 : index
    %187 = vector.load %arg17[%c0_77, %c0_78] : memref<4x2xf32, #tpu.memory_space<vmem>>, vector<4x2xf32>
    tpu.vector_store %arg17[%c0_77, %c0_78], %186 {strides = array<i32>} : memref<4x2xf32, #tpu.memory_space<vmem>>, vector<4x2xf32>,
    return
  }
  func.func @transform_0(%arg0: i32) -> (i32, i32) {
    %c0_i32 = arith.constant 0 : i32
    %c0_i32_0 = arith.constant 0 : i32
    %c0_i32_1 = arith.constant 0 : i32
    return %c0_i32, %c0_i32_0 : i32, i32
  }
  func.func @transform_1(%arg0: i32) -> (i32, i32) {
    %c0_i32 = arith.constant 0 : i32
    %c0_i32_0 = arith.constant 0 : i32
    %c0_i32_1 = arith.constant 0 : i32
    return %c0_i32, %c0_i32_0 : i32, i32
  }
  func.func @transform_2(%arg0: i32) -> (i32, i32) {
    %c0_i32 = arith.constant 0 : i32
    %c0_i32_0 = arith.constant 0 : i32
    %c0_i32_1 = arith.constant 0 : i32
    return %c0_i32, %c0_i32_0 : i32, i32
  }
  func.func @transform_3(%arg0: i32) -> (i32, i32) {
    %c0_i32 = arith.constant 0 : i32
    %c0_i32_0 = arith.constant 0 : i32
    %c0_i32_1 = arith.constant 0 : i32
    return %c0_i32, %c0_i32_0 : i32, i32
  }
  func.func @transform_4(%arg0: i32) -> (i32, i32) {
    %c0_i32 = arith.constant 0 : i32
    %c0_i32_0 = arith.constant 0 : i32
    %c0_i32_1 = arith.constant 0 : i32
    return %c0_i32, %c0_i32_0 : i32, i32
  }
  func.func @transform_5(%arg0: i32) -> (i32, i32) {
    %c0_i32 = arith.constant 0 : i32
    %c0_i32_0 = arith.constant 0 : i32
    %c0_i32_1 = arith.constant 0 : i32
    return %c0_i32, %c0_i32_0 : i32, i32
  }
  func.func @transform_6(%arg0: i32) -> (i32, i32) {
    %c0_i32 = arith.constant 0 : i32
    %c0_i32_0 = arith.constant 0 : i32
    %c0_i32_1 = arith.constant 0 : i32
    return %c0_i32, %c0_i32_0 : i32, i32
  }
  func.func @transform_7(%arg0: i32) -> (i32, i32) {
    %c0_i32 = arith.constant 0 : i32
    %c0_i32_0 = arith.constant 0 : i32
    %c0_i32_1 = arith.constant 0 : i32
    return %c0_i32, %c0_i32_0 : i32, i32
  }
  func.func @transform_8(%arg0: i32) -> (i32, i32) {
    %c0_i32 = arith.constant 0 : i32
    %c0_i32_0 = arith.constant 0 : i32
    %c0_i32_1 = arith.constant 0 : i32
    return %c0_i32, %c0_i32_0 : i32, i32
  }
  func.func @transform_9(%arg0: i32) -> (i32, i32) {
    %c0_i32 = arith.constant 0 : i32
    %c0_i32_0 = arith.constant 0 : i32
    %c0_i32_1 = arith.constant 0 : i32
    return %c0_i32, %c0_i32_0 : i32, i32
  }
  func.func @transform_10(%arg0: i32) -> (i32, i32) {
    %c0_i32 = arith.constant 0 : i32
    %c0_i32_0 = arith.constant 0 : i32
    %c0_i32_1 = arith.constant 0 : i32
    return %c0_i32, %c0_i32_0 : i32, i32
  }
  func.func @transform_11(%arg0: i32) -> (i32, i32) {
    %c0_i32 = arith.constant 0 : i32
    %c0_i32_0 = arith.constant 0 : i32
    %c0_i32_1 = arith.constant 0 : i32
    return %c0_i32, %c0_i32_0 : i32, i32
  }
  func.func @transform_12(%arg0: i32) -> (i32, i32) {
    %c0_i32 = arith.constant 0 : i32
    %c0_i32_0 = arith.constant 0 : i32
    %c0_i32_1 = arith.constant 0 : i32
    return %c0_i32, %c0_i32_0 : i32, i32
  }
  func.func @transform_13(%arg0: i32) -> (i32, i32) {
    %c0_i32 = arith.constant 0 : i32
    %c0_i32_0 = arith.constant 0 : i32
    %c0_i32_1 = arith.constant 0 : i32
    return %c0_i32, %c0_i32_0 : i32, i32
  }
  func.func @transform_14(%arg0: i32) -> (i32, i32) {
    %c0_i32 = arith.constant 0 : i32
    %c0_i32_0 = arith.constant 0 : i32
    %c0_i32_1 = arith.constant 0 : i32
    return %c0_i32, %c0_i32_0 : i32, i32
  }
  func.func @transform_15(%arg0: i32) -> (i32, i32) {
    %c0_i32 = arith.constant 0 : i32
    %c0_i32_0 = arith.constant 0 : i32
    %c0_i32_1 = arith.constant 0 : i32
    return %c0_i32, %c0_i32_0 : i32, i32
  }
  func.func @transform_16(%arg0: i32) -> (i32, i32) {
    %c0_i32 = arith.constant 0 : i32
    %c0_i32_0 = arith.constant 0 : i32
    %c0_i32_1 = arith.constant 0 : i32
    return %c0_i32, %c0_i32_0 : i32, i32
  }
}

</mosaic_0001>

<bundles_post_ra>
// kernel: tpu_custom_call.1
= control target key start
LH: loop header
LB: loop body
LE: loop exit
PB: predicated region body
PF: predicated region fallthrough
CT: control target
= control target key end

     0   :  { %s7208_s0 = inlined_call_operand.vmem [shape: f32[120,256], index: 0, kind: input, shape index: {}]   ;;  %s7209_s1 = inlined_call_operand.hbm [shape: f32[1,256], index: 1, kind: input, shape index: {}]   ;;  %s7210_s2 = inlined_call_operand.hbm [shape: f32[1,256], index: 2, kind: input, shape index: {}]   ;;  %s7211_s3 = inlined_call_operand.vmem [shape: f32[128,120], index: 3, kind: input, shape index: {}]   ;;  %s7212_s4 = inlined_call_operand.hbm [shape: f32[120,128], index: 4, kind: input, shape index: {}]   ;;  %s7213_s5 = inlined_call_operand.vmem [shape: f32[6,256], index: 5, kind: input, shape index: {}]   ;;  %s7214_s6 = inlined_call_operand.vmem [shape: f32[6,256], index: 6, kind: input, shape index: {}]   ;;  %s7215_s7 = inlined_call_operand.hbm [shape: f32[256,1024], index: 7, kind: input, shape index: {}]   ;;  %s7216_s8 = inlined_call_operand.hbm [shape: f32[120,1024], index: 8, kind: input, shape index: {}]   ;;  %s7217_s9 = inlined_call_operand.hbm [shape: f32[4,120], index: 9, kind: input, shape index: {}]   ;;  %s7218_s10 = inlined_call_operand.hbm [shape: f32[1024,128], index: 10, kind: input, shape index: {}]   ;;  %s7219_s11 = inlined_call_operand.vmem [shape: f32[1,128], index: 11, kind: input, shape index: {}]   ;;  %s7220_s12 = inlined_call_operand.vmem [shape: f32[128,512], index: 12, kind: input, shape index: {}]   ;;  %s7221_s13 = inlined_call_operand.hbm [shape: f32[1,512], index: 13, kind: input, shape index: {}]   ;;  %s7222_s14 = inlined_call_operand.vmem [shape: f32[512,2], index: 14, kind: input, shape index: {}]   ;;  %s7223_s15 = inlined_call_operand.vmem [shape: f32[1,2], index: 15, kind: input, shape index: {}]   ;;  %s7224_s16 = inlined_call_operand.vmem [shape: f32[4,2], index: 16, kind: output, shape index: {}]  }
   0x1   :  { %7317 = sst [smem:[#allocation88_spill]] %s7208_s0 }
   0x2   :  { %21 = vsyncpa [#allocation3], 0 }
   0x3   :  { %22 = vsyncpa [#allocation5], 0 }
   0x4   :  { %23 = vsyncpa [#allocation8], 0 }
   0x5   :  { %24 = vsyncpa [#allocation11], 0 }
   0x6   :  { %25 = vsyncpa [#allocation14], 0  ;;  %s4715_s21 = smov [#allocation4]   ;;  %s4716_s23 = smov [#allocation7]  }
   0x7   :  { %s44_s22 = sshll.u32 %s4715_s21, 4  ;;  %s71_s24 = sshll.u32 %s4716_s23, 4  ;;  %s45_s22 = int_to_ptr.vmem [resolvable:$true] %s44_s22  ;;  %s72_s24 = int_to_ptr.vmem [resolvable:$true] %s71_s24 }
   0x8   :  { %s4553_s25 = scalar_lea.vmem %s45_s22, 32  ;;  %p4558_p1 = scmp.lt.s32.totalorder %s45_s22, %s45_s22 }
   0x9   :  { %p4554_p0 = scmp.ne.s32.totalorder %s45_s22, %s4553_s25  ;;  %p4559_p2 = scmp.lt.s32.totalorder %s4553_s25, %s4553_s25 }
   0xb   :  { %p4560_p3 = por %p4559_p2, %p4558_p1 }
   0xd   :  { %p4561_p4 = pnand %p4560_p3, %p4554_p0 }
   0xf   :  { %4564 = shalt.err (!%p4561_p4)
}
  0x10   :  { %47 = dma.hbm_to_vmem [thread:$0]  %s7210_s2, 32, %s45_s22, [#allocation5]  }
  0x11   :  { %s4573_s28 = scalar_lea.vmem %s72_s24, 32768  ;;  %p4578_p6 = scmp.lt.s32.totalorder %s72_s24, %s72_s24 }
  0x12   :  { %p4574_p5 = scmp.ne.s32.totalorder %s72_s24, %s4573_s28  ;;  %p4579_p7 = scmp.lt.s32.totalorder %s4573_s28, %s4573_s28 }
  0x14   :  { %p4580_p8 = por %p4579_p7, %p4578_p6 }
  0x16   :  { %p4581_p9 = pnand %p4580_p8, %p4574_p5 }
  0x18   :  { %4584 = shalt.err (!%p4581_p9)
}
  0x19   :  { %s4717_s29 = smov 1024   ;;  %s4718_s30 = smov 64  }
  0x1a   :  { %77 = dma.hbm_to_vmem [thread:$0]  %s7215_s7, 32768, %s72_s24, [#allocation8], %s4717_s29, %s4717_s29, %s4718_s30  }
  0x1b   :  { %s4719_s18 = smov [#allocation10]   ;;  %s4720_s20 = smov [#allocation2]  }
  0x1c   :  { %s96_s19 = sshll.u32 %s4719_s18, 4  ;;  %s34_s2 = sshll.u32 %s4720_s20, 4  ;;  %s97_s19 = int_to_ptr.vmem [resolvable:$true] %s96_s19  ;;  %s35_s2 = int_to_ptr.vmem [resolvable:$true] %s34_s2 }
  0x1d   :  { %s4593_s21 = scalar_lea.vmem %s97_s19, 64  ;;  %p4598_p11 = scmp.lt.s32.totalorder %s97_s19, %s97_s19 }
  0x1e   :  { %p4594_p10 = scmp.ne.s32.totalorder %s97_s19, %s4593_s21  ;;  %p4599_p12 = scmp.lt.s32.totalorder %s4593_s21, %s4593_s21 }
  0x20   :  { %p4600_p13 = por %p4599_p12, %p4598_p11 }
  0x22   :  { %p4601_p0 = pnand %p4600_p13, %p4594_p10 }
  0x24   :  { %4604 = shalt.err (!%p4601_p0)
}
  0x25   :  { %99 = dma.hbm_to_vmem [thread:$0]  %s7217_s9, 64, %s97_s19, [#allocation11]  }
  0x26   :  { %s4613_s25 = scalar_lea.vmem %s35_s2, 32  ;;  %p4618_p2 = scmp.lt.s32.totalorder %s35_s2, %s35_s2 }
  0x27   :  { %p4614_p1 = scmp.ne.s32.totalorder %s35_s2, %s4613_s25  ;;  %p4619_p3 = scmp.lt.s32.totalorder %s4613_s25, %s4613_s25 }
  0x29   :  { %p4620_p4 = por %p4619_p3, %p4618_p2 }
  0x2b   :  { %p4621_p5 = pnand %p4620_p4, %p4614_p1 }
  0x2d   :  { %4624 = shalt.err (!%p4621_p5)
}
  0x2e   :  { %37 = dma.hbm_to_vmem [thread:$0]  %s7209_s1, 32, %s35_s2, [#allocation3]  }
  0x2f   :  { %s4721_s26 = smov [#allocation6]  }
  0x30   :  { %s55_s27 = sshll.u32 %s4721_s26, 4  ;;  %s56_s27 = int_to_ptr.vmem [resolvable:$true] %s55_s27 }
  0x31   :  { %s4633_s28 = scalar_lea.vmem %s56_s27, 1920  ;;  %p4638_p7 = scmp.lt.s32.totalorder %s56_s27, %s56_s27 }
  0x32   :  { %p4634_p6 = scmp.ne.s32.totalorder %s56_s27, %s4633_s28  ;;  %p4639_p8 = scmp.lt.s32.totalorder %s4633_s28, %s4633_s28 }
  0x34   :  { %p4640_p9 = por %p4639_p8, %p4638_p7 }
  0x36   :  { %p4641_p10 = pnand %p4640_p9, %p4634_p6 }
  0x38   :  { %4644 = shalt.err (!%p4641_p10)
}
  0x39   :  { %s4722_s9 = smov 128   ;;  %s4723_s0 = smov 8  }
  0x3a   :  { %61 = dma.hbm_to_vmem [thread:$0]  %s7212_s4, 1920, %s56_s27, [#allocation5], %s4722_s9, %s4722_s9, %s4723_s0  }
  0x3b   :  { %s4724_s19 = smov [#allocation9]   ;;  %s4725_s1 = smov [#allocation12]  }
  0x3c   :  { %s83_s20 = sshll.u32 %s4724_s19, 4  ;;  %s105_s2 = sshll.u32 %s4725_s1, 4  ;;  %s84_s20 = int_to_ptr.vmem [resolvable:$true] %s83_s20  ;;  %s106_s2 = int_to_ptr.vmem [resolvable:$true] %s105_s2 }
  0x3d   :  { %s4653_s21 = scalar_lea.vmem %s84_s20, 15360  ;;  %p4658_p12 = scmp.lt.s32.totalorder %s84_s20, %s84_s20 }
  0x3e   :  { %p4654_p11 = scmp.ne.s32.totalorder %s84_s20, %s4653_s21  ;;  %p4659_p13 = scmp.lt.s32.totalorder %s4653_s21, %s4653_s21 }
  0x40   :  { %p4660_p0 = por %p4659_p13, %p4658_p12 }
  0x42   :  { %p4661_p1 = pnand %p4660_p0, %p4654_p11 }
  0x44   :  { %4664 = shalt.err (!%p4661_p1)
}
  0x45   :  { %89 = dma.hbm_to_vmem [thread:$0]  %s7216_s8, 15360, %s84_s20, [#allocation8], %s4717_s29, %s4717_s29, %s4718_s30  }
  0x46   :  { %s4673_s4 = scalar_lea.vmem %s106_s2, 16384  ;;  %p4678_p3 = scmp.lt.s32.totalorder %s106_s2, %s106_s2 }
  0x47   :  { %p4674_p2 = scmp.ne.s32.totalorder %s106_s2, %s4673_s4  ;;  %p4679_p4 = scmp.lt.s32.totalorder %s4673_s4, %s4673_s4 }
  0x49   :  { %p4680_p5 = por %p4679_p4, %p4678_p3 }
  0x4b   :  { %p4681_p6 = pnand %p4680_p5, %p4674_p2 }
  0x4d   :  { %4684 = shalt.err (!%p4681_p6)
}
  0x4e   :  { %111 = dma.hbm_to_vmem [thread:$0]  %s7218_s10, 16384, %s106_s2, [#allocation11], %s4722_s9, %s4722_s9, %s4723_s0  }
  0x4f   :  { %s4726_s24 = smov [#allocation13]  }
  0x50   :  { %s122_s26 = sshll.u32 %s4726_s24, 4  ;;  %s123_s26 = int_to_ptr.vmem [resolvable:$true] %s122_s26 }
  0x51   :  { %s4693_s27 = scalar_lea.vmem %s123_s26, 64  ;;  %p4698_p8 = scmp.lt.s32.totalorder %s123_s26, %s123_s26 }
  0x52   :  { %p4694_p7 = scmp.ne.s32.totalorder %s123_s26, %s4693_s27  ;;  %p4699_p9 = scmp.lt.s32.totalorder %s4693_s27, %s4693_s27 }
  0x54   :  { %p4700_p10 = por %p4699_p9, %p4698_p8 }
  0x56   :  { %p4701_p11 = pnand %p4700_p10, %p4694_p7 }
  0x58   :  { %4704 = shalt.err (!%p4701_p11)
}
  0x59   :  { %125 = dma.hbm_to_vmem [thread:$0]  %s7221_s13, 64, %s123_s26, [#allocation14]  }
  0x5a   :  { %4705 = dma.done.wait [#allocation3], 32  }
  0x5b   :  { %4706 = vsyncadd [#allocation3], 4294967264 }
  0x5c   :  { %4707 = dma.done.wait [#allocation5], 1952  }
  0x5d   :  { %4708 = vsyncadd [#allocation5], 4294965344 }
  0x5e   :  { %4709 = dma.done.wait [#allocation8], 48128  }
  0x5f   :  { %4710 = vsyncadd [#allocation8], 4294919168 }
  0x60   :  { %4711 = dma.done.wait [#allocation11], 16448  }
  0x61   :  { %4712 = vsyncadd [#allocation11], 4294950848 }
  0x62   :  { %4713 = dma.done.wait [#allocation14], 64  }
  0x63   :  { %4714 = vsyncadd [#allocation14], 4294967232  ;;  %v186_v0 = vlaneseq  ;;  %v7226_v1 = vmov 0.0   ;;  %s7320_s30 = sld [smem:[#allocation88_spill]]  ;;  %v184_v6 = vld [vmem:[#allocation2] sm:$0x3] }
  0x64   :  { %355 = vmatprep.mubr.f32.mxu0 %v7226_v1  ;;  %1827 = vmatprep.mubr.f32.mxu1 %v7226_v1  ;;  %vm242_vm0 = vcmask 982016  }
  0x65   :  { %v4845_v2 = vshrl.u32 %v186_v0, 7 }
  0x67   :  { %v4848_v3 = vsub.s32 1, %v4845_v2  ;;  %v4851_v4 = vsub.s32 0, %v4845_v2 }
  0x69   :  { %7318 = vst [vmem:[#allocation20_spill] sm:$0xff] %v4848_v3  ;;  %7319 = vst [vmem:[#allocation21_spill] sm:$0xff] %v4851_v4  ;;  %v183_v5 = vld [vmem:[%s7320_s30 + $0xe8] sm:$0xff]  ;;  %v182_v7 = vld [vmem:[%s7320_s30 + $0xe0] sm:$0xff]  ;;  %v4860_v8 = vrot.slane %v184_v6, %v4848_v3  ;;  %v4863_v9 = vrot.slane %v184_v6, %v4851_v4 }
  0x6a   :  { %v181_v10 = vld [vmem:[%s7320_s30 + $0xd8] sm:$0xff]  ;;  %v180_v11 = vld [vmem:[%s7320_s30 + $0xd0] sm:$0xff]  ;;  %v179_v12 = vld [vmem:[%s7320_s30 + $0xc8] sm:$0xff] }
  0x6b   :  { %v225_v13 = vmul.f32 %v4860_v8, %v183_v5  ;;  %v224_v14 = vmul.f32 %v4863_v9, %v182_v7  ;;  %v223_v15 = vmul.f32 %v4860_v8, %v181_v10  ;;  %v178_v16 = vld [vmem:[%s7320_s30 + $0xc0] sm:$0xff]  ;;  %v222_v17 = vmul.f32 %v4863_v9, %v180_v11  ;;  %v177_v18 = vld [vmem:[%s7320_s30 + $0xb8] sm:$0xff]  ;;  %v176_v20 = vld [vmem:[%s7320_s30 + $0xb0] sm:$0xff] }
  0x6c   :  { %v221_v19 = vmul.f32 %v4860_v8, %v179_v12  ;;  %v220_v21 = vmul.f32 %v4863_v9, %v178_v16  ;;  %v175_v22 = vld [vmem:[%s7320_s30 + $0xa8] sm:$0xff]  ;;  %v219_v23 = vmul.f32 %v4860_v8, %v177_v18  ;;  %v174_v24 = vld [vmem:[%s7320_s30 + $0xa0] sm:$0xff]  ;;  %v218_v25 = vmul.f32 %v4863_v9, %v176_v20  ;;  %v173_v26 = vld [vmem:[%s7320_s30 + $0x98] sm:$0xff] }
  0x6d   :  { %293 = vmatprep.subr.mxu0 %v225_v13  ;;  %v217_v27 = vmul.f32 %v4860_v8, %v175_v22  ;;  %v172_v28 = vld [vmem:[%s7320_s30 + $0x90] sm:$0xff]  ;;  %v216_v29 = vmul.f32 %v4863_v9, %v174_v24  ;;  %v171_v30 = vld [vmem:[%s7320_s30 + $0x88] sm:$0xff]  ;;  %v215_v31 = vmul.f32 %v4860_v8, %v173_v26  ;;  %v170_v32 = vld [vmem:[%s7320_s30 + $0x80] sm:$0xff] }
  0x6e   :  { %294 = vmatpush1.msra.mxu0 %v224_v14  ;;  %v214_v33 = vmul.f32 %v4863_v9, %v172_v28  ;;  %v169_v34 = vld [vmem:[%s7320_s30 + $0x78] sm:$0xff]  ;;  %v213_v35 = vmul.f32 %v4860_v8, %v171_v30  ;;  %v168_v36 = vld [vmem:[%s7320_s30 + $0x70] sm:$0xff]  ;;  %v212_v37 = vmul.f32 %v4863_v9, %v170_v32  ;;  %v167_v38 = vld [vmem:[%s7320_s30 + $0x68] sm:$0xff] }
  0x6f   :  { %295 = vmatprep.subr.mxu0 %v223_v15  ;;  %v211_v39 = vmul.f32 %v4860_v8, %v169_v34  ;;  %v166_v40 = vld [vmem:[%s7320_s30 + $0x60] sm:$0xff]  ;;  %v210_v41 = vmul.f32 %v4863_v9, %v168_v36  ;;  %v165_v42 = vld [vmem:[%s7320_s30 + $0x58] sm:$0xff]  ;;  %v209_v43 = vmul.f32 %v4860_v8, %v167_v38  ;;  %v164_v44 = vld [vmem:[%s7320_s30 + $0x50] sm:$0xff] }
  0x70   :  { %296 = vmatpush1.msra.mxu0 %v222_v17  ;;  %v208_v45 = vmul.f32 %v4863_v9, %v166_v40  ;;  %v163_v46 = vld [vmem:[%s7320_s30 + $0x48] sm:$0xff]  ;;  %v207_v47 = vmul.f32 %v4860_v8, %v165_v42  ;;  %v162_v48 = vld [vmem:[%s7320_s30 + $0x40] sm:$0xff]  ;;  %v206_v49 = vmul.f32 %v4863_v9, %v164_v44  ;;  %v161_v50 = vld [vmem:[%s7320_s30 + $0x38] sm:$0xff]  ;;  %v5093_v40 = vsub.s32 3, %v4845_v2 }
  0x71   :  { %297 = vmatprep.subr.mxu0 %v221_v19  ;;  %v205_v51 = vmul.f32 %v4860_v8, %v163_v46  ;;  %v160_v52 = vld [vmem:[%s7320_s30 + $0x30] sm:$0xff]  ;;  %v204_v53 = vmul.f32 %v4863_v9, %v162_v48  ;;  %v159_v54 = vld [vmem:[%s7320_s30 + $0x28] sm:$0xff]  ;;  %v203_v55 = vmul.f32 %v4860_v8, %v161_v50  ;;  %v158_v56 = vld [vmem:[%s7320_s30 + $0x20] sm:$0xff] }
  0x72   :  { %298 = vmatpush1.msra.mxu0 %v220_v21  ;;  %v202_v57 = vmul.f32 %v4863_v9, %v160_v52  ;;  %v157_v58 = vld [vmem:[%s7320_s30 + $0x18] sm:$0xff]  ;;  %v201_v59 = vmul.f32 %v4860_v8, %v159_v54  ;;  %v156_v60 = vld [vmem:[%s7320_s30 + $0x10] sm:$0xff]  ;;  %v200_v61 = vmul.f32 %v4863_v9, %v158_v56  ;;  %v155_v62 = vld [vmem:[%s7320_s30 + $0x8] sm:$0xff]  ;;  %7333 = vst [vmem:[#allocation34_spill] sm:$0xff] %v5093_v40  ;;  %v1326_v52 = vsub.s32 5, %v4845_v2 }
  0x73   :  { %299 = vmatprep.subr.mxu0 %v219_v23  ;;  %v199_v63 = vmul.f32 %v4860_v8, %v157_v58  ;;  %v154_v0 = vld [vmem:[%s7320_s30] sm:$0xff]  ;;  %v198_v5 = vmul.f32 %v4863_v9, %v156_v60  ;;  %v197_v6 = vmul.f32 %v4860_v8, %v155_v62  ;;  %v227_v8 = vld [vmem:[%s7211_s3 + $0x8] sm:$0xff]  ;;  %v229_v11 = vld [vmem:[%s7211_s3 + $0x18] sm:$0xff] }
  0x74   :  { %300 = vmatpush1.msra.mxu0 %v218_v25  ;;  %v196_v7 = vmul.f32 %v4863_v9, %v154_v0  ;;  %v226_v10 = vld [vmem:[%s7211_s3] sm:$0xff]  ;;  %v228_v9 = vld [vmem:[%s7211_s3 + $0x10] sm:$0xff]  ;;  %v231_v13 = vld [vmem:[%s7211_s3 + $0x28] sm:$0xff] }
  0x75   :  { %301 = vmatprep.subr.mxu0 %v217_v27  ;;  %v230_v12 = vld [vmem:[%s7211_s3 + $0x20] sm:$0xff]  ;;  %v232_v14 = vld [vmem:[%s7211_s3 + $0x30] sm:$0xff]  ;;  %v233_v15 = vld [vmem:[%s7211_s3 + $0x38] sm:$0xff] }
  0x76   :  { %302 = vmatpush1.msra.mxu0 %v216_v29  ;;  %v234_v16 = vld [vmem:[%s7211_s3 + $0x40] sm:$0xff]  ;;  %v235_v17 = vld [vmem:[%s7211_s3 + $0x48] sm:$0xff]  ;;  %v236_v18 = vld [vmem:[%s7211_s3 + $0x50] sm:$0xff] }
  0x77   :  { %303 = vmatprep.subr.mxu0 %v215_v31  ;;  %v237_v19 = vld [vmem:[%s7211_s3 + $0x58] sm:$0xff]  ;;  %v238_v20 = vld [vmem:[%s7211_s3 + $0x60] sm:$0xff]  ;;  %v239_v21 = vld [vmem:[%s7211_s3 + $0x68] sm:$0xff] }
  0x78   :  { %304 = vmatpush1.msra.mxu0 %v214_v33  ;;  %v240_v22 = vld [vmem:[%s7211_s3 + $0x70] sm:$0xff]  ;;  %v241_v23 = vld [vmem:[%s7211_s3 + $0x78] sm:$0xff]  ;;  %v452_v34 = vld [vmem:[#allocation4] sm:$0x3] }
  0x79   :  { %305 = vmatprep.subr.mxu0 %v213_v35  ;;  %v496_v35 = vld [vmem:[%s7213_s5] sm:$0x3f]  ;;  %v5110_v46 = vrot.slane %v452_v34, %v4848_v3 }
  0x7a   :  { %306 = vmatpush1.msra.mxu0 %v212_v37  ;;  %v497_v37 = vld [vmem:[%s7213_s5 + $0x8] sm:$0x3f]  ;;  %v498_v38 = vld [vmem:[%s7214_s6] sm:$0x3f]  ;;  %v5104_v44 = vrot.slane %v496_v35, %v4851_v4 }
  0x7b   :  { %307 = vmatprep.subr.mxu0 %v211_v39  ;;  %v5090_v39 = vsub.s32 2, %v4845_v2  ;;  %v5116_v48 = vrot.slane %v497_v37, %v4851_v4  ;;  %v5161_v0 = vrot.slane %v497_v37, %v5093_v40 }
  0x7c   :  { %308 = vmatpush1.msra.mxu0 %v210_v41  ;;  %v5096_v41 = vrot.slane %v452_v34, %v4851_v4 }
  0x7d   :  { %309 = vmatprep.subr.mxu0 %v209_v43  ;;  %7332 = vst [vmem:[#allocation33_spill] sm:$0xff] %v5090_v39  ;;  %v499_v43 = vld [vmem:[%s7214_s6 + $0x8] sm:$0x3f]  ;;  %v5131_v54 = vrot.slane %v496_v35, %v5090_v39  ;;  %v5142_v58 = vrot.slane %v498_v38, %v5090_v39  ;;  %v5151_v60 = vrot.slane %v497_v37, %v5090_v39 }
  0x7e   :  { %310 = vmatpush1.msra.mxu0 %v208_v45  ;;  %v5107_v45 = vrot.slane %v496_v35, %v4848_v3  ;;  %v5137_v56 = vrot.slane %v499_v43, %v4851_v4 }
  0x7f   :  { %311 = vmatprep.subr.mxu0 %v207_v47  ;;  %v5113_v47 = vsub.s32 4, %v4845_v2  ;;  %v5148_v2 = vrot.slane %v499_v43, %v4848_v3 }
  0x80   :  { %312 = vmatpush1.msra.mxu0 %v206_v49  ;;  %v5119_v49 = vrot.slane %v497_v37, %v4848_v3 }
  0x81   :  { %313 = vmatprep.subr.mxu0 %v205_v51  ;;  %7335 = vst [vmem:[#allocation36_spill] sm:$0xff] %v5113_v47  ;;  %v5124_v51 = vrot.slane %v498_v38, %v4851_v4 }
  0x82   :  { %314 = vmatpush1.msra.mxu0 %v204_v53  ;;  %v5128_v53 = vrot.slane %v498_v38, %v4848_v3 }
  0x83   :  { %315 = vmatprep.subr.mxu0 %v203_v55  ;;  %v5134_v55 = vrot.slane %v496_v35, %v5093_v40 }
  0x84   :  { %316 = vmatpush1.msra.mxu0 %v202_v57 }
  0x85   :  { %317 = vmatprep.subr.mxu0 %v201_v59  ;;  %v5145_v59 = vrot.slane %v498_v38, %v5093_v40 }
  0x86   :  { %318 = vmatpush1.msra.mxu0 %v200_v61 }
  0x87   :  { %319 = vmatprep.subr.mxu0 %v199_v63  ;;  %v5158_v63 = vrot.slane %v496_v35, %v5113_v47 }
  0x88   :  { %320 = vmatpush1.msra.mxu0 %v198_v5 }
  0x89   :  { %321 = vmatprep.subr.mxu0 %v197_v6 }
  0x8a   :  { %322 = vmatpush1.msra.mxu0 %v196_v7  ;;  %v5167_v7 = vrot.slane %v496_v35, %v1326_v52 }
  0x8b   :  { %4202 = vmatmul.mubr.msk.f32.vlgmr.msra.gmra.mxu0 %vm242_vm0, %v226_v10  ;;  %v5170_v10 = vrot.slane %v499_v43, %v5090_v39 }
  0x8c   :  { %361 = vmatprep.mubr.f32.mxu0 %v7226_v1 }
  0x8f   :  { %4203 = vmatmul.mubr.msk.f32.gmra.mxu0 %vm242_vm0, %v227_v8  ;;  %v5173_v8 = vrot.slane %v499_v43, %v5093_v40 }
  0x90   :  { %367 = vmatprep.mubr.f32.mxu0 %v7226_v1 }
  0x93   :  { %4204 = vmatmul.mubr.msk.f32.gmra.mxu0 %vm242_vm0, %v228_v9 }
  0x94   :  { %373 = vmatprep.mubr.f32.mxu0 %v7226_v1 }
  0x97   :  { %4205 = vmatmul.mubr.msk.f32.gmra.mxu0 %vm242_vm0, %v229_v11 }
  0x98   :  { %379 = vmatprep.mubr.f32.mxu0 %v7226_v1 }
  0x9b   :  { %4206 = vmatmul.mubr.msk.f32.gmra.mxu0 %vm242_vm0, %v230_v12  ;;  %v5179_v12 = vrot.slane %v498_v38, %v1326_v52 }
  0x9c   :  { %385 = vmatprep.mubr.f32.mxu0 %v7226_v1 }
  0x9f   :  { %4207 = vmatmul.mubr.msk.f32.gmra.mxu0 %vm242_vm0, %v231_v13  ;;  %v5182_v13 = vrot.slane %v497_v37, %v5113_v47 }
  0xa0   :  { %391 = vmatprep.mubr.f32.mxu0 %v7226_v1 }
  0xa3   :  { %4208 = vmatmul.mubr.msk.f32.gmra.mxu0 %vm242_vm0, %v232_v14 }
  0xa4   :  { %397 = vmatprep.mubr.f32.mxu0 %v7226_v1 }
  0xa7   :  { %4209 = vmatmul.mubr.msk.f32.gmra.mxu0 %vm242_vm0, %v233_v15 }
  0xa8   :  { %403 = vmatprep.mubr.f32.mxu0 %v7226_v1 }
  0xab   :  { %4210 = vmatmul.mubr.msk.f32.gmra.mxu0 %vm242_vm0, %v234_v16 }
  0xac   :  { %409 = vmatprep.mubr.f32.mxu0 %v7226_v1 }
  0xaf   :  { %4211 = vmatmul.mubr.msk.f32.gmra.mxu0 %vm242_vm0, %v235_v17  ;;  %v5190_v17 = vrot.slane %v497_v37, %v1326_v52 }
  0xb0   :  { %415 = vmatprep.mubr.f32.mxu0 %v7226_v1 }
  0xb3   :  { %4212 = vmatmul.mubr.msk.f32.gmra.mxu0 %vm242_vm0, %v236_v18  ;;  %v5192_v18 = vrot.slane %v499_v43, %v1326_v52 }
  0xb4   :  { %421 = vmatprep.mubr.f32.mxu0 %v7226_v1 }
  0xb7   :  { %4213 = vmatmul.mubr.msk.f32.gmra.mxu0 %vm242_vm0, %v237_v19 }
  0xb8   :  { %427 = vmatprep.mubr.f32.mxu0 %v7226_v1 }
  0xbb   :  { %4214 = vmatmul.mubr.msk.f32.gmra.mxu0 %vm242_vm0, %v238_v20 }
  0xbc   :  { %433 = vmatprep.mubr.f32.mxu0 %v7226_v1 }
  0xbf   :  { %4215 = vmatmul.mubr.msk.f32.gmra.mxu0 %vm242_vm0, %v239_v21 }
  0xc0   :  { %439 = vmatprep.mubr.f32.mxu0 %v7226_v1 }
  0xc3   :  { %4216 = vmatmul.mubr.msk.f32.gmra.mxu0 %vm242_vm0, %v240_v22 }
  0xc4   :  { %445 = vmatprep.mubr.f32.mxu0 %v7226_v1 }
  0xc7   :  { %4217 = vmatmul.mubr.msk.f32.gmra.mxu0 %vm242_vm0, %v241_v23 }
 0x14b   :  { %v5058_v24 = vpop.f32.mrf.mxu0 }
 0x14c   :  { %7321 = vst [vmem:[#allocation22_spill] sm:$0xff] %v5058_v24  ;;  %v464_v61 = vmul.f32 %v5096_v41, %v5058_v24 }
 0x14d   :  { %v5060_v25 = vpop.f32.mrf.mxu0 }
 0x14e   :  { %7322 = vst [vmem:[#allocation23_spill] sm:$0xff] %v5060_v25  ;;  %v465_v62 = vmul.f32 %v5110_v46, %v5060_v25  ;;  %v508_v19 = vmul.f32 %v5104_v44, %v464_v61  ;;  %v620_v20 = vmul.f32 %v5107_v45, %v464_v61 }
 0x14f   :  { %v5062_v26 = vpop.f32.mrf.mxu0 }
 0x150   :  { %7323 = vst [vmem:[#allocation24_spill] sm:$0xff] %v5062_v26  ;;  %v466_v5 = vmul.f32 %v5096_v41, %v5062_v26  ;;  %v509_v21 = vmul.f32 %v5116_v48, %v465_v62  ;;  %v621_v22 = vmul.f32 %v5119_v49, %v465_v62 }
 0x151   :  { %v5064_v27 = vpop.f32.mrf.mxu0 }
 0x152   :  { %7324 = vst [vmem:[#allocation25_spill] sm:$0xff] %v5064_v27  ;;  %v467_v9 = vmul.f32 %v5110_v46, %v5064_v27  ;;  %v510_v23 = vmul.f32 %v5104_v44, %v466_v5  ;;  %v622_v34 = vmul.f32 %v5107_v45, %v466_v5 }
 0x153   :  { %v5066_v28 = vpop.f32.mrf.mxu0 }
 0x154   :  { %7325 = vst [vmem:[#allocation26_spill] sm:$0xff] %v5066_v28  ;;  %v468_v11 = vmul.f32 %v5096_v41, %v5066_v28  ;;  %v5207_v43 = vmul.f32 %v5116_v48, %v467_v9  ;;  %v5210_v52 = vmul.f32 %v5119_v49, %v467_v9 }
 0x155   :  { %v5068_v29 = vpop.f32.mrf.mxu0 }
 0x156   :  { %7326 = vst [vmem:[#allocation27_spill] sm:$0xff] %v5068_v29  ;;  %v469_v14 = vmul.f32 %v5110_v46, %v5068_v29  ;;  %v5213_v61 = vmul.f32 %v5104_v44, %v468_v11  ;;  %v5218_v5 = vmul.f32 %v5107_v45, %v468_v11 }
 0x157   :  { %v5070_v30 = vpop.f32.mrf.mxu0 }
 0x158   :  { %7327 = vst [vmem:[#allocation28_spill] sm:$0xff] %v5070_v30  ;;  %v470_v15 = vmul.f32 %v5096_v41, %v5070_v30  ;;  %v5221_v1 = vmul.f32 %v5116_v48, %v469_v14  ;;  %v5224_v40 = vmul.f32 %v5119_v49, %v469_v14 }
 0x159   :  { %v5072_v31 = vpop.f32.mrf.mxu0 }
 0x15a   :  { %7328 = vst [vmem:[#allocation29_spill] sm:$0xff] %v5072_v31  ;;  %v471_v35 = vmul.f32 %v5110_v46, %v5072_v31  ;;  %v5227_v3 = vmul.f32 %v5104_v44, %v470_v15  ;;  %v5232_v39 = vmul.f32 %v5107_v45, %v470_v15 }
 0x15b   :  { %v5074_v32 = vpop.f32.mrf.mxu0 }
 0x15c   :  { %7329 = vst [vmem:[#allocation30_spill] sm:$0xff] %v5074_v32  ;;  %v472_v37 = vmul.f32 %v5096_v41, %v5074_v32  ;;  %v5239_v25 = vmul.f32 %v5116_v48, %v471_v35  ;;  %v5242_v14 = vmul.f32 %v5119_v49, %v471_v35 }
 0x15d   :  { %v5076_v33 = vpop.f32.mrf.mxu0 }
 0x15e   :  { %7330 = vst [vmem:[#allocation31_spill] sm:$0xff] %v5076_v33  ;;  %7340 = vst [vmem:[#allocation41_spill] sm:$0xff] %v5239_v25  ;;  %v5245_v26 = vmul.f32 %v5104_v44, %v472_v37  ;;  %v473_v15 = vmul.f32 %v5110_v46, %v5076_v33  ;;  %v5254_v31 = vmul.f32 %v5107_v45, %v472_v37 }
 0x15f   :  { %v5081_v36 = vpop.f32.mrf.mxu0  ;;  %7341 = vst [vmem:[#allocation42_spill] sm:$0xff] %v5242_v14 }
 0x160   :  { %7331 = vst [vmem:[#allocation32_spill] sm:$0xff] %v5081_v36  ;;  %7342 = vst [vmem:[#allocation43_spill] sm:$0xff] %v5245_v26  ;;  %v474_v35 = vmul.f32 %v5096_v41, %v5081_v36 }
 0x161   :  { %v5098_v42 = vpop.f32.mrf.mxu0  ;;  %7344 = vst [vmem:[#allocation45_spill] sm:$0xff] %v5254_v31 }
 0x162   :  { %7334 = vst [vmem:[#allocation35_spill] sm:$0xff] %v5098_v42  ;;  %v475_v32 = vmul.f32 %v5110_v46, %v5098_v42 }
 0x163   :  { %v5121_v50 = vpop.f32.mrf.mxu0 }
 0x164   :  { %7336 = vst [vmem:[#allocation37_spill] sm:$0xff] %v5121_v50  ;;  %v476_v37 = vmul.f32 %v5096_v41, %v5121_v50  ;;  %v5284_v50 = vmul.f32 %v5107_v45, %v474_v35 }
 0x165   :  { %v5139_v57 = vpop.f32.mrf.mxu0 }
 0x166   :  { %7337 = vst [vmem:[#allocation38_spill] sm:$0xff] %v5139_v57  ;;  %7349 = vst [vmem:[#allocation50_spill] sm:$0xff] %v5284_v50 }
 0x167   :  { %v5165_v6 = vpop.f32.mrf.mxu0 }
 0x168   :  { %7338 = vst [vmem:[#allocation39_spill] sm:$0xff] %v5165_v6 }
 0x169   :  { %v5188_v16 = vpop.f32.mrf.mxu0 }
 0x16a   :  { %7339 = vst [vmem:[#allocation40_spill] sm:$0xff] %v5188_v16 }
 0x16b   :  { %v5204_v38 = vpop.f32.mrf.mxu0 }
 0x16c   :  { %v480_v62 = vmul.f32 %v5096_v41, %v5204_v38 }
 0x16d   :  { %v5229_v9 = vpop.f32.mrf.mxu0 }
 0x16e   :  { %v532_v4 = vmul.f32 %v5107_v45, %v480_v62  ;;  %v604_v24 = vmul.f32 %v5104_v44, %v480_v62  ;;  %v481_v11 = vmul.f32 %v5110_v46, %v5229_v9 }
 0x16f   :  { %v5249_v27 = vpop.f32.mrf.mxu0 }
 0x170   :  { %7343 = vst [vmem:[#allocation44_spill] sm:$0xff] %v5249_v27  ;;  %v548_v28 = vsub.f32 %v508_v19, %v532_v4  ;;  %v636_v29 = vadd.f32 %v620_v20, %v604_v24  ;;  %v533_v62 = vmul.f32 %v5119_v49, %v481_v11  ;;  %v605_v30 = vmul.f32 %v5116_v48, %v481_v11 }
 0x171   :  { %v482_v33 = vmul.f32 %v5096_v41, %v5249_v27  ;;  %v5265_v20 = vmul.f32 %v5116_v48, %v473_v15 }
 0x172   :  { %v572_v47 = vadd.f32 %v5124_v51, %v548_v28  ;;  %v660_v4 = vadd.f32 %v5128_v53, %v636_v29  ;;  %v549_v24 = vsub.f32 %v509_v21, %v533_v62  ;;  %v637_v19 = vadd.f32 %v621_v22, %v605_v30 }
 0x173   :  { %7345 = vst [vmem:[#allocation46_spill] sm:$0xff] %v5265_v20  ;;  %v534_v11 = vmul.f32 %v5107_v45, %v482_v33  ;;  %v606_v36 = vmul.f32 %v5104_v44, %v482_v33  ;;  %v5278_v30 = vmul.f32 %v5119_v49, %v473_v15  ;;  %v5281_v21 = vmul.f32 %v5104_v44, %v474_v35 }
 0x174   :  { %v5271_v42 = vmax.f32 %v572_v47, 0.0  ;;  %v5273_v31 = vmax.f32 %v660_v4, 0.0  ;;  %v573_v28 = vadd.f32 %v5137_v56, %v549_v24  ;;  %v661_v29 = vadd.f32 %v5148_v2, %v637_v19 }
 0x175   :  { %7347 = vst [vmem:[#allocation48_spill] sm:$0xff] %v5278_v30  ;;  %7348 = vst [vmem:[#allocation49_spill] sm:$0xff] %v5281_v21  ;;  %v550_v22 = vsub.f32 %v510_v23, %v534_v11  ;;  %v638_v62 = vadd.f32 %v622_v34, %v606_v36  ;;  %v5287_v33 = vmul.f32 %v5116_v48, %v475_v32 }
 0x176   :  { %7346 = vst [vmem:[#allocation47_spill] sm:$0xff] %v5271_v42  ;;  %v477_v47 = vmul.f32 %v5110_v46, %v5139_v57  ;;  %v892_v4 = vmul.f32 %v5131_v54, %v5271_v42  ;;  %v5294_v15 = vmul.f32 %v5119_v49, %v475_v32  ;;  %v916_v24 = vmul.f32 %v5134_v55, %v5273_v31  ;;  %v5310_v32 = vpop.f32.mrf.mxu0 }
 0x177   :  { %7350 = vst [vmem:[#allocation51_spill] sm:$0xff] %v5287_v33  ;;  %v988_v36 = vmul.f32 %v5131_v54, %v5273_v31  ;;  %v1004_v23 = vmul.f32 %v5134_v55, %v5271_v42  ;;  %v5303_v34 = vmul.f32 %v5104_v44, %v476_v37  ;;  %v5305_v35 = vmax.f32 %v573_v28, 0.0  ;;  %7354 = vst [vmem:[#allocation55_spill] sm:$0xff] %v5310_v32 }
 0x178   :  { %7351 = vst [vmem:[#allocation52_spill] sm:$0xff] %v5294_v15  ;;  %v5307_v19 = vmax.f32 %v661_v29, 0.0  ;;  %v574_v11 = vadd.f32 %v5124_v51, %v550_v22  ;;  %v5313_v57 = vmul.f32 %v5107_v45, %v476_v37  ;;  %v932_v15 = vsub.f32 %v892_v4, %v916_v24 }
 0x179   :  { %7352 = vst [vmem:[#allocation53_spill] sm:$0xff] %v5303_v34  ;;  %7353 = vst [vmem:[#allocation54_spill] sm:$0xff] %v5305_v35  ;;  %v1020_v33 = vadd.f32 %v1004_v23, %v988_v36  ;;  %v662_v50 = vadd.f32 %v5128_v53, %v638_v62  ;;  %v5317_v42 = vmul.f32 %v5116_v48, %v477_v47  ;;  %vm820_vm1 = vcmp.lt.f32.partialorder %v5273_v31, -0.01 }
 0x17a   :  { %7355 = vst [vmem:[#allocation56_spill] sm:$0xff] %v5313_v57  ;;  %v5320_v34 = vmul.f32 %v5119_v49, %v477_v47  ;;  %v478_v28 = vmul.f32 %v5096_v41, %v5165_v6  ;;  %v479_v29 = vmul.f32 %v5110_v46, %v5188_v16  ;;  %v956_v22 = vadd.f32 %v5142_v58, %v932_v15 }
 0x17b   :  { %7356 = vst [vmem:[#allocation57_spill] sm:$0xff] %v5317_v42  ;;  %v1044_v37 = vadd.f32 %v5145_v59, %v1020_v33  ;;  %v893_v4 = vmul.f32 %v5151_v60, %v5305_v35  ;;  %v483_v62 = vmul.f32 %v5110_v46, %v5310_v32  ;;  %v917_v47 = vmul.f32 %v5161_v0, %v5307_v19 }
 0x17c   :  { %7357 = vst [vmem:[#allocation58_spill] sm:$0xff] %v5320_v34  ;;  %v989_v24 = vmul.f32 %v5151_v60, %v5307_v19  ;;  %v1005_v36 = vmul.f32 %v5161_v0, %v5305_v35  ;;  %v5338_v23 = vmax.f32 %v574_v11, 0.0  ;;  %v836_v15 = vadd.f32 0.01, %v5273_v31 }
 0x17d   :  { %v5341_v33 = vmax.f32 %v956_v22, 0.0  ;;  %v5343_v6 = vmax.f32 %v1044_v37, 0.0  ;;  %v5345_v16 = vmax.f32 %v662_v50, 0.0  ;;  %v5348_v34 = vmul.f32 %v5104_v44, %v478_v28 }
 0x17e   :  { %7358 = vst [vmem:[#allocation59_spill] sm:$0xff] %v5338_v23  ;;  %v933_v42 = vsub.f32 %v893_v4, %v917_v47  ;;  %v1021_v57 = vadd.f32 %v1005_v36, %v989_v24  ;;  %v5352_v21 = vmul.f32 %v5107_v45, %v478_v28  ;;  %v894_v22 = vmul.f32 %v5131_v54, %v5338_v23 }
 0x17f   :  { %7359 = vst [vmem:[#allocation60_spill] sm:$0xff] %v5341_v33  ;;  %7360 = vst [vmem:[#allocation61_spill] sm:$0xff] %v5343_v6  ;;  %v1404_v11 = vmul.f32 %v5158_v63, %v5343_v6  ;;  %v535_v37 = vmul.f32 %v5119_v49, %v483_v62  ;;  %v4234_v50 = vadd.f32 -0.01, %v5273_v31  ;;  %v1420_v35 = vmul.f32 %v5167_v7, %v5341_v33 }
 0x180   :  { %7361 = vst [vmem:[#allocation62_spill] sm:$0xff] %v5348_v34  ;;  %7362 = vst [vmem:[#allocation63_spill] sm:$0xff] %v5352_v21  ;;  %v957_v34 = vadd.f32 %v5170_v10, %v933_v42  ;;  %v1045_v4 = vadd.f32 %v5173_v8, %v1021_v57  ;;  %v5365_v28 = vmul.f32 %v5116_v48, %v479_v29  ;;  %v852_v24 = vsel %vm820_vm1, %v836_v15, 0.0 }
 0x181   :  { %v5368_v47 = vmul.f32 %v5119_v49, %v479_v29  ;;  %v918_v36 = vmul.f32 %v5134_v55, %v5345_v16  ;;  %v1436_v21 = vadd.f32 %v1420_v35, %v1404_v11  ;;  %v607_v33 = vmul.f32 %v5116_v48, %v483_v62 }
 0x182   :  { %7363 = vst [vmem:[#allocation64_spill] sm:$0xff] %v5365_v28  ;;  %v5372_v30 = vmax.f32 %v957_v34, 0.0  ;;  %v5374_v20 = vmax.f32 %v1045_v4, 0.0  ;;  %vm788_vm2 = vcmp.gt.f32.partialorder %v5273_v31, 0.01  ;;  %v551_v28 = vsub.f32 %v5207_v43, %v535_v37 }
 0x183   :  { %7364 = vst [vmem:[#allocation65_spill] sm:$0xff] %v5368_v47  ;;  %v1236_v42 = vadd.f32 0.01, %v5343_v6  ;;  %v934_v57 = vsub.f32 %v894_v22, %v918_v36  ;;  %v868_v29 = vsel %vm788_vm2, %v4234_v50, %v852_v24  ;;  %vm1220_vm3 = vcmp.lt.f32.partialorder %v5343_v6, -0.01 }
 0x184   :  { %7365 = vst [vmem:[#allocation66_spill] sm:$0xff] %v5372_v30  ;;  %7366 = vst [vmem:[#allocation67_spill] sm:$0xff] %v5374_v20  ;;  %v1460_v15 = vadd.f32 %v5179_v12, %v1436_v21  ;;  %v837_v35 = vadd.f32 0.01, %v5307_v19  ;;  %vm789_vm4 = vcmp.gt.f32.partialorder %v5307_v19, 0.01  ;;  %v1405_v34 = vmul.f32 %v5182_v13, %v5374_v20 }
 0x185   :  { %vm821_vm5 = vcmp.lt.f32.partialorder %v5307_v19, -0.01  ;;  %v1421_v31 = vmul.f32 %v5190_v17, %v5372_v30  ;;  %v4266_v62 = vadd.f32 -0.01, %v5343_v6  ;;  %v958_v43 = vadd.f32 %v5142_v58, %v934_v57 }
 0x186   :  { %v990_v11 = vmul.f32 %v5131_v54, %v5345_v16  ;;  %v1006_v21 = vmul.f32 %v5134_v55, %v5338_v23  ;;  %v1252_v22 = vsel %vm1220_vm3, %v1236_v42, 0.0  ;;  %v4235_v37 = vadd.f32 -0.01, %v5307_v19  ;;  %v5403_v42 = vpop.f32.mrf.mxu0 }
 0x187   :  { %v1437_v50 = vadd.f32 %v1421_v31, %v1405_v34  ;;  %v838_v4 = vadd.f32 0.01, %v5345_v16  ;;  %vm1188_vm6 = vcmp.gt.f32.partialorder %v5343_v6, 0.01  ;;  %v1476_v24 = vmax.f32 %v1460_v15, 0.0  ;;  %7367 = vst [vmem:[#allocation68_spill] sm:$0xff] %v5403_v42 }
 0x188   :  { %v853_v36 = vsel %vm821_vm5, %v837_v35, 0.0  ;;  %vm822_vm7 = vcmp.lt.f32.partialorder %v5345_v16, -0.01  ;;  %vm790_vm8 = vcmp.gt.f32.partialorder %v5345_v16, 0.01  ;;  %v575_v23 = vadd.f32 %v5137_v56, %v551_v28 }
 0x189   :  { %v1461_v57 = vadd.f32 %v5192_v18, %v1437_v50  ;;  %v4236_v30 = vadd.f32 -0.01, %v5345_v16  ;;  %v1268_v47 = vsel %vm1188_vm6, %v4266_v62, %v1252_v22  ;;  %v5405_v34 = vmax.f32 %v958_v43, 0.0  ;;  %v5424_v22 = vpop.f32.mrf.mxu0 }
 0x18a   :  { %v1022_v31 = vadd.f32 %v1006_v21, %v990_v11  ;;  %v639_v6 = vadd.f32 %v5210_v52, %v607_v33  ;;  %v869_v15 = vsel %vm789_vm4, %v4235_v37, %v853_v36  ;;  %vm1221_vm9 = vcmp.lt.f32.partialorder %v5374_v20, -0.01  ;;  %7371 = vst [vmem:[#allocation72_spill] sm:$0xff] %v5424_v22 }
 0x18b   :  { %7368 = vst [vmem:[#allocation69_spill] sm:$0xff] %v5405_v34  ;;  %v1237_v35 = vadd.f32 0.01, %v5374_v20  ;;  %v854_v50 = vsel %vm822_vm7, %v838_v4, 0.0  ;;  %v1668_v26 = vadd.f32 0.01, %v1476_v24  ;;  %v484_v62 = vmul.f32 %v5096_v41, %v5403_v42 }
 0x18c   :  { %v1046_v14 = vadd.f32 %v5145_v59, %v1022_v31  ;;  %v663_v28 = vadd.f32 %v5148_v2, %v639_v6  ;;  %v1284_v43 = vadd.f32 %v1268_v47, %v868_v29  ;;  %vm1652_vm10 = vcmp.lt.f32.partialorder %v1476_v24, -0.01 }
 0x18d   :  { %v1477_v11 = vmax.f32 %v1461_v57, 0.0  ;;  %v5416_v52 = vmax.f32 %v575_v23, 0.0  ;;  %vm1189_vm11 = vcmp.gt.f32.partialorder %v5374_v20, 0.01  ;;  %v4267_v19 = vadd.f32 -0.01, %v5374_v20 }
 0x18e   :  { %v5420_v33 = vmax.f32 %v1046_v14, 0.0  ;;  %v1422_v21 = vmul.f32 %v5167_v7, %v5405_v34  ;;  %v4298_v6 = vadd.f32 -0.01, %v1476_v24  ;;  %v1253_v37 = vsel %vm1221_vm9, %v1237_v35, 0.0 }
 0x18f   :  { %7369 = vst [vmem:[#allocation70_spill] sm:$0xff] %v5416_v52  ;;  %v870_v47 = vsel %vm790_vm8, %v4236_v30, %v854_v50  ;;  %v5430_v23 = vmax.f32 %v663_v28, 0.0  ;;  %vm1620_vm12 = vcmp.gt.f32.partialorder %v1476_v24, 0.01  ;;  %v1684_v29 = vsel %vm1652_vm10, %v1668_v26, 0.0 }
 0x190   :  { %7370 = vst [vmem:[#allocation71_spill] sm:$0xff] %v5420_v33  ;;  %v1406_v14 = vmul.f32 %v5158_v63, %v5420_v33  ;;  %v536_v4 = vmul.f32 %v5107_v45, %v484_v62  ;;  %v1669_v36 = vadd.f32 0.01, %v1477_v11  ;;  %v895_v57 = vmul.f32 %v5151_v60, %v5416_v52 }
 0x191   :  { %v1007_v31 = vmul.f32 %v5161_v0, %v5416_v52  ;;  %v485_v16 = vmul.f32 %v5110_v46, %v5424_v22  ;;  %v1269_v30 = vsel %vm1189_vm11, %v4267_v19, %v1253_v37  ;;  %vm1653_vm13 = vcmp.lt.f32.partialorder %v1477_v11, -0.01 }
 0x192   :  { %v1438_v26 = vadd.f32 %v1422_v21, %v1406_v14  ;;  %v608_v24 = vmul.f32 %v5104_v44, %v484_v62  ;;  %v1700_v35 = vsel %vm1620_vm12, %v4298_v6, %v1684_v29  ;;  %v1238_v50 = vadd.f32 0.01, %v5420_v33 }
 0x193   :  { %v919_v28 = vmul.f32 %v5161_v0, %v5430_v23  ;;  %v991_v34 = vmul.f32 %v5151_v60, %v5430_v23  ;;  %v4299_v52 = vadd.f32 -0.01, %v1477_v11  ;;  %vm1222_vm14 = vcmp.lt.f32.partialorder %v5420_v33, -0.01 }
 0x194   :  { %v1462_v22 = vadd.f32 %v5179_v12, %v1438_v26  ;;  %v552_v19 = vsub.f32 %v5213_v61, %v536_v4  ;;  %v1685_v37 = vsel %vm1653_vm13, %v1669_v36, 0.0  ;;  %v537_v62 = vmul.f32 %v5119_v49, %v485_v16 }
 0x195   :  { %v935_v21 = vsub.f32 %v895_v57, %v919_v28  ;;  %v1023_v14 = vadd.f32 %v1007_v31, %v991_v34  ;;  %v1716_v6 = vadd.f32 %v1700_v35, %v1284_v43  ;;  %v4268_v29 = vadd.f32 -0.01, %v5420_v33 }
 0x196   :  { %v576_v20 = vadd.f32 %v5124_v51, %v552_v19  ;;  %v640_v42 = vadd.f32 %v5218_v5, %v608_v24  ;;  %vm1621_vm15 = vcmp.gt.f32.partialorder %v1477_v11, 0.01  ;;  %v1254_v25 = vsel %vm1222_vm14, %v1238_v50, 0.0 }
 0x197   :  { %v959_v32 = vadd.f32 %v5170_v10, %v935_v21  ;;  %v1047_v26 = vadd.f32 %v5173_v8, %v1023_v14  ;;  %v1701_v27 = vsel %vm1621_vm15, %v4299_v52, %v1685_v37  ;;  %vm1190_vm1 = vcmp.gt.f32.partialorder %v5420_v33, 0.01 }
 0x198   :  { %v1478_v61 = vmax.f32 %v1462_v22, 0.0  ;;  %v664_v34 = vadd.f32 %v5128_v53, %v640_v42  ;;  %v553_v36 = vsub.f32 %v5221_v1, %v537_v62  ;;  %v609_v5 = vmul.f32 %v5116_v48, %v485_v16 }
 0x199   :  { %v5460_v4 = vmax.f32 %v959_v32, 0.0  ;;  %v5462_v43 = vmax.f32 %v1047_v26, 0.0  ;;  %v1285_v11 = vadd.f32 %v1269_v30, %v869_v15  ;;  %v1270_v57 = vsel %vm1190_vm1, %v4268_v29, %v1254_v25  ;;  %v5482_v30 = vpop.f32.mrf.mxu0 }
 0x19a   :  { %v839_v31 = vadd.f32 0.01, %v5430_v23  ;;  %v5467_v24 = vmax.f32 %v576_v20, 0.0  ;;  %v5470_v52 = vadd.f32 %v1716_v6, %v5204_v38  ;;  %vm823_vm2 = vcmp.lt.f32.partialorder %v5430_v23, -0.01 }
 0x19b   :  { %7372 = vst [vmem:[#allocation73_spill] sm:$0xff] %v5460_v4  ;;  %7373 = vst [vmem:[#allocation74_spill] sm:$0xff] %v5462_v43  ;;  %v1407_v32 = vmul.f32 %v5182_v13, %v5462_v43  ;;  %v5475_v42 = vmax.f32 %v664_v34, 0.0  ;;  %v1717_v22 = vadd.f32 %v1701_v27, %v1285_v11  ;;  %v1670_v1 = vadd.f32 0.01, %v1478_v61 }
 0x19c   :  { %7374 = vst [vmem:[#allocation75_spill] sm:$0xff] %v5467_v24  ;;  %7375 = vst [vmem:[#allocation76_spill] sm:$0xff] %v5470_v52  ;;  %v4237_v16 = vadd.f32 -0.01, %v5430_v23  ;;  %v1423_v25 = vmul.f32 %v5190_v17, %v5460_v4  ;;  %v1286_v15 = vadd.f32 %v1270_v57, %v870_v47  ;;  %vm1654_vm3 = vcmp.lt.f32.partialorder %v1478_v61, -0.01 }
 0x19d   :  { %v577_v20 = vadd.f32 %v5137_v56, %v553_v36  ;;  %v641_v38 = vadd.f32 %v5224_v40, %v609_v5  ;;  %v855_v35 = vsel %vm823_vm2, %v839_v31, 0.0  ;;  %v1239_v50 = vadd.f32 0.01, %v5462_v43 }
 0x19e   :  { %v1439_v28 = vadd.f32 %v1423_v25, %v1407_v32  ;;  %v896_v27 = vmul.f32 %v5131_v54, %v5467_v24  ;;  %v4300_v19 = vadd.f32 -0.01, %v1478_v61  ;;  %vm791_vm4 = vcmp.gt.f32.partialorder %v5430_v23, 0.01 }
 0x19f   :  { %vm1223_vm5 = vcmp.lt.f32.partialorder %v5462_v43, -0.01  ;;  %v920_v47 = vmul.f32 %v5134_v55, %v5475_v42  ;;  %v992_v40 = vmul.f32 %v5131_v54, %v5475_v42  ;;  %v1686_v37 = vsel %vm1654_vm3, %v1670_v1, 0.0 }
 0x1a0   :  { %v1463_v21 = vadd.f32 %v5192_v18, %v1439_v28  ;;  %v1008_v14 = vmul.f32 %v5134_v55, %v5467_v24  ;;  %v486_v62 = vmul.f32 %v5096_v41, %v5482_v30  ;;  %v4269_v6 = vadd.f32 -0.01, %v5462_v43 }
 0x1a1   :  { %v936_v29 = vsub.f32 %v896_v27, %v920_v47  ;;  %v5499_v26 = vmax.f32 %v577_v20, 0.0  ;;  %v665_v34 = vadd.f32 %v5148_v2, %v641_v38  ;;  %vm1622_vm6 = vcmp.gt.f32.partialorder %v1478_v61, 0.01 }
 0x1a2   :  { %v1255_v36 = vsel %vm1223_vm5, %v1239_v50, 0.0  ;;  %v1479_v5 = vmax.f32 %v1463_v21, 0.0  ;;  %v1024_v11 = vadd.f32 %v1008_v14, %v992_v40  ;;  %vm1191_vm7 = vcmp.gt.f32.partialorder %v5462_v43, 0.01 }
 0x1a3   :  { %7376 = vst [vmem:[#allocation77_spill] sm:$0xff] %v5499_v26  ;;  %v960_v57 = vadd.f32 %v5142_v58, %v936_v29  ;;  %v5504_v31 = vmax.f32 %v665_v34, 0.0  ;;  %v897_v32 = vmul.f32 %v5151_v60, %v5499_v26  ;;  %v1702_v1 = vsel %vm1622_vm6, %v4300_v19, %v1686_v37 }
 0x1a4   :  { %vm824_vm8 = vcmp.lt.f32.partialorder %v5475_v42, -0.01  ;;  %v840_v25 = vadd.f32 0.01, %v5475_v42  ;;  %v1048_v20 = vadd.f32 %v5145_v59, %v1024_v11  ;;  %v1271_v61 = vsel %vm1191_vm7, %v4269_v6, %v1255_v36 }
 0x1a5   :  { %v5511_v38 = vmax.f32 %v960_v57, 0.0  ;;  %v921_v50 = vmul.f32 %v5161_v0, %v5504_v31  ;;  %v538_v28 = vmul.f32 %v5107_v45, %v486_v62  ;;  %v1671_v27 = vadd.f32 0.01, %v1479_v5 }
 0x1a6   :  { %v5516_v47 = vmax.f32 %v1048_v20, 0.0  ;;  %v993_v19 = vmul.f32 %v5151_v60, %v5504_v31  ;;  %v1009_v40 = vmul.f32 %v5161_v0, %v5499_v26  ;;  %vm1655_vm9 = vcmp.lt.f32.partialorder %v1479_v5, -0.01 }
 0x1a7   :  { %7377 = vst [vmem:[#allocation78_spill] sm:$0xff] %v5511_v38  ;;  %v1424_v37 = vmul.f32 %v5167_v7, %v5511_v38  ;;  %v937_v21 = vsub.f32 %v897_v32, %v921_v50  ;;  %v610_v14 = vmul.f32 %v5104_v44, %v486_v62  ;;  %v5526_v6 = vadd.f32 %v1717_v22, %v5229_v9 }
 0x1a8   :  { %7378 = vst [vmem:[#allocation79_spill] sm:$0xff] %v5516_v47  ;;  %v1718_v29 = vadd.f32 %v1702_v1, %v1286_v15  ;;  %v871_v34 = vsel %vm791_vm4, %v4237_v16, %v855_v35  ;;  %v4238_v36 = vadd.f32 -0.01, %v5475_v42  ;;  %v4301_v57 = vadd.f32 -0.01, %v1479_v5 }
 0x1a9   :  { %7379 = vst [vmem:[#allocation80_spill] sm:$0xff] %v5526_v6  ;;  %v1287_v11 = vadd.f32 %v1271_v61, %v871_v34  ;;  %v856_v20 = vsel %vm824_vm8, %v840_v25, 0.0  ;;  %v1408_v33 = vmul.f32 %v5158_v63, %v5516_v47  ;;  %v1687_v32 = vsel %vm1655_vm9, %v1671_v27, 0.0  ;;  %v5544_v25 = vpop.f32.mrf.mxu0 }
 0x1aa   :  { %v961_v62 = vadd.f32 %v5170_v10, %v937_v21  ;;  %v1025_v50 = vadd.f32 %v1009_v40, %v993_v19  ;;  %v554_v9 = vsub.f32 %v5227_v3, %v538_v28  ;;  %vm1623_vm10 = vcmp.gt.f32.partialorder %v1479_v5, 0.01 }
 0x1ab   :  { %v1440_v22 = vadd.f32 %v1424_v37, %v1408_v33  ;;  %vm825_vm11 = vcmp.lt.f32.partialorder %v5504_v31, -0.01  ;;  %v642_v23 = vadd.f32 %v5232_v39, %v610_v14  ;;  %v841_v16 = vadd.f32 0.01, %v5504_v31 }
 0x1ac   :  { %v5540_v15 = vmax.f32 %v961_v62, 0.0  ;;  %v1049_v35 = vadd.f32 %v5173_v8, %v1025_v50  ;;  %v578_v1 = vadd.f32 %v5124_v51, %v554_v9  ;;  %v1703_v61 = vsel %vm1623_vm10, %v4301_v57, %v1687_v32  ;;  %v7383_v32 = vld [vmem:[#allocation44_spill] sm:$0xff] }
 0x1ad   :  { %vm1224_vm12 = vcmp.lt.f32.partialorder %v5516_v47, -0.01  ;;  %v1240_v3 = vadd.f32 0.01, %v5516_v47  ;;  %v666_v33 = vadd.f32 %v5128_v53, %v642_v23  ;;  %v1464_v5 = vadd.f32 %v5179_v12, %v1440_v22 }
 0x1ae   :  { %7380 = vst [vmem:[#allocation81_spill] sm:$0xff] %v5540_v15  ;;  %v5550_v39 = vmax.f32 %v1049_v35, 0.0  ;;  %v1425_v28 = vmul.f32 %v5190_v17, %v5540_v15  ;;  %v5554_v27 = vmax.f32 %v578_v1, 0.0  ;;  %vm792_vm13 = vcmp.gt.f32.partialorder %v5475_v42, 0.01  ;;  %v7385_v35 = vld [vmem:[#allocation55_spill] sm:$0xff] }
 0x1af   :  { %v4239_v19 = vadd.f32 -0.01, %v5504_v31  ;;  %v5558_v40 = vmax.f32 %v666_v33, 0.0  ;;  %v487_v37 = vmul.f32 %v5110_v46, %v5544_v25  ;;  %v1719_v21 = vadd.f32 %v1703_v61, %v1287_v11 }
 0x1b0   :  { %7381 = vst [vmem:[#allocation82_spill] sm:$0xff] %v5550_v39  ;;  %7382 = vst [vmem:[#allocation83_spill] sm:$0xff] %v5554_v27  ;;  %v4270_v14 = vadd.f32 -0.01, %v5516_v47  ;;  %v857_v34 = vsel %vm825_vm11, %v841_v16, 0.0  ;;  %v1409_v57 = vmul.f32 %v5182_v13, %v5550_v39  ;;  %v5568_v62 = vadd.f32 %v1718_v29, %v7383_v32 }
 0x1b1   :  { %v872_v42 = vsel %vm792_vm13, %v4238_v36, %v856_v20  ;;  %v1256_v50 = vsel %vm1224_vm12, %v1240_v3, 0.0  ;;  %v898_v9 = vmul.f32 %v5131_v54, %v5554_v27  ;;  %vm1192_vm14 = vcmp.gt.f32.partialorder %v5516_v47, 0.01  ;;  %v5580_v20 = vpop.f32.mrf.mxu0 }
 0x1b2   :  { %7384 = vst [vmem:[#allocation44_spill] sm:$0xff] %v5568_v62  ;;  %v1480_v11 = vmax.f32 %v1464_v5, 0.0  ;;  %vm793_vm15 = vcmp.gt.f32.partialorder %v5504_v31, 0.01  ;;  %v1441_v22 = vadd.f32 %v1425_v28, %v1409_v57  ;;  %v922_v16 = vmul.f32 %v5134_v55, %v5558_v40  ;;  %v7387_v57 = vld [vmem:[#allocation41_spill] sm:$0xff] }
 0x1b3   :  { %v873_v23 = vsel %vm793_vm15, %v4239_v19, %v857_v34  ;;  %v539_v29 = vmul.f32 %v5119_v49, %v487_v37  ;;  %v611_v36 = vmul.f32 %v5116_v48, %v487_v37  ;;  %v5583_v1 = vadd.f32 %v1719_v21, %v7385_v35 }
 0x1b4   :  { %v1272_v61 = vsel %vm1192_vm14, %v4270_v14, %v1256_v50  ;;  %vm1193_vm1 = vcmp.gt.f32.partialorder %v5550_v39, 0.01  ;;  %v1465_v3 = vadd.f32 %v5192_v18, %v1441_v22  ;;  %v4271_v31 = vadd.f32 -0.01, %v5550_v39  ;;  %v7388_v50 = vld [vmem:[#allocation42_spill] sm:$0xff] }
 0x1b5   :  { %7386 = vst [vmem:[#allocation55_spill] sm:$0xff] %v5583_v1  ;;  %v1241_v33 = vadd.f32 0.01, %v5550_v39  ;;  %v938_v5 = vsub.f32 %v898_v9, %v922_v16  ;;  %v994_v28 = vmul.f32 %v5131_v54, %v5558_v40  ;;  %v4302_v19 = vadd.f32 -0.01, %v1480_v11 }
 0x1b6   :  { %vm1225_vm2 = vcmp.lt.f32.partialorder %v5550_v39, -0.01  ;;  %v1481_v37 = vmax.f32 %v1465_v3, 0.0  ;;  %v488_v21 = vmul.f32 %v5096_v41, %v5580_v20  ;;  %v1010_v34 = vmul.f32 %v5134_v55, %v5554_v27 }
 0x1b7   :  { %v962_v14 = vadd.f32 %v5142_v58, %v938_v5  ;;  %v555_v32 = vsub.f32 %v7387_v57, %v539_v29  ;;  %v643_v22 = vadd.f32 %v7388_v50, %v611_v36  ;;  %v1288_v9 = vadd.f32 %v1272_v61, %v872_v42  ;;  %v7392_v50 = vld [vmem:[#allocation43_spill] sm:$0xff] }
 0x1b8   :  { %vm1656_vm3 = vcmp.lt.f32.partialorder %v1480_v11, -0.01  ;;  %v1672_v16 = vadd.f32 0.01, %v1480_v11  ;;  %vm826_vm4 = vcmp.lt.f32.partialorder %v5558_v40, -0.01  ;;  %v1026_v3 = vadd.f32 %v1010_v34, %v994_v28 }
 0x1b9   :  { %v1257_v35 = vsel %vm1225_vm2, %v1241_v33, 0.0  ;;  %v1673_v43 = vadd.f32 0.01, %v1481_v37  ;;  %v579_v4 = vadd.f32 %v5137_v56, %v555_v32  ;;  %v5601_v47 = vmax.f32 %v962_v14, 0.0 }
 0x1ba   :  { %v667_v5 = vadd.f32 %v5148_v2, %v643_v22  ;;  %v540_v38 = vmul.f32 %v5107_v45, %v488_v21  ;;  %v612_v29 = vmul.f32 %v5104_v44, %v488_v21  ;;  %vm1657_vm5 = vcmp.lt.f32.partialorder %v1481_v37, -0.01  ;;  %v7393_v22 = vld [vmem:[#allocation45_spill] sm:$0xff] }
 0x1bb   :  { %7389 = vst [vmem:[#allocation41_spill] sm:$0xff] %v5601_v47  ;;  %v842_v42 = vadd.f32 0.01, %v5558_v40  ;;  %v1050_v36 = vadd.f32 %v5145_v59, %v1026_v3  ;;  %v5608_v61 = vmax.f32 %v579_v4, 0.0  ;;  %v1688_v33 = vsel %vm1656_vm3, %v1672_v16, 0.0 }
 0x1bc   :  { %v1273_v28 = vsel %vm1193_vm1, %v4271_v31, %v1257_v35  ;;  %v4303_v34 = vadd.f32 -0.01, %v1481_v37  ;;  %v683_v14 = vmax.f32 %v667_v5, 0.0  ;;  %v556_v21 = vsub.f32 %v7392_v50, %v540_v38 }
 0x1bd   :  { %7390 = vst [vmem:[#allocation42_spill] sm:$0xff] %v5608_v61  ;;  %v5612_v57 = vmax.f32 %v1050_v36, 0.0  ;;  %v899_v32 = vmul.f32 %v5151_v60, %v5608_v61  ;;  %v644_v24 = vadd.f32 %v7393_v22, %v612_v29  ;;  %vm1624_vm6 = vcmp.gt.f32.partialorder %v1480_v11, 0.01  ;;  %v5626_v36 = vpop.f32.mrf.mxu0 }
 0x1be   :  { %v1689_v26 = vsel %vm1657_vm5, %v1673_v43, 0.0  ;;  %v1426_v4 = vmul.f32 %v5167_v7, %v5601_v47  ;;  %v923_v16 = vmul.f32 %v5161_v0, %v683_v14  ;;  %v1704_v3 = vsel %vm1624_vm6, %v4302_v19, %v1688_v33 }
 0x1bf   :  { %7391 = vst [vmem:[#allocation84_spill] sm:$0xff] %v5612_v57  ;;  %v4240_v31 = vadd.f32 -0.01, %v5558_v40  ;;  %v858_v35 = vsel %vm826_vm4, %v842_v42, 0.0  ;;  %v1011_v5 = vmul.f32 %v5161_v0, %v5608_v61  ;;  %v1289_v38 = vadd.f32 %v1273_v28, %v873_v23 }
 0x1c0   :  { %vm1625_vm7 = vcmp.gt.f32.partialorder %v1481_v37, 0.01  ;;  %v1410_v43 = vmul.f32 %v5158_v63, %v5612_v57  ;;  %v939_v11 = vsub.f32 %v899_v32, %v923_v16  ;;  %v995_v50 = vmul.f32 %v5151_v60, %v683_v14 }
 0x1c1   :  { %v1705_v29 = vsel %vm1625_vm7, %v4303_v34, %v1689_v26  ;;  %v580_v19 = vadd.f32 %v5124_v51, %v556_v21  ;;  %v668_v33 = vadd.f32 %v5128_v53, %v644_v24  ;;  %v1242_v42 = vadd.f32 0.01, %v5612_v57 }
 0x1c2   :  { %v1442_v22 = vadd.f32 %v1426_v4, %v1410_v43  ;;  %v963_v39 = vadd.f32 %v5170_v10, %v939_v11  ;;  %v489_v23 = vmul.f32 %v5110_v46, %v5626_v36  ;;  %v1720_v37 = vadd.f32 %v1704_v3, %v1288_v9 }
 0x1c3   :  { %vm1226_vm8 = vcmp.lt.f32.partialorder %v5612_v57, -0.01  ;;  %v1027_v28 = vadd.f32 %v1011_v5, %v995_v50  ;;  %v5638_v32 = vmax.f32 %v580_v19, 0.0  ;;  %v1721_v26 = vadd.f32 %v1705_v29, %v1289_v38 }
 0x1c4   :  { %v843_v34 = vadd.f32 0.01, %v683_v14  ;;  %v5640_v16 = vmax.f32 %v963_v39, 0.0  ;;  %v5642_v21 = vmax.f32 %v668_v33, 0.0  ;;  %v4272_v24 = vadd.f32 -0.01, %v5612_v57 }
 0x1c5   :  { %7394 = vst [vmem:[#allocation43_spill] sm:$0xff] %v5638_v32  ;;  %v4241_v4 = vadd.f32 -0.01, %v683_v14  ;;  %vm827_vm9 = vcmp.lt.f32.partialorder %v683_v14, -0.01  ;;  %v1051_v43 = vadd.f32 %v5173_v8, %v1027_v28  ;;  %v1258_v11 = vsel %vm1226_vm8, %v1242_v42, 0.0 }
 0x1c6   :  { %7395 = vst [vmem:[#allocation45_spill] sm:$0xff] %v5640_v16  ;;  %v1466_v9 = vadd.f32 %v5179_v12, %v1442_v22  ;;  %v900_v3 = vmul.f32 %v5131_v54, %v5638_v32  ;;  %v541_v5 = vmul.f32 %v5119_v49, %v489_v23  ;;  %v1427_v39 = vmul.f32 %v5190_v17, %v5640_v16  ;;  %v7397_v42 = vld [vmem:[#allocation68_spill] sm:$0xff]  ;;  %v7399_v16 = vld [vmem:[#allocation46_spill] sm:$0xff] }
 0x1c7   :  { %v5650_v38 = vmax.f32 %v1051_v43, 0.0  ;;  %v924_v29 = vmul.f32 %v5134_v55, %v5642_v21  ;;  %v1012_v50 = vmul.f32 %v5134_v55, %v5638_v32  ;;  %vm794_vm10 = vcmp.gt.f32.partialorder %v5558_v40, 0.01  ;;  %v7400_v40 = vld [vmem:[#allocation72_spill] sm:$0xff] }
 0x1c8   :  { %vm1194_vm11 = vcmp.gt.f32.partialorder %v5612_v57, 0.01  ;;  %v859_v19 = vsel %vm827_vm9, %v843_v34, 0.0  ;;  %v996_v33 = vmul.f32 %v5131_v54, %v5642_v21  ;;  %v5663_v22 = vadd.f32 %v1720_v37, %v7397_v42  ;;  %v5676_v37 = vpop.f32.mrf.mxu0 }
 0x1c9   :  { %7396 = vst [vmem:[#allocation85_spill] sm:$0xff] %v5650_v38  ;;  %v874_v28 = vsel %vm794_vm10, %v4240_v31, %v858_v35  ;;  %v1274_v43 = vsel %vm1194_vm11, %v4272_v24, %v1258_v11  ;;  %v1411_v15 = vmul.f32 %v5182_v13, %v5650_v38  ;;  %v1482_v47 = vmax.f32 %v1466_v9, 0.0 }
 0x1ca   :  { %7398 = vst [vmem:[#allocation68_spill] sm:$0xff] %v5663_v22  ;;  %vm795_vm12 = vcmp.gt.f32.partialorder %v683_v14, 0.01  ;;  %v940_v27 = vsub.f32 %v900_v3, %v924_v29  ;;  %v557_v61 = vsub.f32 %v7399_v16, %v541_v5  ;;  %v5669_v32 = vadd.f32 %v1721_v26, %v7400_v40 }
 0x1cb   :  { %v5671_v34 = vsel %vm795_vm12, %v4241_v4, %v859_v19  ;;  %v1443_v57 = vadd.f32 %v1427_v39, %v1411_v15  ;;  %v1028_v52 = vadd.f32 %v1012_v50, %v996_v33  ;;  %v1290_v6 = vadd.f32 %v1274_v43, %v874_v28  ;;  %v7403_v39 = vld [vmem:[#allocation48_spill] sm:$0xff] }
 0x1cc   :  { %vm796_vm13 = vcmp.gt.f32.partialorder %v5642_v21, 0.01  ;;  %v4242_v31 = vadd.f32 -0.01, %v5642_v21  ;;  %v964_v35 = vadd.f32 %v5142_v58, %v940_v27  ;;  %vm828_vm14 = vcmp.lt.f32.partialorder %v5642_v21, -0.01 }
 0x1cd   :  { %v1467_v14 = vadd.f32 %v5192_v18, %v1443_v57  ;;  %v844_v26 = vadd.f32 0.01, %v5642_v21  ;;  %v1052_v16 = vadd.f32 %v5145_v59, %v1028_v52  ;;  %vm1626_vm15 = vcmp.gt.f32.partialorder %v1482_v47, 0.01 }
 0x1ce   :  { %v4304_v15 = vadd.f32 -0.01, %v1482_v47  ;;  %v5682_v24 = vmax.f32 %v964_v35, 0.0  ;;  %v581_v4 = vadd.f32 %v5137_v56, %v557_v61  ;;  %v613_v11 = vmul.f32 %v5116_v48, %v489_v23 }
 0x1cf   :  { %v1674_v9 = vadd.f32 0.01, %v1482_v47  ;;  %v1483_v27 = vmax.f32 %v1467_v14, 0.0  ;;  %v5686_v3 = vmax.f32 %v1052_v16, 0.0  ;;  %v490_v57 = vmul.f32 %v5096_v41, %v5676_v37 }
 0x1d0   :  { %7401 = vst [vmem:[#allocation46_spill] sm:$0xff] %v5682_v24  ;;  %vm1658_vm1 = vcmp.lt.f32.partialorder %v1482_v47, -0.01  ;;  %v1243_v5 = vadd.f32 0.01, %v5650_v38  ;;  %v1428_v52 = vmul.f32 %v5167_v7, %v5682_v24  ;;  %v645_v29 = vadd.f32 %v7403_v39, %v613_v11  ;;  %v5709_v11 = vpop.f32.mrf.mxu0  ;;  %v7405_v24 = vld [vmem:[#allocation49_spill] sm:$0xff] }
 0x1d1   :  { %7402 = vst [vmem:[#allocation72_spill] sm:$0xff] %v5686_v3  ;;  %vm1195_vm2 = vcmp.gt.f32.partialorder %v5650_v38, 0.01  ;;  %vm1227_vm3 = vcmp.lt.f32.partialorder %v5650_v38, -0.01  ;;  %v860_v61 = vsel %vm828_vm14, %v844_v26, 0.0  ;;  %v1412_v23 = vmul.f32 %v5158_v63, %v5686_v3 }
 0x1d2   :  { %v4273_v50 = vadd.f32 -0.01, %v5650_v38  ;;  %v1675_v19 = vadd.f32 0.01, %v1483_v27  ;;  %v5701_v33 = vmax.f32 %v581_v4, 0.0  ;;  %v669_v42 = vadd.f32 %v5148_v2, %v645_v29 }
 0x1d3   :  { %v1690_v28 = vsel %vm1658_vm1, %v1674_v9, 0.0  ;;  %vm1659_vm4 = vcmp.lt.f32.partialorder %v1483_v27, -0.01  ;;  %v1444_v43 = vadd.f32 %v1428_v52, %v1412_v23  ;;  %v542_v40 = vmul.f32 %v5107_v45, %v490_v57 }
 0x1d4   :  { %7404 = vst [vmem:[#allocation48_spill] sm:$0xff] %v5701_v33  ;;  %v1259_v35 = vsel %vm1227_vm3, %v1243_v5, 0.0  ;;  %v4305_v14 = vadd.f32 -0.01, %v1483_v27  ;;  %v876_v26 = vsel %vm796_vm13, %v4242_v31, %v860_v61  ;;  %v5707_v16 = vmax.f32 %v669_v42, 0.0 }
 0x1d5   :  { %v1244_v39 = vadd.f32 0.01, %v5686_v3  ;;  %v1468_v4 = vadd.f32 %v5179_v12, %v1444_v43  ;;  %v558_v29 = vsub.f32 %v7405_v24, %v542_v40  ;;  %v614_v9 = vmul.f32 %v5104_v44, %v490_v57 }
 0x1d6   :  { %v1691_v52 = vsel %vm1659_vm4, %v1675_v19, 0.0  ;;  %vm1228_vm5 = vcmp.lt.f32.partialorder %v5686_v3, -0.01  ;;  %v901_v5 = vmul.f32 %v5151_v60, %v5701_v33  ;;  %v1013_v21 = vmul.f32 %v5161_v0, %v5701_v33 }
 0x1d7   :  { %v1706_v31 = vsel %vm1626_vm15, %v4304_v15, %v1690_v28  ;;  %v1275_v61 = vsel %vm1195_vm2, %v4273_v50, %v1259_v35  ;;  %vm1627_vm6 = vcmp.gt.f32.partialorder %v1483_v27, 0.01  ;;  %v491_v24 = vmul.f32 %v5110_v46, %v5709_v11  ;;  %v7406_v28 = vld [vmem:[#allocation50_spill] sm:$0xff] }
 0x1d8   :  { %v4274_v57 = vadd.f32 -0.01, %v5686_v3  ;;  %v925_v23 = vmul.f32 %v5161_v0, %v5707_v16  ;;  %v997_v19 = vmul.f32 %v5151_v60, %v5707_v16  ;;  %v582_v42 = vadd.f32 %v5124_v51, %v558_v29 }
 0x1d9   :  { %v1707_v43 = vsel %vm1627_vm6, %v4305_v14, %v1691_v52  ;;  %v1260_v47 = vsel %vm1228_vm5, %v1244_v39, 0.0  ;;  %v1484_v15 = vmax.f32 %v1468_v4, 0.0  ;;  %v646_v40 = vadd.f32 %v7406_v28, %v614_v9 }
 0x1da   :  { %v1722_v50 = vadd.f32 %v1706_v31, %v1290_v6  ;;  %v1291_v27 = vadd.f32 %v1275_v61, %v5671_v34  ;;  %v941_v35 = vsub.f32 %v901_v5, %v925_v23  ;;  %v1029_v38 = vadd.f32 %v1013_v21, %v997_v19  ;;  %v7410_v21 = vld [vmem:[#allocation51_spill] sm:$0xff] }
 0x1db   :  { %vm1196_vm7 = vcmp.gt.f32.partialorder %v5686_v3, 0.01  ;;  %v5734_v33 = vmax.f32 %v582_v42, 0.0  ;;  %v670_v62 = vadd.f32 %v5128_v53, %v646_v40  ;;  %v543_v1 = vmul.f32 %v5119_v49, %v491_v24 }
 0x1dc   :  { %v1723_v22 = vadd.f32 %v1707_v43, %v1291_v27  ;;  %v1276_v29 = vsel %vm1196_vm7, %v4274_v57, %v1260_v47  ;;  %v965_v14 = vadd.f32 %v5170_v10, %v941_v35  ;;  %v1053_v39 = vadd.f32 %v5173_v8, %v1029_v38 }
 0x1dd   :  { %7407 = vst [vmem:[#allocation49_spill] sm:$0xff] %v5734_v33  ;;  %vm1660_vm8 = vcmp.lt.f32.partialorder %v1484_v15, -0.01  ;;  %v1676_v6 = vadd.f32 0.01, %v1484_v15  ;;  %v5740_v4 = vmax.f32 %v670_v62, 0.0  ;;  %v615_v34 = vmul.f32 %v5116_v48, %v491_v24 }
 0x1de   :  { %v5743_v9 = vmax.f32 %v965_v14, 0.0  ;;  %v5745_v52 = vmax.f32 %v1053_v39, 0.0  ;;  %v902_v5 = vmul.f32 %v5131_v54, %v5734_v33  ;;  %v559_v31 = vsub.f32 %v7410_v21, %v543_v1  ;;  %v5761_v1 = vpop.f32.mrf.mxu0 }
 0x1df   :  { %v5751_v61 = vadd.f32 %v1722_v50, %v5482_v30  ;;  %v4243_v38 = vadd.f32 -0.01, %v5707_v16  ;;  %v845_v57 = vadd.f32 0.01, %v5707_v16  ;;  %v926_v62 = vmul.f32 %v5134_v55, %v5740_v4  ;;  %v7411_v50 = vld [vmem:[#allocation52_spill] sm:$0xff] }
 0x1e0   :  { %7408 = vst [vmem:[#allocation50_spill] sm:$0xff] %v5743_v9  ;;  %7409 = vst [vmem:[#allocation86_spill] sm:$0xff] %v5745_v52  ;;  %v1292_v24 = vadd.f32 %v1276_v29, %v876_v26  ;;  %v4306_v23 = vadd.f32 -0.01, %v1484_v15  ;;  %vm797_vm9 = vcmp.gt.f32.partialorder %v5707_v16, 0.01  ;;  %v1014_v19 = vmul.f32 %v5134_v55, %v5734_v33 }
 0x1e1   :  { %vm829_vm10 = vcmp.lt.f32.partialorder %v5707_v16, -0.01  ;;  %v5764_v30 = vadd.f32 %v1723_v22, %v5544_v25  ;;  %v1692_v42 = vsel %vm1660_vm8, %v1676_v6, 0.0  ;;  %v1413_v43 = vmul.f32 %v5182_v13, %v5745_v52 }
 0x1e2   :  { %v1429_v26 = vmul.f32 %v5190_v17, %v5743_v9  ;;  %v942_v47 = vsub.f32 %v902_v5, %v926_v62  ;;  %v998_v28 = vmul.f32 %v5131_v54, %v5740_v4  ;;  %v583_v40 = vadd.f32 %v5137_v56, %v559_v31 }
 0x1e3   :  { %v647_v27 = vadd.f32 %v7411_v50, %v615_v34  ;;  %vm1628_vm11 = vcmp.gt.f32.partialorder %v1484_v15, 0.01  ;;  %v861_v35 = vsel %vm829_vm10, %v845_v57, 0.0  ;;  %v492_v22 = vmul.f32 %v5096_v41, %v5761_v1 }
 0x1e4   :  { %v1445_v25 = vadd.f32 %v1429_v26, %v1413_v43  ;;  %v1708_v29 = vsel %vm1628_vm11, %v4306_v23, %v1692_v42  ;;  %v1245_v14 = vadd.f32 0.01, %v5745_v52  ;;  %v966_v39 = vadd.f32 %v5142_v58, %v942_v47 }
 0x1e5   :  { %v1030_v6 = vadd.f32 %v1014_v19, %v998_v28  ;;  %vm1229_vm12 = vcmp.lt.f32.partialorder %v5745_v52, -0.01  ;;  %vm830_vm13 = vcmp.lt.f32.partialorder %v5740_v4, -0.01  ;;  %v5781_v5 = vmax.f32 %v583_v40, 0.0 }
 0x1e6   :  { %v671_v34 = vadd.f32 %v5148_v2, %v647_v27  ;;  %v1469_v15 = vadd.f32 %v5192_v18, %v1445_v25  ;;  %v846_v21 = vadd.f32 0.01, %v5740_v4  ;;  %v5786_v31 = vmax.f32 %v966_v39, 0.0 }
 0x1e7   :  { %7412 = vst [vmem:[#allocation51_spill] sm:$0xff] %v5781_v5  ;;  %v1054_v57 = vadd.f32 %v5145_v59, %v1030_v6  ;;  %v4275_v62 = vadd.f32 -0.01, %v5745_v52  ;;  %v903_v19 = vmul.f32 %v5151_v60, %v5781_v5  ;;  %v544_v42 = vmul.f32 %v5107_v45, %v492_v22 }
 0x1e8   :  { %7413 = vst [vmem:[#allocation52_spill] sm:$0xff] %v5786_v31  ;;  %v5790_v23 = vmax.f32 %v671_v34, 0.0  ;;  %v1724_v43 = vadd.f32 %v1708_v29, %v1292_v24  ;;  %v1261_v26 = vsel %vm1229_vm12, %v1245_v14, 0.0  ;;  %v1430_v28 = vmul.f32 %v5167_v7, %v5786_v31 }
 0x1e9   :  { %v5795_v47 = vmax.f32 %v1054_v57, 0.0  ;;  %v877_v40 = vsel %vm797_vm9, %v4243_v38, %v861_v35  ;;  %v4244_v50 = vadd.f32 -0.01, %v5740_v4  ;;  %v616_v25 = vmul.f32 %v5104_v44, %v492_v22  ;;  %v7415_v38 = vld [vmem:[#allocation53_spill] sm:$0xff] }
 0x1ea   :  { %v927_v27 = vmul.f32 %v5161_v0, %v5790_v23  ;;  %vm1197_vm14 = vcmp.gt.f32.partialorder %v5745_v52, 0.01  ;;  %v1485_v39 = vmax.f32 %v1469_v15, 0.0  ;;  %v862_v24 = vsel %vm830_vm13, %v846_v21, 0.0 }
 0x1eb   :  { %7414 = vst [vmem:[#allocation87_spill] sm:$0xff] %v5795_v47  ;;  %v1414_v29 = vmul.f32 %v5158_v63, %v5795_v47  ;;  %v1277_v14 = vsel %vm1197_vm14, %v4275_v62, %v1261_v26  ;;  %vm798_vm15 = vcmp.gt.f32.partialorder %v5740_v4, 0.01  ;;  %v560_v35 = vsub.f32 %v7415_v38, %v544_v42  ;;  %v7416_v62 = vld [vmem:[#allocation56_spill] sm:$0xff] }
 0x1ec   :  { %v943_v16 = vsub.f32 %v903_v19, %v927_v27  ;;  %v5813_v6 = vadd.f32 %v1724_v43, %v5580_v20  ;;  %v1246_v22 = vadd.f32 0.01, %v5795_v47  ;;  %v1015_v15 = vmul.f32 %v5161_v0, %v5781_v5  ;;  %v5826_v43 = vpop.f32.mrf.mxu0 }
 0x1ed   :  { %v1446_v34 = vadd.f32 %v1430_v28, %v1414_v29  ;;  %v878_v57 = vsel %vm798_vm15, %v4244_v50, %v862_v24  ;;  %vm1230_vm1 = vcmp.lt.f32.partialorder %v5795_v47, -0.01  ;;  %v648_v26 = vadd.f32 %v7416_v62, %v616_v25 }
 0x1ee   :  { %v967_v21 = vadd.f32 %v5170_v10, %v943_v16  ;;  %v5821_v4 = vadd.f32 %v1277_v14, %v877_v40  ;;  %v1677_v19 = vadd.f32 0.01, %v1485_v39  ;;  %v999_v20 = vmul.f32 %v5151_v60, %v5790_v23  ;;  %v5857_v52 = vpop.f32.mrf.mxu0 }
 0x1ef   :  { %v1470_v42 = vadd.f32 %v5179_v12, %v1446_v34  ;;  %vm1629_vm2 = vcmp.gt.f32.partialorder %v1485_v39, 0.01  ;;  %vm1661_vm3 = vcmp.lt.f32.partialorder %v1485_v39, -0.01  ;;  %v4276_v28 = vadd.f32 -0.01, %v5795_v47 }
 0x1f0   :  { %v584_v50 = vadd.f32 %v5124_v51, %v560_v35  ;;  %v4307_v27 = vadd.f32 -0.01, %v1485_v39  ;;  %v1262_v24 = vsel %vm1230_vm1, %v1246_v22, 0.0  ;;  %v1031_v25 = vadd.f32 %v1015_v15, %v999_v20 }
 0x1f1   :  { %v1486_v29 = vmax.f32 %v1470_v42, 0.0  ;;  %v5830_v40 = vmax.f32 %v967_v21, 0.0  ;;  %v672_v16 = vadd.f32 %v5128_v53, %v648_v26  ;;  %v493_v38 = vmul.f32 %v5110_v46, %v5826_v43 }
 0x1f2   :  { %v5832_v14 = vmax.f32 %v584_v50, 0.0  ;;  %v1693_v34 = vsel %vm1661_vm3, %v1677_v19, 0.0  ;;  %vm1198_vm4 = vcmp.gt.f32.partialorder %v5795_v47, 0.01  ;;  %vm831_vm5 = vcmp.lt.f32.partialorder %v5790_v23, -0.01 }
 0x1f3   :  { %7417 = vst [vmem:[#allocation53_spill] sm:$0xff] %v5830_v40  ;;  %v1055_v35 = vadd.f32 %v5173_v8, %v1031_v25  ;;  %v1278_v62 = vsel %vm1198_vm4, %v4276_v28, %v1262_v24  ;;  %v1678_v22 = vadd.f32 0.01, %v1486_v29  ;;  %v847_v15 = vadd.f32 0.01, %v5790_v23 }
 0x1f4   :  { %v5841_v21 = vmax.f32 %v672_v16, 0.0  ;;  %vm1662_vm6 = vcmp.lt.f32.partialorder %v1486_v29, -0.01  ;;  %v904_v26 = vmul.f32 %v5131_v54, %v5832_v14  ;;  %v545_v19 = vmul.f32 %v5119_v49, %v493_v38 }
 0x1f5   :  { %v5843_v42 = vmax.f32 %v1055_v35, 0.0  ;;  %v4245_v20 = vadd.f32 -0.01, %v5790_v23  ;;  %v1431_v50 = vmul.f32 %v5190_v17, %v5830_v40  ;;  %v617_v24 = vmul.f32 %v5116_v48, %v493_v38 }
 0x1f6   :  { %v928_v28 = vmul.f32 %v5134_v55, %v5841_v21  ;;  %v1709_v25 = vsel %vm1629_vm2, %v4307_v27, %v1693_v34  ;;  %v1294_v16 = vadd.f32 %v1278_v62, %v878_v57  ;;  %v4308_v35 = vadd.f32 -0.01, %v1486_v29  ;;  %v7418_v57 = vld [vmem:[#allocation57_spill] sm:$0xff]  ;;  %v7419_v62 = vld [vmem:[#allocation58_spill] sm:$0xff] }
 0x1f7   :  { %v1016_v3 = vmul.f32 %v5134_v55, %v5832_v14  ;;  %vm1630_vm7 = vcmp.gt.f32.partialorder %v1486_v29, 0.01  ;;  %v1694_v9 = vsel %vm1662_vm6, %v1678_v22, 0.0  ;;  %v863_v33 = vsel %vm831_vm5, %v847_v15, 0.0 }
 0x1f8   :  { %v1415_v47 = vmul.f32 %v5182_v13, %v5843_v42  ;;  %v1247_v31 = vadd.f32 0.01, %v5843_v42  ;;  %v944_v38 = vsub.f32 %v904_v26, %v928_v28  ;;  %v1000_v39 = vmul.f32 %v5131_v54, %v5841_v21 }
 0x1f9   :  { %v561_v27 = vsub.f32 %v7418_v57, %v545_v19  ;;  %vm1231_vm8 = vcmp.lt.f32.partialorder %v5843_v42, -0.01  ;;  %v649_v29 = vadd.f32 %v7419_v62, %v617_v24  ;;  %v494_v22 = vmul.f32 %v5096_v41, %v5857_v52 }
 0x1fa   :  { %v1447_v34 = vadd.f32 %v1431_v50, %v1415_v47  ;;  %v1710_v15 = vsel %vm1630_vm7, %v4308_v35, %v1694_v9  ;;  %vm1199_vm9 = vcmp.gt.f32.partialorder %v5843_v42, 0.01  ;;  %v968_v40 = vadd.f32 %v5142_v58, %v944_v38 }
 0x1fb   :  { %v1032_v5 = vadd.f32 %v1016_v3, %v1000_v39  ;;  %v4277_v26 = vadd.f32 -0.01, %v5843_v42  ;;  %v848_v19 = vadd.f32 0.01, %v5841_v21  ;;  %v585_v57 = vadd.f32 %v5137_v56, %v561_v27 }
 0x1fc   :  { %v1471_v28 = vadd.f32 %v5192_v18, %v1447_v34  ;;  %v1263_v47 = vsel %vm1231_vm8, %v1247_v31, 0.0  ;;  %v5877_v50 = vmax.f32 %v968_v40, 0.0  ;;  %v673_v41 = vadd.f32 %v5148_v2, %v649_v29 }
 0x1fd   :  { %v1056_v24 = vadd.f32 %v5145_v59, %v1032_v5  ;;  %v1726_v9 = vadd.f32 %v1710_v15, %v1294_v16  ;;  %vm832_vm10 = vcmp.lt.f32.partialorder %v5841_v21, -0.01  ;;  %v5882_v3 = vmax.f32 %v585_v57, 0.0 }
 0x1fe   :  { %v1487_v35 = vmax.f32 %v1471_v28, 0.0  ;;  %v1432_v39 = vmul.f32 %v5167_v7, %v5877_v50  ;;  %v5888_v34 = vmax.f32 %v673_v41, 0.0  ;;  %v546_v31 = vmul.f32 %v5107_v45, %v494_v22  ;;  %v5902_v28 = vpop.f32.mrf.mxu0 }
 0x1ff   :  { %v5884_v38 = vmax.f32 %v1056_v24, 0.0  ;;  %vm799_vm11 = vcmp.gt.f32.partialorder %v5790_v23, 0.01  ;;  %v1279_v5 = vsel %vm1199_vm9, %v4277_v26, %v1263_v47  ;;  %v4246_v40 = vadd.f32 -0.01, %v5841_v21 }
 0x200   :  { %v905_v16 = vmul.f32 %v5151_v60, %v5882_v3  ;;  %v5898_v27 = vadd.f32 %v1709_v25, %v5821_v4  ;;  %v879_v62 = vsel %vm799_vm11, %v4245_v20, %v863_v33  ;;  %v864_v29 = vsel %vm832_vm10, %v848_v19, 0.0  ;;  %v7420_v25 = vld [vmem:[#allocation62_spill] sm:$0xff] }
 0x201   :  { %v1416_v15 = vmul.f32 %v5158_v63, %v5884_v38  ;;  %v5905_v45 = vadd.f32 %v1726_v9, %v5676_v37  ;;  %v1679_v23 = vadd.f32 0.01, %v1487_v35  ;;  %vm800_vm12 = vcmp.gt.f32.partialorder %v5841_v21, 0.01 }
 0x202   :  { %v929_v26 = vmul.f32 %v5161_v0, %v5888_v34  ;;  %v1295_v57 = vadd.f32 %v1279_v5, %v879_v62  ;;  %vm1663_vm13 = vcmp.lt.f32.partialorder %v1487_v35, -0.01  ;;  %v562_v33 = vsub.f32 %v7420_v25, %v546_v31 }
 0x203   :  { %v1448_v4 = vadd.f32 %v1432_v39, %v1416_v15  ;;  %v880_v20 = vsel %vm800_vm12, %v4246_v40, %v864_v29  ;;  %v618_v47 = vmul.f32 %v5104_v44, %v494_v22  ;;  %v495_v24 = vmul.f32 %v5110_v46, %v5902_v28 }
 0x204   :  { %v945_v19 = vsub.f32 %v905_v16, %v929_v26  ;;  %v4309_v37 = vadd.f32 -0.01, %v1487_v35  ;;  %v1248_v41 = vadd.f32 0.01, %v5884_v38  ;;  %v1001_v9 = vmul.f32 %v5151_v60, %v5888_v34  ;;  %v7421_v16 = vld [vmem:[#allocation63_spill] sm:$0xff] }
 0x205   :  { %v1472_v21 = vadd.f32 %v5179_v12, %v1448_v4  ;;  %v1695_v5 = vsel %vm1663_vm13, %v1679_v23, 0.0  ;;  %vm1232_vm14 = vcmp.lt.f32.partialorder %v5884_v38, -0.01  ;;  %v1017_v31 = vmul.f32 %v5161_v0, %v5882_v3 }
 0x206   :  { %v969_v39 = vadd.f32 %v5170_v10, %v945_v19  ;;  %vm1631_vm15 = vcmp.gt.f32.partialorder %v1487_v35, 0.01  ;;  %vm1200_vm1 = vcmp.gt.f32.partialorder %v5884_v38, 0.01  ;;  %v586_v46 = vadd.f32 %v5124_v51, %v562_v33  ;;  %v7422_v33 = vld [vmem:[#allocation64_spill] sm:$0xff] }
 0x207   :  { %v1488_v44 = vmax.f32 %v1472_v21, 0.0  ;;  %v4278_v22 = vadd.f32 -0.01, %v5884_v38  ;;  %v1033_v40 = vadd.f32 %v1017_v31, %v1001_v9  ;;  %v650_v62 = vadd.f32 %v7421_v16, %v618_v47  ;;  %v7423_v47 = vld [vmem:[#allocation65_spill] sm:$0xff] }
 0x208   :  { %v547_v29 = vmul.f32 %v5119_v49, %v495_v24  ;;  %v1711_v15 = vsel %vm1631_vm15, %v4309_v37, %v1695_v5  ;;  %v1264_v23 = vsel %vm1232_vm14, %v1248_v41, 0.0  ;;  %v5927_v26 = vmax.f32 %v969_v39, 0.0 }
 0x209   :  { %v619_v4 = vmul.f32 %v5116_v48, %v495_v24  ;;  %v1680_v25 = vadd.f32 0.01, %v1488_v44  ;;  %v849_v35 = vadd.f32 0.01, %v5888_v34  ;;  %v1057_v19 = vadd.f32 %v5173_v8, %v1033_v40 }
 0x20a   :  { %v5932_v21 = vmax.f32 %v586_v46, 0.0  ;;  %vm1664_vm2 = vcmp.lt.f32.partialorder %v1488_v44, -0.01  ;;  %vm801_vm3 = vcmp.gt.f32.partialorder %v5888_v34, 0.01  ;;  %v674_v51 = vadd.f32 %v5128_v53, %v650_v62 }
 0x20b   :  { %v563_v49 = vsub.f32 %v7422_v33, %v547_v29  ;;  %v651_v37 = vadd.f32 %v7423_v47, %v619_v4  ;;  %v1280_v41 = vsel %vm1200_vm1, %v4278_v22, %v1264_v23  ;;  %v4310_v48 = vadd.f32 -0.01, %v1488_v44 }
 0x20c   :  { %vm833_vm4 = vcmp.lt.f32.partialorder %v5888_v34, -0.01  ;;  %v5941_v24 = vmax.f32 %v1057_v19, 0.0  ;;  %v1433_v9 = vmul.f32 %v5190_v17, %v5927_v26  ;;  %v5945_v5 = vmax.f32 %v674_v51, 0.0 }
 0x20d   :  { %v587_v39 = vadd.f32 %v5137_v56, %v563_v49  ;;  %v675_v53 = vadd.f32 %v5148_v2, %v651_v37  ;;  %v1727_v31 = vadd.f32 %v1711_v15, %v1295_v57  ;;  %v1696_v46 = vsel %vm1664_vm2, %v1680_v25, 0.0 }
 0x20e   :  { %v4247_v40 = vadd.f32 -0.01, %v5888_v34  ;;  %v906_v22 = vmul.f32 %v5131_v54, %v5932_v21  ;;  %v1296_v16 = vadd.f32 %v1280_v41, %v880_v20  ;;  %v865_v62 = vsel %vm833_vm4, %v849_v35, 0.0  ;;  %v4543_v41 = vld [vmem:[%s7214_s6 + $0x8] sm:$0x3f] }
 0x20f   :  { %v1417_v29 = vmul.f32 %v5182_v13, %v5941_v24  ;;  %v930_v23 = vmul.f32 %v5134_v55, %v5945_v5  ;;  %vm1632_vm5 = vcmp.gt.f32.partialorder %v1488_v44, 0.01  ;;  %v1018_v56 = vmul.f32 %v5134_v55, %v5932_v21 }
 0x210   :  { %v5958_v2 = vmax.f32 %v587_v39, 0.0  ;;  %v691_v57 = vmax.f32 %v675_v53, 0.0  ;;  %v1712_v15 = vsel %vm1632_vm5, %v4310_v48, %v1696_v46  ;;  %v1249_v4 = vadd.f32 0.01, %v5941_v24 }
 0x211   :  { %v1449_v25 = vadd.f32 %v1433_v9, %v1417_v29  ;;  %v1002_v20 = vmul.f32 %v5131_v54, %v5945_v5  ;;  %v946_v35 = vsub.f32 %v906_v22, %v930_v23  ;;  %v5968_v55 = vadd.f32 %v1727_v31, %v5709_v11 }
 0x212   :  { %v907_v19 = vmul.f32 %v5151_v60, %v5958_v2  ;;  %v931_v51 = vmul.f32 %v5161_v0, %v691_v57  ;;  %v1003_v44 = vmul.f32 %v5151_v60, %v691_v57  ;;  %vm1233_vm6 = vcmp.lt.f32.partialorder %v5941_v24, -0.01  ;;  %v7424_v60 = vld [vmem:[#allocation36_spill] sm:$0xff] }
 0x213   :  { %v1473_v33 = vadd.f32 %v5192_v18, %v1449_v25  ;;  %v1019_v49 = vmul.f32 %v5161_v0, %v5958_v2  ;;  %v1728_v47 = vadd.f32 %v1712_v15, %v1296_v16  ;;  %v881_v54 = vsel %vm801_vm3, %v4247_v40, %v865_v62 }
 0x214   :  { %v947_v37 = vsub.f32 %v907_v19, %v931_v51  ;;  %v5980_v48 = vrot.slane %v4543_v41, %v7424_v60  ;;  %v4279_v11 = vadd.f32 -0.01, %v5941_v24  ;;  %v1034_v39 = vadd.f32 %v1018_v56, %v1002_v20 }
 0x215   :  { %v1489_v9 = vmax.f32 %v1473_v33, 0.0  ;;  %v1035_v53 = vadd.f32 %v1019_v49, %v1003_v44  ;;  %vm1201_vm7 = vcmp.gt.f32.partialorder %v5941_v24, 0.01  ;;  %v1265_v0 = vsel %vm1233_vm6, %v1249_v4, 0.0 }
 0x216   :  { %v970_v31 = vadd.f32 %v5142_v58, %v946_v35  ;;  %v971_v34 = vadd.f32 %v5170_v10, %v947_v37  ;;  %vm835_vm8 = vcmp.lt.f32.partialorder %v691_v57, -0.01  ;;  %v851_v46 = vadd.f32 0.01, %v691_v57 }
 0x217   :  { %v1059_v40 = vadd.f32 %v5173_v8, %v1035_v53  ;;  %v850_v22 = vadd.f32 0.01, %v5945_v5  ;;  %v5989_v16 = vadd.f32 %v1728_v47, %v5761_v1  ;;  %vm1665_vm9 = vcmp.lt.f32.partialorder %v1489_v9, -0.01 }
 0x218   :  { %v1681_v62 = vadd.f32 0.01, %v1489_v9  ;;  %v5991_v29 = vmax.f32 %v971_v34, 0.0  ;;  %v1281_v23 = vsel %vm1201_vm7, %v4279_v11, %v1265_v0  ;;  %vm834_vm10 = vcmp.lt.f32.partialorder %v5945_v5, -0.01 }
 0x219   :  { %v1075_v56 = vmax.f32 %v1059_v40, 0.0  ;;  %v1058_v58 = vadd.f32 %v5145_v59, %v1034_v39  ;;  %v4311_v10 = vadd.f32 -0.01, %v1489_v9  ;;  %v5995_v15 = vmax.f32 %v970_v31, 0.0 }
 0x21a   :  { %v4249_v4 = vadd.f32 -0.01, %v691_v57  ;;  %v1435_v8 = vmul.f32 %v5190_v17, %v5991_v29  ;;  %v1697_v25 = vsel %vm1665_vm9, %v1681_v62, 0.0  ;;  %v867_v1 = vsel %vm835_vm8, %v851_v46, 0.0 }
 0x21b   :  { %vm802_vm11 = vcmp.gt.f32.partialorder %v5945_v5, 0.01  ;;  %v4248_v20 = vadd.f32 -0.01, %v5945_v5  ;;  %v1251_v35 = vadd.f32 0.01, %v1075_v56  ;;  %v1419_v19 = vmul.f32 %v5182_v13, %v1075_v56 }
 0x21c   :  { %v866_v51 = vsel %vm834_vm10, %v850_v22, 0.0  ;;  %v6003_v44 = vmax.f32 %v1058_v58, 0.0  ;;  %v1297_v59 = vadd.f32 %v1281_v23, %v881_v54  ;;  %vm1633_vm12 = vcmp.gt.f32.partialorder %v1489_v9, 0.01 }
 0x21d   :  { %vm803_vm13 = vcmp.gt.f32.partialorder %v691_v57, 0.01  ;;  %vm1235_vm14 = vcmp.lt.f32.partialorder %v1075_v56, -0.01  ;;  %v1713_v33 = vsel %vm1633_vm12, %v4311_v10, %v1697_v25  ;;  %v1451_v47 = vadd.f32 %v1435_v8, %v1419_v19 }
 0x21e   :  { %v883_v49 = vsel %vm803_vm13, %v4249_v4, %v867_v1  ;;  %v1434_v37 = vmul.f32 %v5167_v7, %v5995_v15  ;;  %vm1203_vm15 = vcmp.gt.f32.partialorder %v1075_v56, 0.01  ;;  %v4281_v41 = vadd.f32 -0.01, %v1075_v56 }
 0x21f   :  { %v882_v11 = vsel %vm802_vm11, %v4248_v20, %v866_v51  ;;  %v1250_v39 = vadd.f32 0.01, %v6003_v44  ;;  %v1267_v53 = vsel %vm1235_vm14, %v1251_v35, 0.0  ;;  %v1475_v0 = vadd.f32 %v5192_v18, %v1451_v47 }
 0x220   :  { %vm1234_vm1 = vcmp.lt.f32.partialorder %v6003_v44, -0.01  ;;  %v1418_v57 = vmul.f32 %v5158_v63, %v6003_v44  ;;  %v1729_v54 = vadd.f32 %v1713_v33, %v1297_v59  ;;  %v4233_v9 = vadd.f32 -0.01, %v5958_v2 }
 0x221   :  { %vm739_vm2 = vcmp.lt.f32.partialorder %v5958_v2, -0.01  ;;  %v1323_v31 = vmul.f32 %v5182_v13, %v5991_v29  ;;  %v1491_v5 = vmax.f32 %v1475_v0, 0.0  ;;  %v4280_v34 = vadd.f32 -0.01, %v6003_v44 }
 0x222   :  { %v1450_v46 = vadd.f32 %v1434_v37, %v1418_v57  ;;  %v755_v40 = vadd.f32 0.01, %v5958_v2  ;;  %v1283_v18 = vsel %vm1203_vm15, %v4281_v41, %v1267_v53  ;;  %v1266_v22 = vsel %vm1234_vm1, %v1250_v39, 0.0 }
 0x223   :  { %v1139_v62 = vadd.f32 0.01, %v5991_v29  ;;  %v1347_v23 = vmul.f32 %v5190_v17, %v1075_v56  ;;  %v4313_v58 = vadd.f32 -0.01, %v1491_v5  ;;  %vm1667_vm3 = vcmp.lt.f32.partialorder %v1491_v5, -0.01 }
 0x224   :  { %v1474_v10 = vadd.f32 %v5179_v12, %v1450_v46  ;;  %vm1123_vm4 = vcmp.lt.f32.partialorder %v5991_v29, -0.01  ;;  %v1745_v4 = vadd.f32 %v1729_v54, %v5826_v43  ;;  %v1683_v8 = vadd.f32 0.01, %v1491_v5 }
 0x225   :  { %vm1202_vm5 = vcmp.gt.f32.partialorder %v6003_v44, 0.01  ;;  %vm707_vm6 = vcmp.gt.f32.partialorder %v5958_v2, 0.01  ;;  %v1363_v25 = vsub.f32 %v1323_v31, %v1347_v23  ;;  %v1299_v1 = vadd.f32 %v1283_v18, %v883_v49 }
 0x226   :  { %v1282_v20 = vsel %vm1202_vm5, %v4280_v34, %v1266_v22  ;;  %v1490_v35 = vmax.f32 %v1474_v10, 0.0  ;;  %v4265_v19 = vadd.f32 -0.01, %v5991_v29  ;;  %vm1635_vm7 = vcmp.gt.f32.partialorder %v1491_v5, 0.01 }
 0x227   :  { %v1699_v56 = vsel %vm1667_vm3, %v1683_v8, 0.0  ;;  %v1155_v51 = vsel %vm1123_vm4, %v1139_v62, 0.0  ;;  %v1387_v12 = vadd.f32 %v5980_v48, %v1363_v25  ;;  %v771_v43 = vsel %vm739_vm2, %v755_v40, 0.0 }
 0x228   :  { %v1715_v59 = vsel %vm1635_vm7, %v4313_v58, %v1699_v56  ;;  %v4312_v33 = vadd.f32 -0.01, %v1490_v35  ;;  %vm1666_vm8 = vcmp.lt.f32.partialorder %v1490_v35, -0.01  ;;  %v1682_v37 = vadd.f32 0.01, %v1490_v35 }
 0x229   :  { %v1731_v47 = vadd.f32 %v1715_v59, %v1299_v1  ;;  %vm1091_vm9 = vcmp.gt.f32.partialorder %v5991_v29, 0.01  ;;  %v1403_v49 = vmax.f32 %v1387_v12, 0.0  ;;  %v1298_v41 = vadd.f32 %v1282_v20, %v882_v11  ;;  %v4544_v58 = vld [vmem:[%s7214_s6] sm:$0x3f] }
 0x22a   :  { %vm1634_vm10 = vcmp.gt.f32.partialorder %v1490_v35, 0.01  ;;  %v1171_v39 = vsel %vm1091_vm9, %v4265_v19, %v1155_v51  ;;  %vm738_vm11 = vcmp.lt.f32.partialorder %v5932_v21, -0.01  ;;  %v1698_v0 = vsel %vm1666_vm8, %v1682_v37, 0.0 }
 0x22b   :  { %v1747_v53 = vadd.f32 %v1731_v47, %v5902_v28  ;;  %vm706_vm12 = vcmp.gt.f32.partialorder %v5932_v21, 0.01  ;;  %vm1122_vm13 = vcmp.lt.f32.partialorder %v5995_v15, -0.01  ;;  %v1138_v57 = vadd.f32 0.01, %v5995_v15 }
 0x22c   :  { %v1714_v54 = vsel %vm1634_vm10, %v4312_v33, %v1698_v0  ;;  %v4297_v31 = vadd.f32 -0.01, %v1403_v49  ;;  %vm1539_vm14 = vcmp.lt.f32.partialorder %v1403_v49, -0.01  ;;  %v1555_v5 = vadd.f32 0.01, %v1403_v49 }
 0x22d   :  { %1763 = vmatprep.subr.mxu1 %v1747_v53  ;;  %v1730_v29 = vadd.f32 %v1714_v54, %v1298_v41  ;;  %v754_v11 = vadd.f32 0.01, %v5932_v21  ;;  %v1322_v34 = vmul.f32 %v5158_v63, %v5995_v15  ;;  %v1346_v28 = vmul.f32 %v5167_v7, %v6003_v44 }
 0x22e   :  { %v787_v46 = vsel %vm707_vm6, %v4233_v9, %v771_v43  ;;  %vm1507_vm15 = vcmp.gt.f32.partialorder %v1403_v49, 0.01  ;;  %v1571_v40 = vsel %vm1539_vm14, %v1555_v5, 0.0  ;;  %v4264_v18 = vadd.f32 -0.01, %v5995_v15  ;;  %v7428_v5 = vld [vmem:[#allocation44_spill] sm:$0xff] }
 0x22f   :  { %v1746_v22 = vadd.f32 %v1730_v29, %v5857_v52  ;;  %v1154_v62 = vsel %vm1122_vm13, %v1138_v57, 0.0  ;;  %v1362_v23 = vsub.f32 %v1322_v34, %v1346_v28  ;;  %v6053_v10 = vrot.slane %v4544_v58, %v7424_v60  ;;  %v7429_v28 = vld [vmem:[#allocation80_spill] sm:$0xff] }
 0x230   :  { %v1187_v44 = vadd.f32 %v1171_v39, %v787_v46  ;;  %v1587_v2 = vsel %vm1507_vm15, %v4297_v31, %v1571_v40  ;;  %v4232_v9 = vadd.f32 -0.01, %v5932_v21  ;;  %v753_v8 = vadd.f32 0.01, %v5882_v3  ;;  %v7430_v46 = vld [vmem:[#allocation39_spill] sm:$0xff]  ;;  %v7432_v58 = vld [vmem:[#allocation76_spill] sm:$0xff] }
 0x231   :  { %1764 = vmatpush1.msra.mxu1 %v1746_v22  ;;  %v770_v52 = vsel %vm738_vm11, %v754_v11, 0.0  ;;  %vm1090_vm1 = vcmp.gt.f32.partialorder %v5995_v15, 0.01  ;;  %v1386_v25 = vadd.f32 %v6053_v10, %v1362_v23  ;;  %vm737_vm2 = vcmp.lt.f32.partialorder %v5882_v3, -0.01 }
 0x232   :  { %1765 = vmatprep.subr.mxu1 %v1745_v4  ;;  %v1170_v1 = vsel %vm1090_vm1, %v4264_v18, %v1154_v62  ;;  %v1137_v60 = vadd.f32 0.01, %v5927_v26  ;;  %v1321_v20 = vmul.f32 %v5182_v13, %v5927_v26  ;;  %v1345_v35 = vmul.f32 %v5190_v17, %v5941_v24  ;;  %v7431_v62 = vld [vmem:[#allocation51_spill] sm:$0xff] }
 0x233   :  { %1766 = vmatpush1.msra.mxu1 %v5989_v16  ;;  %v1603_v19 = vadd.f32 %v1587_v2, %v1187_v44  ;;  %v1402_v56 = vmax.f32 %v1386_v25, 0.0  ;;  %v4231_v15 = vadd.f32 -0.01, %v5882_v3  ;;  %vm1121_vm3 = vcmp.lt.f32.partialorder %v5927_v26, -0.01 }
 0x234   :  { %v1741_v4 = vadd.f32 %v5898_v27, %v5626_v36  ;;  %1767 = vmatprep.subr.mxu1 %v5968_v55  ;;  %v786_v51 = vsel %vm706_vm12, %v4232_v9, %v770_v52  ;;  %v769_v12 = vsel %vm737_vm2, %v753_v8, 0.0  ;;  %v1361_v59 = vsub.f32 %v1321_v20, %v1345_v35  ;;  %v7425_v27 = vld [vmem:[#allocation40_spill] sm:$0xff]  ;;  %v7433_v9 = vld [vmem:[#allocation53_spill] sm:$0xff]  ;;  %v7434_v20 = vld [vmem:[#allocation38_spill] sm:$0xff] }
 0x235   :  { %1768 = vmatpush1.msra.mxu1 %v5905_v45  ;;  %v1186_v24 = vadd.f32 %v1170_v1, %v786_v51  ;;  %v4296_v16 = vadd.f32 -0.01, %v1402_v56  ;;  %vm1538_vm4 = vcmp.lt.f32.partialorder %v1402_v56, -0.01  ;;  %v4263_v33 = vadd.f32 -0.01, %v5927_v26 }
 0x236   :  { %1769 = vmatprep.subr.mxu1 %v1741_v4  ;;  %v1554_v43 = vadd.f32 0.01, %v1402_v56  ;;  %vm705_vm5 = vcmp.gt.f32.partialorder %v5882_v3, 0.01  ;;  %v1153_v47 = vsel %vm1121_vm3, %v1137_v60, 0.0  ;;  %v1385_v36 = vadd.f32 %v5980_v48, %v1361_v59 }
 0x237   :  { %1770 = vmatpush1.msra.mxu1 %v5813_v6  ;;  %v1619_v21 = vadd.f32 %v1603_v19, %v7425_v27  ;;  %v785_v55 = vsel %vm705_vm5, %v4231_v15, %v769_v12  ;;  %vm1089_vm6 = vcmp.gt.f32.partialorder %v5927_v26, 0.01  ;;  %v1320_v45 = vmul.f32 %v5158_v63, %v5877_v50 }
 0x238   :  { %1771 = vmatprep.subr.mxu1 %v5764_v30  ;;  %vm1506_vm7 = vcmp.gt.f32.partialorder %v1402_v56, 0.01  ;;  %v1570_v37 = vsel %vm1538_vm4, %v1554_v43, 0.0  ;;  %v1401_v49 = vmax.f32 %v1385_v36, 0.0  ;;  %v1344_v3 = vmul.f32 %v5167_v7, %v5884_v38  ;;  %v7426_v30 = vld [vmem:[#allocation68_spill] sm:$0xff]  ;;  %v7427_v38 = vld [vmem:[#allocation55_spill] sm:$0xff] }
 0x239   :  { %1772 = vmatpush1.msra.mxu1 %v5751_v61  ;;  %v1586_v41 = vsel %vm1506_vm7, %v4296_v16, %v1570_v37  ;;  %v1169_v6 = vsel %vm1089_vm6, %v4263_v33, %v1153_v47  ;;  %v752_v39 = vadd.f32 0.01, %v5832_v14  ;;  %v1136_v53 = vadd.f32 0.01, %v5877_v50  ;;  %v7436_v47 = vld [vmem:[#allocation87_spill] sm:$0xff] }
 0x23a   :  { %1773 = vmatprep.subr.mxu1 %v5669_v32  ;;  %v1602_v26 = vadd.f32 %v1586_v41, %v1186_v24  ;;  %v4295_v0 = vadd.f32 -0.01, %v1401_v49  ;;  %vm1537_vm8 = vcmp.lt.f32.partialorder %v1401_v49, -0.01  ;;  %vm1120_vm9 = vcmp.lt.f32.partialorder %v5877_v50, -0.01 }
 0x23b   :  { %1774 = vmatpush1.msra.mxu1 %v7426_v30  ;;  %v1553_v57 = vadd.f32 0.01, %v1401_v49  ;;  %vm704_vm10 = vcmp.gt.f32.partialorder %v5832_v14, 0.01  ;;  %vm736_vm11 = vcmp.lt.f32.partialorder %v5832_v14, -0.01  ;;  %v1360_v61 = vsub.f32 %v1320_v45, %v1344_v3 }
 0x23c   :  { %1775 = vmatprep.subr.mxu1 %v7427_v38  ;;  %v1185_v54 = vadd.f32 %v1169_v6, %v785_v55  ;;  %v4230_v31 = vadd.f32 -0.01, %v5832_v14  ;;  %vm1088_vm12 = vcmp.gt.f32.partialorder %v5877_v50, 0.01  ;;  %v4262_v32 = vadd.f32 -0.01, %v5877_v50 }
 0x23d   :  { %1776 = vmatpush1.msra.mxu1 %v7428_v5  ;;  %vm1505_vm13 = vcmp.gt.f32.partialorder %v1401_v49, 0.01  ;;  %v1569_v29 = vsel %vm1537_vm8, %v1553_v57, 0.0  ;;  %v1152_v11 = vsel %vm1120_vm9, %v1136_v53, 0.0  ;;  %v1384_v34 = vadd.f32 %v6053_v10, %v1360_v61  ;;  %v7435_v14 = vld [vmem:[#allocation52_spill] sm:$0xff]  ;;  %v7437_v55 = vld [vmem:[#allocation49_spill] sm:$0xff] }
 0x23e   :  { %1777 = vmatprep.subr.mxu1 %v7429_v28  ;;  %v1618_v40 = vadd.f32 %v1602_v26, %v7430_v46  ;;  %v1585_v18 = vsel %vm1505_vm13, %v4295_v0, %v1569_v29  ;;  %v768_v22 = vsel %vm736_vm11, %v752_v39, 0.0  ;;  %v751_v23 = vadd.f32 0.01, %v7431_v62  ;;  %v7438_v41 = vld [vmem:[#allocation37_spill] sm:$0xff]  ;;  %v7439_v38 = vld [vmem:[#allocation50_spill] sm:$0xff] }
 0x23f   :  { %1778 = vmatpush1.msra.mxu1 %v7432_v58  ;;  %v1601_v44 = vadd.f32 %v1585_v18, %v1185_v54  ;;  %v1400_v2 = vmax.f32 %v1384_v34, 0.0  ;;  %vm735_vm14 = vcmp.lt.f32.partialorder %v7431_v62, -0.01  ;;  %v1319_v8 = vmul.f32 %v5182_v13, %v7433_v9  ;;  %v7440_v34 = vld [vmem:[#allocation86_spill] sm:$0xff] }
 0x240   :  { %1779 = vmatprep.subr.mxu1 %v1619_v21  ;;  %v1168_v52 = vsel %vm1088_vm12, %v4262_v32, %v1152_v11  ;;  %v4229_v25 = vadd.f32 -0.01, %v7431_v62  ;;  %v1135_v1 = vadd.f32 0.01, %v7433_v9  ;;  %v1343_v60 = vmul.f32 %v5190_v17, %v5843_v42 }
 0x241   :  { %1780 = vmatpush1.msra.mxu1 %v1618_v40  ;;  %v1617_v35 = vadd.f32 %v1601_v44, %v7434_v20  ;;  %v4294_v19 = vadd.f32 -0.01, %v1400_v2  ;;  %vm1536_vm15 = vcmp.lt.f32.partialorder %v1400_v2, -0.01  ;;  %vm1119_vm1 = vcmp.lt.f32.partialorder %v7433_v9, -0.01 }
 0x242   :  { %v784_v56 = vsel %vm704_vm10, %v4230_v31, %v768_v22  ;;  %v1552_v15 = vadd.f32 0.01, %v1400_v2  ;;  %v767_v50 = vsel %vm735_vm14, %v751_v23, 0.0  ;;  %v1359_v4 = vsub.f32 %v1319_v8, %v1343_v60 }
 0x243   :  { %1781 = vmatprep.subr.mxu1 %v1617_v35  ;;  %v1184_v51 = vadd.f32 %v1168_v52, %v784_v56  ;;  %vm703_vm2 = vcmp.gt.f32.partialorder %v7431_v62, 0.01  ;;  %vm1087_vm3 = vcmp.gt.f32.partialorder %v7433_v9, 0.01  ;;  %v4261_v42 = vadd.f32 -0.01, %v7433_v9 }
 0x244   :  { %vm1504_vm4 = vcmp.gt.f32.partialorder %v1400_v2, 0.01  ;;  %v1568_v12 = vsel %vm1536_vm15, %v1552_v15, 0.0  ;;  %v1151_v59 = vsel %vm1119_vm1, %v1135_v1, 0.0  ;;  %v1383_v24 = vadd.f32 %v5980_v48, %v1359_v4  ;;  %v7441_v62 = vld [vmem:[#allocation48_spill] sm:$0xff]  ;;  %v7442_v2 = vld [vmem:[#allocation35_spill] sm:$0xff] }
 0x245   :  { %v1584_v16 = vsel %vm1504_vm4, %v4294_v19, %v1568_v12  ;;  %v783_v33 = vsel %vm703_vm2, %v4229_v25, %v767_v50  ;;  %v1318_v43 = vmul.f32 %v5158_v63, %v7435_v14  ;;  %v1342_v36 = vmul.f32 %v5167_v7, %v7436_v47  ;;  %v2039_v4 = vld [vmem:[#allocation7 + $0x3c8] sm:$0xff]  ;;  %v7444_v12 = vld [vmem:[#allocation46_spill] sm:$0xff] }
 0x246   :  { %v1600_v27 = vadd.f32 %v1584_v16, %v1184_v51  ;;  %v1399_v21 = vmax.f32 %v1383_v24, 0.0  ;;  %vm702_vm5 = vcmp.gt.f32.partialorder %v7437_v55, 0.01  ;;  %v1134_v45 = vadd.f32 0.01, %v7435_v14  ;;  %v7443_v51 = vld [vmem:[#allocation43_spill] sm:$0xff]  ;;  %2174 = vmatprep.subr.mxu0 %v2039_v4 }
 0x247   :  { %v1167_v37 = vsel %vm1087_vm3, %v4261_v42, %v1151_v59  ;;  %v4228_v49 = vadd.f32 -0.01, %v7437_v55  ;;  %vm1118_vm6 = vcmp.lt.f32.partialorder %v7435_v14, -0.01  ;;  %v1358_v3 = vsub.f32 %v1318_v43, %v1342_v36  ;;  %v7445_v16 = vld [vmem:[#allocation72_spill] sm:$0xff] }
 0x248   :  { %v1616_v6 = vadd.f32 %v1600_v27, %v7438_v41  ;;  %v4293_v39 = vadd.f32 -0.01, %v1399_v21  ;;  %vm1535_vm7 = vcmp.lt.f32.partialorder %v1399_v21, -0.01  ;;  %v750_v53 = vadd.f32 0.01, %v7437_v55 }
 0x249   :  { %v1551_v26 = vadd.f32 0.01, %v1399_v21  ;;  %vm734_vm8 = vcmp.lt.f32.partialorder %v7437_v55, -0.01  ;;  %v4260_v0 = vadd.f32 -0.01, %v7435_v14  ;;  %v1382_v30 = vadd.f32 %v6053_v10, %v1358_v3 }
 0x24a   :  { %1782 = vmatpush1.msra.mxu1 %v1616_v6  ;;  %v1183_v57 = vadd.f32 %v1167_v37, %v783_v33  ;;  %vm1086_vm9 = vcmp.gt.f32.partialorder %v7435_v14, 0.01  ;;  %v1150_v61 = vsel %vm1118_vm6, %v1134_v45, 0.0  ;;  %v1317_v54 = vmul.f32 %v5182_v13, %v7439_v38  ;;  %v2038_v14 = vld [vmem:[#allocation7 + $0x3c0] sm:$0xff]  ;;  %v2031_v43 = vld [vmem:[#allocation7 + $0x388] sm:$0xff] }
 0x24b   :  { %vm1503_vm10 = vcmp.gt.f32.partialorder %v1399_v21, 0.01  ;;  %v1567_v31 = vsel %vm1535_vm7, %v1551_v26, 0.0  ;;  %v1398_v32 = vmax.f32 %v1382_v30, 0.0  ;;  %v1133_v5 = vadd.f32 0.01, %v7439_v38  ;;  %2175 = vmatpush1.msra.mxu0 %v2038_v14 }
 0x24c   :  { %v1583_v29 = vsel %vm1503_vm10, %v4293_v39, %v1567_v31  ;;  %v766_v11 = vsel %vm734_vm8, %v750_v53, 0.0  ;;  %vm1117_vm11 = vcmp.lt.f32.partialorder %v7439_v38, -0.01  ;;  %v1341_v28 = vmul.f32 %v5190_v17, %v7440_v34  ;;  %v7446_v47 = vld [vmem:[#allocation32_spill] sm:$0xff]  ;;  %2176 = vmatprep.subr.mxu0 %v2031_v43  ;;  %v2030_v53 = vld [vmem:[#allocation7 + $0x380] sm:$0xff]  ;;  %v7448_v31 = vld [vmem:[#allocation45_spill] sm:$0xff] }
 0x24d   :  { %v1599_v46 = vadd.f32 %v1583_v29, %v1183_v57  ;;  %v1166_v40 = vsel %vm1086_vm9, %v4260_v0, %v1150_v61  ;;  %v4292_v18 = vadd.f32 -0.01, %v1398_v32  ;;  %vm1534_vm12 = vcmp.lt.f32.partialorder %v1398_v32, -0.01  ;;  %v2023_v26 = vld [vmem:[#allocation7 + $0x348] sm:$0xff]  ;;  %v7447_v57 = vld [vmem:[#allocation42_spill] sm:$0xff]  ;;  %2177 = vmatpush1.msra.mxu0 %v2030_v53 }
 0x24e   :  { %v1550_v22 = vadd.f32 0.01, %v1398_v32  ;;  %v749_v23 = vadd.f32 0.01, %v7441_v62  ;;  %v4259_v58 = vadd.f32 -0.01, %v7439_v38  ;;  %v1357_v44 = vsub.f32 %v1317_v54, %v1341_v28  ;;  %2178 = vmatprep.subr.mxu0 %v2023_v26 }
 0x24f   :  { %v1615_v9 = vadd.f32 %v1599_v46, %v7442_v2  ;;  %v782_v8 = vsel %vm702_vm5, %v4228_v49, %v766_v11  ;;  %vm733_vm13 = vcmp.lt.f32.partialorder %v7441_v62, -0.01  ;;  %v1149_v52 = vsel %vm1117_vm11, %v1133_v5, 0.0  ;;  %v2022_v29 = vld [vmem:[#allocation7 + $0x340] sm:$0xff]  ;;  %v2015_v11 = vld [vmem:[#allocation7 + $0x308] sm:$0xff]  ;;  %v7449_v28 = vld [vmem:[#allocation85_spill] sm:$0xff] }
 0x250   :  { %v1182_v25 = vadd.f32 %v1166_v40, %v782_v8  ;;  %vm1502_vm14 = vcmp.gt.f32.partialorder %v1398_v32, 0.01  ;;  %v1566_v1 = vsel %vm1534_vm12, %v1550_v22, 0.0  ;;  %v1381_v60 = vadd.f32 %v5980_v48, %v1357_v44  ;;  %2179 = vmatpush1.msra.mxu0 %v2022_v29  ;;  %v7450_v40 = vld [vmem:[#allocation31_spill] sm:$0xff]  ;;  %v7455_v26 = vld [vmem:[#allocation81_spill] sm:$0xff] }
 0x251   :  { %1783 = vmatprep.subr.mxu1 %v1615_v9  ;;  %v1582_v20 = vsel %vm1502_vm14, %v4292_v18, %v1566_v1  ;;  %vm701_vm15 = vcmp.gt.f32.partialorder %v7441_v62, 0.01  ;;  %v4227_v35 = vadd.f32 -0.01, %v7441_v62  ;;  %vm1085_vm1 = vcmp.gt.f32.partialorder %v7439_v38, 0.01  ;;  %2180 = vmatprep.subr.mxu0 %v2015_v11 }
 0x252   :  { %v1598_v19 = vadd.f32 %v1582_v20, %v1182_v25  ;;  %v765_v56 = vsel %vm733_vm13, %v749_v23, 0.0  ;;  %v1165_v15 = vsel %vm1085_vm1, %v4259_v58, %v1149_v52  ;;  %v1397_v50 = vmax.f32 %v1381_v60, 0.0  ;;  %v2014_v2 = vld [vmem:[#allocation7 + $0x300] sm:$0xff] }
 0x253   :  { %vm700_vm2 = vcmp.gt.f32.partialorder %v7443_v51, 0.01  ;;  %v748_v42 = vadd.f32 0.01, %v7443_v51  ;;  %v1132_v59 = vadd.f32 0.01, %v7444_v12  ;;  %v1316_v24 = vmul.f32 %v5158_v63, %v7444_v12  ;;  %2181 = vmatpush1.msra.mxu0 %v2014_v2 }
 0x254   :  { %v1340_v33 = vmul.f32 %v5167_v7, %v7445_v16  ;;  %v1614_v36 = vadd.f32 %v1598_v19, %v7446_v47  ;;  %v4291_v27 = vadd.f32 -0.01, %v1397_v50  ;;  %vm1533_vm3 = vcmp.lt.f32.partialorder %v1397_v50, -0.01  ;;  %v7451_v20 = vld [vmem:[#allocation83_spill] sm:$0xff]  ;;  %v2007_v19 = vld [vmem:[#allocation7 + $0x2c8] sm:$0xff] }
 0x255   :  { %vm1116_vm4 = vcmp.lt.f32.partialorder %v7444_v12, -0.01  ;;  %v781_v21 = vsel %vm701_vm15, %v4227_v35, %v765_v56  ;;  %v1549_v55 = vadd.f32 0.01, %v1397_v50  ;;  %vm732_vm5 = vcmp.lt.f32.partialorder %v7443_v51, -0.01  ;;  %2182 = vmatprep.subr.mxu0 %v2007_v19 }
 0x256   :  { %v1356_v45 = vsub.f32 %v1316_v24, %v1340_v33  ;;  %1784 = vmatpush1.msra.mxu1 %v1614_v36  ;;  %v1181_v37 = vadd.f32 %v1165_v15, %v781_v21  ;;  %v4226_v49 = vadd.f32 -0.01, %v7443_v51  ;;  %vm1084_vm6 = vcmp.gt.f32.partialorder %v7444_v12, 0.01  ;;  %v7452_v15 = vld [vmem:[#allocation41_spill] sm:$0xff]  ;;  %v7453_v51 = vld [vmem:[#allocation84_spill] sm:$0xff] }
 0x257   :  { %v4258_v3 = vadd.f32 -0.01, %v7444_v12  ;;  %vm1501_vm7 = vcmp.gt.f32.partialorder %v1397_v50, 0.01  ;;  %v1565_v41 = vsel %vm1533_vm3, %v1549_v55, 0.0  ;;  %v1148_v6 = vsel %vm1116_vm4, %v1132_v59, 0.0 }
 0x258   :  { %v1380_v39 = vadd.f32 %v6053_v10, %v1356_v45  ;;  %v1581_v0 = vsel %vm1501_vm7, %v4291_v27, %v1565_v41  ;;  %v764_v30 = vsel %vm732_vm5, %v748_v42, 0.0  ;;  %vm699_vm8 = vcmp.gt.f32.partialorder %v7447_v57, 0.01  ;;  %v2006_v12 = vld [vmem:[#allocation7 + $0x2c0] sm:$0xff]  ;;  %v1999_v33 = vld [vmem:[#allocation7 + $0x288] sm:$0xff]  ;;  %v7454_v27 = vld [vmem:[#allocation30_spill] sm:$0xff] }
 0x259   :  { %v747_v61 = vadd.f32 0.01, %v7447_v57  ;;  %v1597_v38 = vadd.f32 %v1581_v0, %v1181_v37  ;;  %v1131_v32 = vadd.f32 0.01, %v7448_v31  ;;  %v1315_v5 = vmul.f32 %v5182_v13, %v7448_v31  ;;  %2183 = vmatpush1.msra.mxu0 %v2006_v12  ;;  %v1998_v14 = vld [vmem:[#allocation7 + $0x280] sm:$0xff]  ;;  %v1991_v36 = vld [vmem:[#allocation7 + $0x248] sm:$0xff] }
 0x25a   :  { %v1396_v54 = vmax.f32 %v1380_v39, 0.0  ;;  %v1164_v34 = vsel %vm1084_vm6, %v4258_v3, %v1148_v6  ;;  %vm731_vm9 = vcmp.lt.f32.partialorder %v7447_v57, -0.01  ;;  %vm1115_vm10 = vcmp.lt.f32.partialorder %v7448_v31, -0.01  ;;  %2184 = vmatprep.subr.mxu0 %v1999_v33  ;;  %v1990_v6 = vld [vmem:[#allocation7 + $0x240] sm:$0xff] }
 0x25b   :  { %v1339_v46 = vmul.f32 %v5190_v17, %v7449_v28  ;;  %v1613_v18 = vadd.f32 %v1597_v38, %v7450_v40  ;;  %v4225_v62 = vadd.f32 -0.01, %v7447_v57  ;;  %v780_v23 = vsel %vm700_vm2, %v4226_v49, %v764_v30  ;;  %2185 = vmatpush1.msra.mxu0 %v1998_v14  ;;  %v1959_v33 = vld [vmem:[#allocation7 + $0x148] sm:$0xff]  ;;  %v1958_v14 = vld [vmem:[#allocation7 + $0x140] sm:$0xff] }
 0x25c   :  { %v4290_v22 = vadd.f32 -0.01, %v1396_v54  ;;  %vm1532_vm11 = vcmp.lt.f32.partialorder %v1396_v54, -0.01  ;;  %v1548_v58 = vadd.f32 0.01, %v1396_v54  ;;  %v1180_v9 = vadd.f32 %v1164_v34, %v780_v23  ;;  %2186 = vmatprep.subr.mxu0 %v1991_v36 }
 0x25d   :  { %vm1083_vm12 = vcmp.gt.f32.partialorder %v7448_v31, 0.01  ;;  %v1355_v44 = vsub.f32 %v1315_v5, %v1339_v46  ;;  %1785 = vmatprep.subr.mxu1 %v1613_v18  ;;  %v763_v8 = vsel %vm731_vm9, %v747_v61, 0.0  ;;  %v4257_v52 = vadd.f32 -0.01, %v7448_v31  ;;  %2187 = vmatpush1.msra.mxu0 %v1990_v6  ;;  %v7456_v31 = vld [vmem:[#allocation82_spill] sm:$0xff] }
 0x25e   :  { %v1147_v25 = vsel %vm1115_vm10, %v1131_v32, 0.0  ;;  %vm1500_vm13 = vcmp.gt.f32.partialorder %v1396_v54, 0.01  ;;  %v1564_v1 = vsel %vm1532_vm11, %v1548_v58, 0.0  ;;  %v746_v35 = vadd.f32 0.01, %v7451_v20 }
 0x25f   :  { %v1379_v60 = vadd.f32 %v5980_v48, %v1355_v44  ;;  %v1580_v56 = vsel %vm1500_vm13, %v4290_v22, %v1564_v1  ;;  %v1130_v50 = vadd.f32 0.01, %v7452_v15  ;;  %v1314_v4 = vmul.f32 %v5158_v63, %v7452_v15  ;;  %v1983_v5 = vld [vmem:[#allocation7 + $0x208] sm:$0xff]  ;;  %v7457_v34 = vld [vmem:[#allocation77_spill] sm:$0xff]  ;;  %v1982_v22 = vld [vmem:[#allocation7 + $0x200] sm:$0xff] }
 0x260   :  { %v1338_v42 = vmul.f32 %v5167_v7, %v7453_v51  ;;  %v1596_v59 = vadd.f32 %v1580_v56, %v1180_v9  ;;  %v779_v24 = vsel %vm699_vm8, %v4225_v62, %v763_v8  ;;  %vm1114_vm14 = vcmp.lt.f32.partialorder %v7452_v15, -0.01  ;;  %2188 = vmatprep.subr.mxu0 %v1983_v5  ;;  %v1975_v62 = vld [vmem:[#allocation7 + $0x1c8] sm:$0xff]  ;;  %v7458_v23 = vld [vmem:[#allocation29_spill] sm:$0xff]  ;;  %v1974_v9 = vld [vmem:[#allocation7 + $0x1c0] sm:$0xff] }
 0x261   :  { %v1395_v16 = vmax.f32 %v1379_v60, 0.0  ;;  %v1163_v43 = vsel %vm1083_vm12, %v4257_v52, %v1147_v25  ;;  %vm698_vm15 = vcmp.gt.f32.partialorder %v7451_v20, 0.01  ;;  %vm730_vm1 = vcmp.lt.f32.partialorder %v7451_v20, -0.01  ;;  %2189 = vmatpush1.msra.mxu0 %v1982_v22  ;;  %v1967_v1 = vld [vmem:[#allocation7 + $0x188] sm:$0xff] }
 0x262   :  { %v1354_v47 = vsub.f32 %v1314_v4, %v1338_v42  ;;  %v1612_v21 = vadd.f32 %v1596_v59, %v7454_v27  ;;  %v4256_v45 = vadd.f32 -0.01, %v7452_v15  ;;  %v4224_v49 = vadd.f32 -0.01, %v7451_v20  ;;  %2190 = vmatprep.subr.mxu0 %v1975_v62  ;;  %v7459_v4 = vld [vmem:[#allocation75_spill] sm:$0xff]  ;;  %v7460_v42 = vld [vmem:[#allocation78_spill] sm:$0xff] }
 0x263   :  { %v4289_v55 = vadd.f32 -0.01, %v1395_v16  ;;  %vm1531_vm2 = vcmp.lt.f32.partialorder %v1395_v16, -0.01  ;;  %v1547_v37 = vadd.f32 0.01, %v1395_v16  ;;  %v1179_v39 = vadd.f32 %v1163_v43, %v779_v24  ;;  %2191 = vmatpush1.msra.mxu0 %v1974_v9 }
 0x264   :  { %v1146_v3 = vsel %vm1114_vm14, %v1130_v50, 0.0  ;;  %v1378_v41 = vadd.f32 %v6053_v10, %v1354_v47  ;;  %1786 = vmatpush1.msra.mxu1 %v1612_v21  ;;  %v762_v53 = vsel %vm730_vm1, %v746_v35, 0.0  ;;  %vm1082_vm3 = vcmp.gt.f32.partialorder %v7452_v15, 0.01  ;;  %2192 = vmatprep.subr.mxu0 %v1967_v1  ;;  %v1966_v50 = vld [vmem:[#allocation7 + $0x180] sm:$0xff]  ;;  %v7462_v43 = vld [vmem:[#allocation28_spill] sm:$0xff] }
 0x265   :  { %v1313_v0 = vmul.f32 %v5182_v13, %v7455_v26  ;;  %vm1499_vm4 = vcmp.gt.f32.partialorder %v1395_v16, 0.01  ;;  %v1563_v30 = vsel %vm1531_vm2, %v1547_v37, 0.0  ;;  %v1129_v61 = vadd.f32 0.01, %v7455_v26  ;;  %v7461_v24 = vld [vmem:[#allocation79_spill] sm:$0xff]  ;;  %2193 = vmatpush1.msra.mxu0 %v1966_v50 }
 0x266   :  { %v1394_v57 = vmax.f32 %v1378_v41, 0.0  ;;  %v1579_v38 = vsel %vm1499_vm4, %v4289_v55, %v1563_v30  ;;  %v1162_v54 = vsel %vm1082_vm3, %v4256_v45, %v1146_v3  ;;  %vm1113_vm5 = vcmp.lt.f32.partialorder %v7455_v26, -0.01  ;;  %2194 = vmatprep.subr.mxu0 %v1959_v33  ;;  %v7463_v30 = vld [vmem:[#allocation70_spill] sm:$0xff]  ;;  %v1942_v5 = vld [vmem:[#allocation7 + $0xc0] sm:$0xff] }
 0x267   :  { %v1337_v32 = vmul.f32 %v5190_v17, %v7456_v31  ;;  %v1595_v29 = vadd.f32 %v1579_v38, %v1179_v39  ;;  %v745_v28 = vadd.f32 0.01, %v7457_v34  ;;  %v4255_v40 = vadd.f32 -0.01, %v7455_v26  ;;  %2195 = vmatpush1.msra.mxu0 %v1958_v14  ;;  %v1951_v39 = vld [vmem:[#allocation7 + $0x108] sm:$0xff]  ;;  %v7469_v33 = vld [vmem:[#allocation59_spill] sm:$0xff] }
 0x268   :  { %v4288_v11 = vadd.f32 -0.01, %v1394_v57  ;;  %vm1530_vm6 = vcmp.lt.f32.partialorder %v1394_v57, -0.01  ;;  %v1546_v46 = vadd.f32 0.01, %v1394_v57  ;;  %v778_v44 = vsel %vm698_vm15, %v4224_v49, %v762_v53  ;;  %2196 = vmatprep.subr.mxu0 %v1951_v39 }
 0x269   :  { %v1353_v18 = vsub.f32 %v1313_v0, %v1337_v32  ;;  %v1611_v58 = vadd.f32 %v1595_v29, %v7458_v23  ;;  %vm729_vm7 = vcmp.lt.f32.partialorder %v7457_v34, -0.01  ;;  %v1145_v2 = vsel %vm1113_vm5, %v1129_v61, 0.0  ;;  %v1950_v53 = vld [vmem:[#allocation7 + $0x100] sm:$0xff]  ;;  %v1943_v32 = vld [vmem:[#allocation7 + $0xc8] sm:$0xff]  ;;  %v7471_v39 = vld [vmem:[#allocation66_spill] sm:$0xff] }
 0x26a   :  { %v1178_v8 = vadd.f32 %v1162_v54, %v778_v44  ;;  %vm1498_vm8 = vcmp.gt.f32.partialorder %v1394_v57, 0.01  ;;  %v1562_v52 = vsel %vm1530_vm6, %v1546_v46, 0.0  ;;  %vm697_vm9 = vcmp.gt.f32.partialorder %v7457_v34, 0.01  ;;  %v7464_v54 = vld [vmem:[#allocation73_spill] sm:$0xff]  ;;  %2197 = vmatpush1.msra.mxu0 %v1950_v53 }
 0x26b   :  { %v1377_v25 = vadd.f32 %v5980_v48, %v1353_v18  ;;  %1787 = vmatprep.subr.mxu1 %v1611_v58  ;;  %v1578_v60 = vsel %vm1498_vm8, %v4288_v11, %v1562_v52  ;;  %v4223_v20 = vadd.f32 -0.01, %v7457_v34  ;;  %vm1081_vm10 = vcmp.gt.f32.partialorder %v7455_v26, 0.01  ;;  %v7465_v34 = vld [vmem:[#allocation74_spill] sm:$0xff]  ;;  %2198 = vmatprep.subr.mxu0 %v1943_v32  ;;  %v7466_v46 = vld [vmem:[#allocation27_spill] sm:$0xff] }
 0x26c   :  { %v1594_v35 = vadd.f32 %v1578_v60, %v1178_v8  ;;  %v761_v19 = vsel %vm729_vm7, %v745_v28, 0.0  ;;  %v1161_v56 = vsel %vm1081_vm10, %v4255_v40, %v1145_v2  ;;  %v744_v51 = vadd.f32 0.01, %v7459_v4  ;;  %2199 = vmatpush1.msra.mxu0 %v1942_v5  ;;  %v1935_v44 = vld [vmem:[#allocation7 + $0x88] sm:$0xff]  ;;  %v1934_v60 = vld [vmem:[#allocation7 + $0x80] sm:$0xff] }
 0x26d   :  { %v1393_v15 = vmax.f32 %v1377_v25, 0.0  ;;  %v1128_v12 = vadd.f32 0.01, %v7460_v42  ;;  %v1312_v59 = vmul.f32 %v5158_v63, %v7460_v42  ;;  %v1336_v16 = vmul.f32 %v5167_v7, %v7461_v24  ;;  %2200 = vmatprep.subr.mxu0 %v1935_v44  ;;  %v1919_v24 = vld [vmem:[#allocation7 + $0x8] sm:$0xff]  ;;  %v2166_v32 = vld [vmem:[#allocation7 + $0x7c0] sm:$0xff] }
 0x26e   :  { %v1610_v47 = vadd.f32 %v1594_v35, %v7462_v43  ;;  %vm1112_vm12 = vcmp.lt.f32.partialorder %v7460_v42, -0.01  ;;  %v777_v27 = vsel %vm697_vm9, %v4223_v20, %v761_v19  ;;  %vm728_vm13 = vcmp.lt.f32.partialorder %v7459_v4, -0.01  ;;  %v7467_v35 = vld [vmem:[#allocation69_spill] sm:$0xff]  ;;  %2201 = vmatpush1.msra.mxu0 %v1934_v60 }
 0x26f   :  { %v4287_v36 = vadd.f32 -0.01, %v1393_v15  ;;  %vm1529_vm11 = vcmp.lt.f32.partialorder %v1393_v15, -0.01  ;;  %v1545_v21 = vadd.f32 0.01, %v1393_v15  ;;  %v1352_v55 = vsub.f32 %v1312_v59, %v1336_v16 }
 0x270   :  { %1788 = vmatpush1.msra.mxu1 %v1610_v47  ;;  %v1177_v45 = vadd.f32 %v1161_v56, %v777_v27  ;;  %vm696_vm14 = vcmp.gt.f32.partialorder %v7459_v4, 0.01  ;;  %v4222_v37 = vadd.f32 -0.01, %v7459_v4  ;;  %v4254_v49 = vadd.f32 -0.01, %v7460_v42 }
 0x271   :  { %vm1497_vm15 = vcmp.gt.f32.partialorder %v1393_v15, 0.01  ;;  %v1561_v3 = vsel %vm1529_vm11, %v1545_v21, 0.0  ;;  %v1144_v41 = vsel %vm1112_vm12, %v1128_v12, 0.0  ;;  %v1376_v6 = vadd.f32 %v6053_v10, %v1352_v55  ;;  %v7468_v15 = vld [vmem:[#allocation71_spill] sm:$0xff]  ;;  %v1927_v4 = vld [vmem:[#allocation7 + $0x48] sm:$0xff] }
 0x272   :  { %v1577_v26 = vsel %vm1497_vm15, %v4287_v36, %v1561_v3  ;;  %v760_v0 = vsel %vm728_vm13, %v744_v51, 0.0  ;;  %vm1080_vm1 = vcmp.gt.f32.partialorder %v7460_v42, 0.01  ;;  %vm695_vm2 = vcmp.gt.f32.partialorder %v7463_v30, 0.01  ;;  %2202 = vmatprep.subr.mxu0 %v1927_v4  ;;  %v1926_v59 = vld [vmem:[#allocation7 + $0x40] sm:$0xff] }
 0x273   :  { %v1593_v57 = vadd.f32 %v1577_v26, %v1177_v45  ;;  %v1392_v61 = vmax.f32 %v1376_v6, 0.0  ;;  %v743_v38 = vadd.f32 0.01, %v7463_v30  ;;  %v1311_v31 = vmul.f32 %v5182_v13, %v7464_v54  ;;  %2203 = vmatpush1.msra.mxu0 %v1926_v59  ;;  %v1918_v47 = vld [vmem:[#allocation7] sm:$0xff]  ;;  %v7470_v36 = vld [vmem:[#allocation26_spill] sm:$0xff]  ;;  %v2167_v3 = vld [vmem:[#allocation7 + $0x7c8] sm:$0xff] }
 0x274   :  { %v1160_v29 = vsel %vm1080_vm1, %v4254_v49, %v1144_v41  ;;  %vm727_vm3 = vcmp.lt.f32.partialorder %v7463_v30, -0.01  ;;  %v1127_v11 = vadd.f32 0.01, %v7464_v54  ;;  %v1335_v28 = vmul.f32 %v5190_v17, %v7465_v34  ;;  %2204 = vmatprep.subr.mxu0 %v1919_v24  ;;  %v7473_v34 = vld [vmem:[#allocation54_spill] sm:$0xff]  ;;  %v2142_v4 = vld [vmem:[#allocation7 + $0x700] sm:$0xff] }
 0x275   :  { %v1609_v40 = vadd.f32 %v1593_v57, %v7466_v46  ;;  %v4286_v18 = vadd.f32 -0.01, %v1392_v61  ;;  %vm1528_vm4 = vcmp.lt.f32.partialorder %v1392_v61, -0.01  ;;  %vm1111_vm5 = vcmp.lt.f32.partialorder %v7464_v54, -0.01  ;;  %2205 = vmatpush1.msra.mxu0 %v1918_v47 }
 0x276   :  { %v776_v22 = vsel %vm696_vm14, %v4222_v37, %v760_v0  ;;  %v1544_v62 = vadd.f32 0.01, %v1392_v61  ;;  %v4221_v23 = vadd.f32 -0.01, %v7463_v30  ;;  %v1351_v58 = vsub.f32 %v1311_v31, %v1335_v28  ;;  %2206 = vmatprep.subr.mxu0 %v2167_v3 }
 0x277   :  { %1789 = vmatprep.subr.mxu1 %v1609_v40  ;;  %v1176_v2 = vadd.f32 %v1160_v29, %v776_v22  ;;  %v759_v9 = vsel %vm727_vm3, %v743_v38, 0.0  ;;  %vm1079_vm6 = vcmp.gt.f32.partialorder %v7464_v54, 0.01  ;;  %v4253_v8 = vadd.f32 -0.01, %v7464_v54  ;;  %v7472_v54 = vld [vmem:[#allocation67_spill] sm:$0xff]  ;;  %2207 = vmatpush2.msra.mxu0 %v2166_v32 }
 0x278   :  { %vm1496_vm7 = vcmp.gt.f32.partialorder %v1392_v61, 0.01  ;;  %v1560_v52 = vsel %vm1528_vm4, %v1544_v62, 0.0  ;;  %v1143_v25 = vsel %vm1111_vm5, %v1127_v11, 0.0  ;;  %v1375_v1 = vadd.f32 %v5980_v48, %v1351_v58  ;;  %v2159_v40 = vld [vmem:[#allocation7 + $0x788] sm:$0xff]  ;;  %v7474_v22 = vld [vmem:[#allocation25_spill] sm:$0xff] }
 0x279   :  { %v1576_v20 = vsel %vm1496_vm7, %v4286_v18, %v1560_v52  ;;  %v1126_v19 = vadd.f32 0.01, %v7467_v35  ;;  %v1310_v56 = vmul.f32 %v5158_v63, %v7467_v35  ;;  %v1334_v50 = vmul.f32 %v5167_v7, %v7468_v15  ;;  %v2158_v18 = vld [vmem:[#allocation7 + $0x780] sm:$0xff]  ;;  %2208 = vmatprep.subr.mxu0 %v2159_v40  ;;  %v2151_v58 = vld [vmem:[#allocation7 + $0x748] sm:$0xff]  ;;  %v7476_v15 = vld [vmem:[#allocation61_spill] sm:$0xff] }
 0x27a   :  { %v1592_v51 = vadd.f32 %v1576_v20, %v1176_v2  ;;  %v775_v42 = vsel %vm695_vm2, %v4221_v23, %v759_v9  ;;  %v1391_v12 = vmax.f32 %v1375_v1, 0.0  ;;  %vm1110_vm8 = vcmp.lt.f32.partialorder %v7467_v35, -0.01  ;;  %2209 = vmatpush2.msra.mxu0 %v2158_v18  ;;  %v2086_v40 = vld [vmem:[#allocation7 + $0x540] sm:$0xff] }
 0x27b   :  { %v1159_v16 = vsel %vm1079_vm6, %v4253_v8, %v1143_v25  ;;  %vm726_vm9 = vcmp.lt.f32.partialorder %v7469_v33, -0.01  ;;  %v742_v14 = vadd.f32 0.01, %v7469_v33  ;;  %v1350_v43 = vsub.f32 %v1310_v56, %v1334_v50  ;;  %v2150_v8 = vld [vmem:[#allocation7 + $0x740] sm:$0xff]  ;;  %2210 = vmatprep.subr.mxu0 %v2151_v58  ;;  %v7475_v56 = vld [vmem:[#allocation60_spill] sm:$0xff] }
 0x27c   :  { %v1608_v27 = vadd.f32 %v1592_v51, %v7470_v36  ;;  %v4285_v21 = vadd.f32 -0.01, %v1391_v12  ;;  %vm1527_vm10 = vcmp.lt.f32.partialorder %v1391_v12, -0.01  ;;  %v4252_v55 = vadd.f32 -0.01, %v7467_v35  ;;  %2211 = vmatpush2.msra.mxu0 %v2150_v8 }
 0x27d   :  { %v1543_v45 = vadd.f32 0.01, %v1391_v12  ;;  %vm694_vm11 = vcmp.gt.f32.partialorder %v7469_v33, 0.01  ;;  %v1142_v37 = vsel %vm1110_vm8, %v1126_v19, 0.0  ;;  %v1374_v49 = vadd.f32 %v6053_v10, %v1350_v43  ;;  %v2135_v51 = vld [vmem:[#allocation7 + $0x6c8] sm:$0xff] }
 0x27e   :  { %1790 = vmatpush1.msra.mxu1 %v1608_v27  ;;  %v1175_v41 = vadd.f32 %v1159_v16, %v775_v42  ;;  %v4220_v6 = vadd.f32 -0.01, %v7469_v33  ;;  %vm1078_vm12 = vcmp.gt.f32.partialorder %v7467_v35, 0.01  ;;  %v1309_v53 = vmul.f32 %v5182_v13, %v7471_v39  ;;  %v2143_v35 = vld [vmem:[#allocation7 + $0x708] sm:$0xff]  ;;  %v2126_v27 = vld [vmem:[#allocation7 + $0x680] sm:$0xff] }
 0x27f   :  { %vm1495_vm13 = vcmp.gt.f32.partialorder %v1391_v12, 0.01  ;;  %v1559_v26 = vsel %vm1527_vm10, %v1543_v45, 0.0  ;;  %v758_v0 = vsel %vm726_vm9, %v742_v14, 0.0  ;;  %v1390_v30 = vmax.f32 %v1374_v49, 0.0  ;;  %2212 = vmatprep.subr.mxu0 %v2143_v35  ;;  %v7477_v42 = vld [vmem:[#allocation24_spill] sm:$0xff] }
 0x280   :  { %v1575_v57 = vsel %vm1495_vm13, %v4285_v21, %v1559_v26  ;;  %v1158_v61 = vsel %vm1078_vm12, %v4252_v55, %v1142_v37  ;;  %v1125_v38 = vadd.f32 0.01, %v7471_v39  ;;  %v1333_v31 = vmul.f32 %v5190_v17, %v7472_v54  ;;  %2213 = vmatpush2.msra.mxu0 %v2142_v4  ;;  %v2127_v36 = vld [vmem:[#allocation7 + $0x688] sm:$0xff]  ;;  %v2024_v35 = vld [vmem:[#allocation7 + $0x350] sm:$0xff]  ;;  %v2009_v4 = vld [vmem:[#allocation7 + $0x2d8] sm:$0xff] }
 0x281   :  { %v1591_v5 = vadd.f32 %v1575_v57, %v1175_v41  ;;  %v4284_v29 = vadd.f32 -0.01, %v1390_v30  ;;  %vm1526_vm14 = vcmp.lt.f32.partialorder %v1390_v30, -0.01  ;;  %vm1109_vm15 = vcmp.lt.f32.partialorder %v7471_v39, -0.01  ;;  %2214 = vmatprep.subr.mxu0 %v2135_v51 }
 0x282   :  { %v774_v13 = vsel %vm694_vm11, %v4220_v6, %v758_v0  ;;  %v1542_v11 = vadd.f32 0.01, %v1390_v30  ;;  %v741_v28 = vadd.f32 0.01, %v7473_v34  ;;  %v1349_v46 = vsub.f32 %v1309_v53, %v1333_v31  ;;  %v2119_v37 = vld [vmem:[#allocation7 + $0x648] sm:$0xff]  ;;  %v2118_v41 = vld [vmem:[#allocation7 + $0x640] sm:$0xff] }
 0x283   :  { %v1607_v62 = vadd.f32 %v1591_v5, %v7474_v22  ;;  %v1174_v23 = vadd.f32 %v1158_v61, %v774_v13  ;;  %vm725_vm1 = vcmp.lt.f32.partialorder %v7473_v34, -0.01  ;;  %v4251_v17 = vadd.f32 -0.01, %v7471_v39  ;;  %v2111_v6 = vld [vmem:[#allocation7 + $0x608] sm:$0xff]  ;;  %v2110_v0 = vld [vmem:[#allocation7 + $0x600] sm:$0xff] }
 0x284   :  { %vm1494_vm2 = vcmp.gt.f32.partialorder %v1390_v30, 0.01  ;;  %v1558_v44 = vsel %vm1526_vm14, %v1542_v11, 0.0  ;;  %v1141_v2 = vsel %vm1109_vm15, %v1125_v38, 0.0  ;;  %v1373_v9 = vadd.f32 %v5980_v48, %v1349_v46  ;;  %v7479_v57 = vld [vmem:[#allocation23_spill] sm:$0xff]  ;;  %v2095_v5 = vld [vmem:[#allocation7 + $0x588] sm:$0xff] }
 0x285   :  { %1791 = vmatprep.subr.mxu1 %v1607_v62  ;;  %v1574_v52 = vsel %vm1494_vm2, %v4284_v29, %v1558_v44  ;;  %v4219_v25 = vadd.f32 -0.01, %v7473_v34  ;;  %v757_v60 = vsel %vm725_vm1, %v741_v28, 0.0  ;;  %vm1077_vm3 = vcmp.gt.f32.partialorder %v7471_v39, 0.01  ;;  %v2102_v31 = vld [vmem:[#allocation7 + $0x5c0] sm:$0xff] }
 0x286   :  { %v1590_v1 = vadd.f32 %v1574_v52, %v1174_v23  ;;  %v1389_v20 = vmax.f32 %v1373_v9, 0.0  ;;  %vm693_vm4 = vcmp.gt.f32.partialorder %v7473_v34, 0.01  ;;  %v1157_v19 = vsel %vm1077_vm3, %v4251_v17, %v1141_v2  ;;  %v2094_v13 = vld [vmem:[#allocation7 + $0x580] sm:$0xff]  ;;  %v2087_v28 = vld [vmem:[#allocation7 + $0x548] sm:$0xff]  ;;  %v7480_v23 = vld [vmem:[#allocation22_spill] sm:$0xff] }
 0x287   :  { %v1308_v48 = vmul.f32 %v5158_v63, %v7475_v56  ;;  %v1332_v50 = vmul.f32 %v5167_v7, %v7476_v15  ;;  %v1124_v24 = vadd.f32 0.01, %v7475_v56  ;;  %v773_v16 = vsel %vm693_vm4, %v4219_v25, %v757_v60  ;;  %v2134_v63 = vld [vmem:[#allocation7 + $0x6c0] sm:$0xff]  ;;  %v2079_v22 = vld [vmem:[#allocation7 + $0x508] sm:$0xff]  ;;  %v2041_v44 = vld [vmem:[#allocation7 + $0x3d8] sm:$0xff] }
 0x288   :  { %v1606_v12 = vadd.f32 %v1590_v1, %v7477_v42  ;;  %v4283_v59 = vadd.f32 -0.01, %v1389_v20  ;;  %vm1525_vm5 = vcmp.lt.f32.partialorder %v1389_v20, -0.01  ;;  %v1541_v33 = vadd.f32 0.01, %v1389_v20  ;;  %2215 = vmatpush2.msra.mxu0 %v2134_v63 }
 0x289   :  { %vm1108_vm6 = vcmp.lt.f32.partialorder %v7475_v56, -0.01  ;;  %v1348_v14 = vsub.f32 %v1308_v48, %v1332_v50  ;;  %v1173_v43 = vadd.f32 %v1157_v19, %v773_v16  ;;  %v7478_v7 = vld [vmem:[#allocation47_spill] sm:$0xff]  ;;  %vm1493_vm8 = vcmp.gt.f32.partialorder %v1389_v20, 0.01  ;;  %2216 = vmatprep.subr.mxu0 %v2127_v36  ;;  %v1748_v58 = vld [vmem:[#allocation6] sm:$0xff] }
 0x28a   :  { %1792 = vmatpush1.msra.mxu1 %v1606_v12  ;;  %vm724_vm7 = vcmp.lt.f32.partialorder %v7478_v7, -0.01  ;;  %v740_v47 = vadd.f32 0.01, %v7478_v7  ;;  %v1557_v21 = vsel %vm1525_vm5, %v1541_v33, 0.0  ;;  %v1140_v3 = vsel %vm1108_vm6, %v1124_v24, 0.0  ;;  %2217 = vmatpush2.msra.mxu0 %v2126_v27 }
 0x28b   :  { %v4250_v55 = vadd.f32 -0.01, %v7475_v56  ;;  %v1372_v45 = vadd.f32 %v6053_v10, %v1348_v14  ;;  %v1573_v49 = vsel %vm1493_vm8, %v4283_v59, %v1557_v21  ;;  %v4218_v53 = vadd.f32 -0.01, %v7478_v7  ;;  %2218 = vmatprep.subr.mxu0 %v2119_v37  ;;  %v2103_v10 = vld [vmem:[#allocation7 + $0x5c8] sm:$0xff]  ;;  %v2078_v62 = vld [vmem:[#allocation7 + $0x500] sm:$0xff] }
 0x28c   :  { %v1589_v39 = vadd.f32 %v1573_v49, %v1173_v43  ;;  %v756_v30 = vsel %vm724_vm7, %v740_v47, 0.0  ;;  %vm1076_vm9 = vcmp.gt.f32.partialorder %v7475_v56, 0.01  ;;  %2219 = vmatpush2.msra.mxu0 %v2118_v41  ;;  %vm692_vm11 = vcmp.gt.f32.partialorder %v7478_v7, 0.01  ;;  %v2040_v2 = vld [vmem:[#allocation7 + $0x3d0] sm:$0xff] }
 0x28d   :  { %v1388_v26 = vmax.f32 %v1372_v45, 0.0  ;;  %v1156_v38 = vsel %vm1076_vm9, %v4250_v55, %v1140_v3  ;;  %2220 = vmatprep.subr.mxu0 %v2111_v6  ;;  %v772_v29 = vsel %vm692_vm11, %v4218_v53, %v756_v30  ;;  %v2033_v9 = vld [vmem:[#allocation7 + $0x398] sm:$0xff]  ;;  %v2071_v8 = vld [vmem:[#allocation7 + $0x4c8] sm:$0xff]  ;;  %v2032_v52 = vld [vmem:[#allocation7 + $0x390] sm:$0xff]  ;;  %v7481_v1 = vmov 0.0  }
 0x28e   :  { %v1605_v61 = vadd.f32 %v1589_v39, %v7479_v57  ;;  %2221 = vmatpush2.msra.mxu0 %v2110_v0  ;;  %v1172_v11 = vadd.f32 %v1156_v38, %v772_v29  ;;  %v2070_v25 = vld [vmem:[#allocation7 + $0x4c0] sm:$0xff]  ;;  %v1749_v60 = vld [vmem:[#allocation6 + $0x8] sm:$0xff]  ;;  %v2025_v20 = vld [vmem:[#allocation7 + $0x358] sm:$0xff]  ;;  %vm4191_vm2 = vcmask 11264  }
 0x28f   :  { %v4282_v54 = vadd.f32 -0.01, %v1388_v26  ;;  %vm1524_vm10 = vcmp.lt.f32.partialorder %v1388_v26, -0.01  ;;  %v1540_v32 = vadd.f32 0.01, %v1388_v26  ;;  %2222 = vmatprep.subr.mxu0 %v2103_v10 }
 0x290   :  { %1793 = vmatprep.subr.mxu1 %v1605_v61  ;;  %vm1492_vm12 = vcmp.gt.f32.partialorder %v1388_v26, 0.01  ;;  %2223 = vmatpush2.msra.mxu0 %v2102_v31  ;;  %v2017_v19 = vld [vmem:[#allocation7 + $0x318] sm:$0xff]  ;;  %v2063_v56 = vld [vmem:[#allocation7 + $0x488] sm:$0xff]  ;;  %v2016_v48 = vld [vmem:[#allocation7 + $0x310] sm:$0xff] }
 0x291   :  { %v1556_v34 = vsel %vm1524_vm10, %v1540_v32, 0.0  ;;  %2224 = vmatprep.subr.mxu0 %v2095_v5  ;;  %v2062_v15 = vld [vmem:[#allocation7 + $0x480] sm:$0xff]  ;;  %v1750_v50 = vld [vmem:[#allocation6 + $0x10] sm:$0xff]  ;;  %v2008_v51 = vld [vmem:[#allocation7 + $0x2d0] sm:$0xff] }
 0x292   :  { %v1572_v46 = vsel %vm1492_vm12, %v4282_v54, %v1556_v34  ;;  %2225 = vmatpush2.msra.mxu0 %v2094_v13  ;;  %v2001_v42 = vld [vmem:[#allocation7 + $0x298] sm:$0xff]  ;;  %v2055_v12 = vld [vmem:[#allocation7 + $0x448] sm:$0xff]  ;;  %v2000_v59 = vld [vmem:[#allocation7 + $0x290] sm:$0xff] }
 0x293   :  { %v1588_v18 = vadd.f32 %v1572_v46, %v1172_v11  ;;  %2226 = vmatprep.subr.mxu0 %v2087_v28  ;;  %v1751_v24 = vld [vmem:[#allocation6 + $0x18] sm:$0xff]  ;;  %v1993_v16 = vld [vmem:[#allocation7 + $0x258] sm:$0xff]  ;;  %v1992_v33 = vld [vmem:[#allocation7 + $0x250] sm:$0xff] }
 0x294   :  { %2227 = vmatpush2.msra.mxu0 %v2086_v40  ;;  %v1985_v14 = vld [vmem:[#allocation7 + $0x218] sm:$0xff]  ;;  %v1984_v63 = vld [vmem:[#allocation7 + $0x210] sm:$0xff]  ;;  %v1752_v43 = vld [vmem:[#allocation6 + $0x20] sm:$0xff] }
 0x295   :  { %v1604_v17 = vadd.f32 %v1588_v18, %v7480_v23  ;;  %2228 = vmatprep.subr.mxu0 %v2079_v22  ;;  %v1977_v7 = vld [vmem:[#allocation7 + $0x1d8] sm:$0xff]  ;;  %v1976_v47 = vld [vmem:[#allocation7 + $0x1d0] sm:$0xff]  ;;  %v1755_v26 = vld [vmem:[#allocation6 + $0x38] sm:$0xff] }
 0x296   :  { %2229 = vmatpush2.msra.mxu0 %v2078_v62  ;;  %v1969_v36 = vld [vmem:[#allocation7 + $0x198] sm:$0xff]  ;;  %v1968_v27 = vld [vmem:[#allocation7 + $0x190] sm:$0xff]  ;;  %v1756_v61 = vld [vmem:[#allocation6 + $0x40] sm:$0xff] }
 0x297   :  { %1794 = vmatpush1.msra.mxu1 %v1604_v17  ;;  %2230 = vmatprep.subr.mxu0 %v2071_v8  ;;  %v1753_v21 = vld [vmem:[#allocation6 + $0x28] sm:$0xff]  ;;  %v1961_v55 = vld [vmem:[#allocation7 + $0x158] sm:$0xff]  ;;  %v1759_v62 = vld [vmem:[#allocation6 + $0x58] sm:$0xff] }
 0x298   :  { %1828 = vmatmul.mubr.f32.vlgmr.msra.gmra.mxu1 %v1748_v58  ;;  %2329 = vmatprep.subr.mxu1 %v2041_v44  ;;  %v1960_v45 = vld [vmem:[#allocation7 + $0x150] sm:$0xff]  ;;  %v1953_v37 = vld [vmem:[#allocation7 + $0x118] sm:$0xff] }
 0x299   :  { %1833 = vmatprep.mubr.f32.mxu1 %v7481_v1  ;;  %2330 = vmatpush1.msra.mxu1 %v2040_v2  ;;  %v1952_v49 = vld [vmem:[#allocation7 + $0x110] sm:$0xff]  ;;  %v1754_v3 = vld [vmem:[#allocation6 + $0x30] sm:$0xff]  ;;  %v1760_v2 = vld [vmem:[#allocation6 + $0x60] sm:$0xff] }
 0x29a   :  { %2331 = vmatprep.subr.mxu1 %v2033_v9  ;;  %2231 = vmatpush2.msra.mxu0 %v2070_v25  ;;  %v1945_v41 = vld [vmem:[#allocation7 + $0xd8] sm:$0xff]  ;;  %v1944_v6 = vld [vmem:[#allocation7 + $0xd0] sm:$0xff] }
 0x29b   :  { %2332 = vmatpush1.msra.mxu1 %v2032_v52  ;;  %2232 = vmatprep.subr.mxu0 %v2063_v56  ;;  %v1937_v39 = vld [vmem:[#allocation7 + $0x98] sm:$0xff]  ;;  %v1936_v53 = vld [vmem:[#allocation7 + $0x90] sm:$0xff] }
 0x29c   :  { %1834 = vmatmul.mubr.f32.gmra.mxu1 %v1749_v60  ;;  %2333 = vmatprep.subr.mxu1 %v2025_v20  ;;  %v1929_v0 = vld [vmem:[#allocation7 + $0x58] sm:$0xff]  ;;  %v1928_v30 = vld [vmem:[#allocation7 + $0x50] sm:$0xff] }
 0x29d   :  { %1839 = vmatprep.mubr.f32.mxu1 %v7481_v1  ;;  %2334 = vmatpush1.msra.mxu1 %v2024_v35  ;;  %v1921_v10 = vld [vmem:[#allocation7 + $0x18] sm:$0xff]  ;;  %v1920_v57 = vld [vmem:[#allocation7 + $0x10] sm:$0xff] }
 0x29e   :  { %2335 = vmatprep.subr.mxu1 %v2017_v19  ;;  %2233 = vmatpush2.msra.mxu0 %v2062_v15  ;;  %v2169_v38 = vld [vmem:[#allocation7 + $0x7d8] sm:$0xff]  ;;  %v2168_v54 = vld [vmem:[#allocation7 + $0x7d0] sm:$0xff] }
 0x29f   :  { %2336 = vmatpush1.msra.mxu1 %v2016_v48  ;;  %2234 = vmatprep.subr.mxu0 %v2055_v12  ;;  %v2161_v31 = vld [vmem:[#allocation7 + $0x798] sm:$0xff]  ;;  %v2160_v32 = vld [vmem:[#allocation7 + $0x790] sm:$0xff]  ;;  %v2054_v12 = vld [vmem:[#allocation7 + $0x440] sm:$0xff] }
 0x2a0   :  { %1840 = vmatmul.mubr.f32.gmra.mxu1 %v1750_v50  ;;  %2337 = vmatprep.subr.mxu1 %v2009_v4  ;;  %v1757_v5 = vld [vmem:[#allocation6 + $0x48] sm:$0xff]  ;;  %v2153_v29 = vld [vmem:[#allocation7 + $0x758] sm:$0xff] }
 0x2a1   :  { %1845 = vmatprep.mubr.f32.mxu1 %v7481_v1  ;;  %2338 = vmatpush1.msra.mxu1 %v2008_v51  ;;  %v2152_v13 = vld [vmem:[#allocation7 + $0x750] sm:$0xff]  ;;  %v2145_v11 = vld [vmem:[#allocation7 + $0x718] sm:$0xff] }
 0x2a2   :  { %2339 = vmatprep.subr.mxu1 %v2001_v42  ;;  %v2144_v34 = vld [vmem:[#allocation7 + $0x710] sm:$0xff]  ;;  %v1758_v28 = vld [vmem:[#allocation6 + $0x50] sm:$0xff]  ;;  %2235 = vmatpush2.msra.mxu0 %v2054_v12 }
 0x2a3   :  { %2340 = vmatpush1.msra.mxu1 %v2000_v59  ;;  %v2137_v46 = vld [vmem:[#allocation7 + $0x6d8] sm:$0xff]  ;;  %v2136_v40 = vld [vmem:[#allocation7 + $0x6d0] sm:$0xff] }
 0x2a4   :  { %1846 = vmatmul.mubr.f32.gmra.mxu1 %v1751_v24  ;;  %2341 = vmatprep.subr.mxu1 %v1993_v16  ;;  %v2129_v18 = vld [vmem:[#allocation7 + $0x698] sm:$0xff]  ;;  %v2128_v22 = vld [vmem:[#allocation7 + $0x690] sm:$0xff]  ;;  %v2047_v24 = vld [vmem:[#allocation7 + $0x408] sm:$0xff] }
 0x2a5   :  { %1851 = vmatprep.mubr.f32.mxu1 %v7481_v1  ;;  %2342 = vmatpush1.msra.mxu1 %v1992_v33  ;;  %v2121_v23 = vld [vmem:[#allocation7 + $0x658] sm:$0xff]  ;;  %v2120_v17 = vld [vmem:[#allocation7 + $0x650] sm:$0xff]  ;;  %v2046_v33 = vld [vmem:[#allocation7 + $0x400] sm:$0xff] }
 0x2a6   :  { %2343 = vmatprep.subr.mxu1 %v1985_v14  ;;  %v2113_v58 = vld [vmem:[#allocation7 + $0x618] sm:$0xff]  ;;  %v2112_v44 = vld [vmem:[#allocation7 + $0x610] sm:$0xff]  ;;  %2236 = vmatprep.subr.mxu0 %v2047_v24 }
 0x2a7   :  { %2344 = vmatpush1.msra.mxu1 %v1984_v63  ;;  %v2105_v9 = vld [vmem:[#allocation7 + $0x5d8] sm:$0xff]  ;;  %v2104_v8 = vld [vmem:[#allocation7 + $0x5d0] sm:$0xff]  ;;  %2237 = vmatpush2.msra.mxu0 %v2046_v33  ;;  %v2043_v63 = vld [vmem:[#allocation7 + $0x3e8] sm:$0xff] }
 0x2a8   :  { %1852 = vmatmul.mubr.f32.gmra.mxu1 %v1752_v43  ;;  %2345 = vmatprep.subr.mxu1 %v1977_v7  ;;  %v2097_v52 = vld [vmem:[#allocation7 + $0x598] sm:$0xff]  ;;  %v2096_v25 = vld [vmem:[#allocation7 + $0x590] sm:$0xff]  ;;  %v1955_v33 = vld [vmem:[#allocation7 + $0x128] sm:$0xff] }
 0x2a9   :  { %1857 = vmatprep.mubr.f32.mxu1 %v7481_v1  ;;  %2346 = vmatpush1.msra.mxu1 %v1976_v47  ;;  %v1761_v60 = vld [vmem:[#allocation6 + $0x68] sm:$0xff]  ;;  %v2089_v20 = vld [vmem:[#allocation7 + $0x558] sm:$0xff] }
 0x2aa   :  { %2347 = vmatprep.subr.mxu1 %v1969_v36  ;;  %v2088_v35 = vld [vmem:[#allocation7 + $0x550] sm:$0xff]  ;;  %v2081_v19 = vld [vmem:[#allocation7 + $0x518] sm:$0xff]  ;;  %2484 = vmatprep.subr.mxu0 %v2043_v63  ;;  %v2042_v36 = vld [vmem:[#allocation7 + $0x3e0] sm:$0xff] }
 0x2ab   :  { %2348 = vmatpush1.msra.mxu1 %v1968_v27  ;;  %v2080_v56 = vld [vmem:[#allocation7 + $0x510] sm:$0xff]  ;;  %v1762_v48 = vld [vmem:[#allocation6 + $0x70] sm:$0xff]  ;;  %v1954_v63 = vld [vmem:[#allocation7 + $0x120] sm:$0xff] }
 0x2ac   :  { %1858 = vmatmul.mubr.f32.gmra.mxu1 %v1753_v21  ;;  %2349 = vmatprep.subr.mxu1 %v1961_v55  ;;  %v2073_v15 = vld [vmem:[#allocation7 + $0x4d8] sm:$0xff]  ;;  %v2072_v50 = vld [vmem:[#allocation7 + $0x4d0] sm:$0xff]  ;;  %v2035_v21 = vld [vmem:[#allocation7 + $0x3a8] sm:$0xff] }
 0x2ad   :  { %1863 = vmatprep.mubr.f32.mxu1 %v7481_v1  ;;  %2350 = vmatpush1.msra.mxu1 %v1960_v45  ;;  %v2065_v4 = vld [vmem:[#allocation7 + $0x498] sm:$0xff]  ;;  %v2064_v51 = vld [vmem:[#allocation7 + $0x490] sm:$0xff] }
 0x2ae   :  { %2351 = vmatprep.subr.mxu1 %v1953_v37  ;;  %v2057_v42 = vld [vmem:[#allocation7 + $0x458] sm:$0xff]  ;;  %v2056_v59 = vld [vmem:[#allocation7 + $0x450] sm:$0xff]  ;;  %v2034_v37 = vld [vmem:[#allocation7 + $0x3a0] sm:$0xff] }
 0x2af   :  { %2352 = vmatpush1.msra.mxu1 %v1952_v49  ;;  %v2049_v16 = vld [vmem:[#allocation7 + $0x418] sm:$0xff]  ;;  %v2048_v14 = vld [vmem:[#allocation7 + $0x410] sm:$0xff] }
 0x2b0   :  { %1864 = vmatmul.mubr.f32.gmra.mxu1 %v1754_v3  ;;  %2353 = vmatprep.subr.mxu1 %v1945_v41  ;;  %v2045_v43 = vld [vmem:[#allocation7 + $0x3f8] sm:$0xff]  ;;  %v2044_v27 = vld [vmem:[#allocation7 + $0x3f0] sm:$0xff]  ;;  %v2027_v41 = vld [vmem:[#allocation7 + $0x368] sm:$0xff] }
 0x2b1   :  { %1869 = vmatprep.mubr.f32.mxu1 %v7481_v1  ;;  %2354 = vmatpush1.msra.mxu1 %v1944_v6  ;;  %v2037_v55 = vld [vmem:[#allocation7 + $0x3b8] sm:$0xff]  ;;  %v2036_v49 = vld [vmem:[#allocation7 + $0x3b0] sm:$0xff] }
 0x2b2   :  { %2355 = vmatprep.subr.mxu1 %v1937_v39  ;;  %v2029_v6 = vld [vmem:[#allocation7 + $0x378] sm:$0xff]  ;;  %v1964_v24 = vld [vmem:[#allocation7 + $0x170] sm:$0xff] }
 0x2b3   :  { %2356 = vmatpush1.msra.mxu1 %v1936_v53  ;;  %v2026_v53 = vld [vmem:[#allocation7 + $0x360] sm:$0xff] }
 0x2b4   :  { %1870 = vmatmul.mubr.f32.gmra.mxu1 %v1755_v26  ;;  %2357 = vmatprep.subr.mxu1 %v1929_v0  ;;  %v2028_v26 = vld [vmem:[#allocation7 + $0x370] sm:$0xff]  ;;  %v2019_v0 = vld [vmem:[#allocation7 + $0x328] sm:$0xff] }
 0x2b5   :  { %1875 = vmatprep.mubr.f32.mxu1 %v7481_v1  ;;  %2358 = vmatpush1.msra.mxu1 %v1928_v30  ;;  %v2021_v30 = vld [vmem:[#allocation7 + $0x338] sm:$0xff] }
 0x2b6   :  { %2359 = vmatprep.subr.mxu1 %v1921_v10 }
 0x2b7   :  { %2360 = vmatpush1.msra.mxu1 %v1920_v57  ;;  %v2018_v57 = vld [vmem:[#allocation7 + $0x320] sm:$0xff] }
 0x2b8   :  { %1876 = vmatmul.mubr.f32.gmra.mxu1 %v1756_v61  ;;  %2361 = vmatprep.subr.mxu1 %v2169_v38  ;;  %v2020_v61 = vld [vmem:[#allocation7 + $0x330] sm:$0xff]  ;;  %v2011_v38 = vld [vmem:[#allocation7 + $0x2e8] sm:$0xff] }
 0x2b9   :  { %1881 = vmatprep.mubr.f32.mxu1 %v7481_v1  ;;  %2362 = vmatpush2.msra.mxu1 %v2168_v54  ;;  %v2013_v54 = vld [vmem:[#allocation7 + $0x2f8] sm:$0xff] }
 0x2ba   :  { %2363 = vmatprep.subr.mxu1 %v2161_v31 }
 0x2bb   :  { %2364 = vmatpush2.msra.mxu1 %v2160_v32  ;;  %v2010_v32 = vld [vmem:[#allocation7 + $0x2e0] sm:$0xff] }
 0x2bc   :  { %1882 = vmatmul.mubr.f32.gmra.mxu1 %v1757_v5  ;;  %2365 = vmatprep.subr.mxu1 %v2153_v29  ;;  %v2012_v5 = vld [vmem:[#allocation7 + $0x2f0] sm:$0xff] }
 0x2bd   :  { %1887 = vmatprep.mubr.f32.mxu1 %v7481_v1  ;;  %2366 = vmatpush2.msra.mxu1 %v2152_v13  ;;  %v2003_v13 = vld [vmem:[#allocation7 + $0x2a8] sm:$0xff] }
 0x2be   :  { %2367 = vmatprep.subr.mxu1 %v2145_v11  ;;  %v2005_v11 = vld [vmem:[#allocation7 + $0x2b8] sm:$0xff] }
 0x2bf   :  { %2368 = vmatpush2.msra.mxu1 %v2144_v34  ;;  %v2002_v34 = vld [vmem:[#allocation7 + $0x2a0] sm:$0xff] }
 0x2c0   :  { %1888 = vmatmul.mubr.f32.gmra.mxu1 %v1758_v28  ;;  %2369 = vmatprep.subr.mxu1 %v2137_v46  ;;  %v2004_v28 = vld [vmem:[#allocation7 + $0x2b0] sm:$0xff] }
 0x2c1   :  { %1893 = vmatprep.mubr.f32.mxu1 %v7481_v1  ;;  %2370 = vmatpush2.msra.mxu1 %v2136_v40  ;;  %v1995_v40 = vld [vmem:[#allocation7 + $0x268] sm:$0xff] }
 0x2c2   :  { %2371 = vmatprep.subr.mxu1 %v2129_v18  ;;  %v1997_v18 = vld [vmem:[#allocation7 + $0x278] sm:$0xff] }
 0x2c3   :  { %2372 = vmatpush2.msra.mxu1 %v2128_v22 }
 0x2c4   :  { %1894 = vmatmul.mubr.f32.gmra.mxu1 %v1759_v62  ;;  %2373 = vmatprep.subr.mxu1 %v2121_v23  ;;  %v1994_v62 = vld [vmem:[#allocation7 + $0x260] sm:$0xff]  ;;  %v1996_v23 = vld [vmem:[#allocation7 + $0x270] sm:$0xff] }
 0x2c5   :  { %1899 = vmatprep.mubr.f32.mxu1 %v7481_v1  ;;  %2374 = vmatpush2.msra.mxu1 %v2120_v17 }
 0x2c6   :  { %2375 = vmatprep.subr.mxu1 %v2113_v58  ;;  %v1987_v58 = vld [vmem:[#allocation7 + $0x228] sm:$0xff] }
 0x2c7   :  { %2376 = vmatpush2.msra.mxu1 %v2112_v44  ;;  %v1989_v44 = vld [vmem:[#allocation7 + $0x238] sm:$0xff] }
 0x2c8   :  { %1900 = vmatmul.mubr.f32.gmra.mxu1 %v1760_v2  ;;  %2377 = vmatprep.subr.mxu1 %v2105_v9  ;;  %v1986_v2 = vld [vmem:[#allocation7 + $0x220] sm:$0xff]  ;;  %v1988_v9 = vld [vmem:[#allocation7 + $0x230] sm:$0xff] }
 0x2c9   :  { %1905 = vmatprep.mubr.f32.mxu1 %v7481_v1  ;;  %2378 = vmatpush2.msra.mxu1 %v2104_v8 }
 0x2ca   :  { %2379 = vmatprep.subr.mxu1 %v2097_v52  ;;  %v1979_v52 = vld [vmem:[#allocation7 + $0x1e8] sm:$0xff] }
 0x2cb   :  { %2380 = vmatpush2.msra.mxu1 %v2096_v25  ;;  %v1981_v25 = vld [vmem:[#allocation7 + $0x1f8] sm:$0xff] }
 0x2cc   :  { %1906 = vmatmul.mubr.f32.gmra.mxu1 %v1761_v60  ;;  %2381 = vmatprep.subr.mxu1 %v2089_v20  ;;  %v1978_v20 = vld [vmem:[#allocation7 + $0x1e0] sm:$0xff] }
 0x2cd   :  { %1911 = vmatprep.mubr.f32.mxu1 %v7481_v1  ;;  %2382 = vmatpush2.msra.mxu1 %v2088_v35  ;;  %v1980_v35 = vld [vmem:[#allocation7 + $0x1f0] sm:$0xff] }
 0x2ce   :  { %2383 = vmatprep.subr.mxu1 %v2081_v19 }
 0x2cf   :  { %2384 = vmatpush2.msra.mxu1 %v2080_v56  ;;  %v1971_v56 = vld [vmem:[#allocation7 + $0x1a8] sm:$0xff] }
 0x2d0   :  { %1912 = vmatmul.mubr.f32.gmra.mxu1 %v1762_v48  ;;  %2385 = vmatprep.subr.mxu1 %v2073_v15  ;;  %v1973_v48 = vld [vmem:[#allocation7 + $0x1b8] sm:$0xff]  ;;  %v1970_v15 = vld [vmem:[#allocation7 + $0x1a0] sm:$0xff] }
 0x2d1   :  { %2386 = vmatpush2.msra.mxu1 %v2072_v50  ;;  %v1972_v50 = vld [vmem:[#allocation7 + $0x1b0] sm:$0xff] }
 0x2d2   :  { %2387 = vmatprep.subr.mxu1 %v2065_v4 }
 0x2d3   :  { %2388 = vmatpush2.msra.mxu1 %v2064_v51  ;;  %v1963_v51 = vld [vmem:[#allocation7 + $0x168] sm:$0xff] }
 0x2d4   :  { %2389 = vmatprep.subr.mxu1 %v2057_v42  ;;  %v1965_v42 = vld [vmem:[#allocation7 + $0x178] sm:$0xff] }
 0x2d5   :  { %2390 = vmatpush2.msra.mxu1 %v2056_v59  ;;  %v1962_v59 = vld [vmem:[#allocation7 + $0x160] sm:$0xff] }
 0x2d6   :  { %2391 = vmatprep.subr.mxu1 %v2049_v16 }
 0x2d7   :  { %2392 = vmatpush2.msra.mxu1 %v2048_v14  ;;  %v1957_v14 = vld [vmem:[#allocation7 + $0x138] sm:$0xff] }
 0x2d8   :  { %2639 = vmatprep.subr.mxu1 %v2045_v43  ;;  %v1956_v43 = vld [vmem:[#allocation7 + $0x130] sm:$0xff] }
 0x358   :  { %v6345_v7 = vpop.f32.mrf.mxu1 }
 0x35a   :  { %v6347_v47 = vpop.f32.mrf.mxu1 }
 0x35b   :  { %2238 = vmatprep.mubr.f32.mxu0 %v6347_v47  ;;  %2393 = vmatprep.mubr.f32.mxu1 %v6347_v47 }
 0x35c   :  { %v6351_v45 = vpop.f32.mrf.mxu1  ;;  %2239 = vmatmul.mubr.f32.vlgmr.msra.gmra.mxu0 %v6345_v7  ;;  %2394 = vmatmul.mubr.f32.vlgmr.msra.gmra.mxu1 %v6345_v7 }
 0x35d   :  { %2485 = vmatpush1.msra.mxu0 %v2042_v36  ;;  %2640 = vmatpush1.msra.mxu1 %v2044_v27  ;;  %v1947_v27 = vld [vmem:[#allocation7 + $0xe8] sm:$0xff] }
 0x35e   :  { %2486 = vmatprep.subr.mxu0 %v2035_v21  ;;  %2641 = vmatprep.subr.mxu1 %v2037_v55  ;;  %v6355_v3 = vpop.f32.mrf.mxu1  ;;  %v1949_v21 = vld [vmem:[#allocation7 + $0xf8] sm:$0xff]  ;;  %v1946_v55 = vld [vmem:[#allocation7 + $0xe0] sm:$0xff] }
 0x35f   :  { %2487 = vmatpush1.msra.mxu0 %v2034_v37  ;;  %2642 = vmatpush1.msra.mxu1 %v2036_v49  ;;  %v1948_v37 = vld [vmem:[#allocation7 + $0xf0] sm:$0xff]  ;;  %v1939_v49 = vld [vmem:[#allocation7 + $0xa8] sm:$0xff] }
 0x360   :  { %2244 = vmatprep.mubr.f32.mxu0 %v6355_v3  ;;  %2399 = vmatprep.mubr.f32.mxu1 %v6355_v3  ;;  %v6359_v39 = vpop.f32.mrf.mxu1 }
 0x361   :  { %2488 = vmatprep.subr.mxu0 %v2027_v41  ;;  %2643 = vmatprep.subr.mxu1 %v2029_v6  ;;  %v1941_v41 = vld [vmem:[#allocation7 + $0xb8] sm:$0xff] }
 0x362   :  { %2245 = vmatmul.mubr.f32.gmra.mxu0 %v6351_v45  ;;  %2400 = vmatmul.mubr.f32.gmra.mxu1 %v6351_v45  ;;  %v6363_v10 = vpop.f32.mrf.mxu1 }
 0x363   :  { %2489 = vmatpush1.msra.mxu0 %v2026_v53  ;;  %2644 = vmatpush1.msra.mxu1 %v2028_v26  ;;  %v1938_v53 = vld [vmem:[#allocation7 + $0xa0] sm:$0xff]  ;;  %v1940_v26 = vld [vmem:[#allocation7 + $0xb0] sm:$0xff] }
 0x364   :  { %2490 = vmatprep.subr.mxu0 %v2019_v0  ;;  %2645 = vmatprep.subr.mxu1 %v2021_v30  ;;  %v6365_v31 = vpop.f32.mrf.mxu1  ;;  %v1931_v0 = vld [vmem:[#allocation7 + $0x68] sm:$0xff]  ;;  %v1933_v30 = vld [vmem:[#allocation7 + $0x78] sm:$0xff] }
 0x365   :  { %2491 = vmatpush1.msra.mxu0 %v2018_v57  ;;  %2646 = vmatpush1.msra.mxu1 %v2020_v61  ;;  %v1930_v61 = vld [vmem:[#allocation7 + $0x60] sm:$0xff] }
 0x366   :  { %2250 = vmatprep.mubr.f32.mxu0 %v6363_v10  ;;  %2405 = vmatprep.mubr.f32.mxu1 %v6363_v10  ;;  %v6369_v29 = vpop.f32.mrf.mxu1 }
 0x367   :  { %2492 = vmatprep.subr.mxu0 %v2011_v38  ;;  %2647 = vmatprep.subr.mxu1 %v2013_v54  ;;  %v1932_v38 = vld [vmem:[#allocation7 + $0x70] sm:$0xff]  ;;  %v1923_v54 = vld [vmem:[#allocation7 + $0x28] sm:$0xff] }
 0x368   :  { %2251 = vmatmul.mubr.f32.gmra.mxu0 %v6359_v39  ;;  %2406 = vmatmul.mubr.f32.gmra.mxu1 %v6359_v39  ;;  %v6373_v46 = vpop.f32.mrf.mxu1 }
 0x369   :  { %2493 = vmatpush1.msra.mxu0 %v2010_v32  ;;  %2648 = vmatpush1.msra.mxu1 %v2012_v5  ;;  %v1925_v32 = vld [vmem:[#allocation7 + $0x38] sm:$0xff]  ;;  %v1922_v5 = vld [vmem:[#allocation7 + $0x20] sm:$0xff] }
 0x36a   :  { %2494 = vmatprep.subr.mxu0 %v2003_v13  ;;  %2649 = vmatprep.subr.mxu1 %v2005_v11  ;;  %v6375_v22 = vpop.f32.mrf.mxu1  ;;  %v1924_v13 = vld [vmem:[#allocation7 + $0x30] sm:$0xff] }
 0x36b   :  { %2495 = vmatpush1.msra.mxu0 %v2002_v34  ;;  %2650 = vmatpush1.msra.mxu1 %v2004_v28  ;;  %v2171_v34 = vld [vmem:[#allocation7 + $0x7e8] sm:$0xff]  ;;  %v2173_v28 = vld [vmem:[#allocation7 + $0x7f8] sm:$0xff] }
 0x36c   :  { %2256 = vmatprep.mubr.f32.mxu0 %v6369_v29  ;;  %2411 = vmatprep.mubr.f32.mxu1 %v6369_v29  ;;  %v6379_v17 = vpop.f32.mrf.mxu1 }
 0x36d   :  { %2496 = vmatprep.subr.mxu0 %v1995_v40  ;;  %2651 = vmatprep.subr.mxu1 %v1997_v18  ;;  %v2170_v40 = vld [vmem:[#allocation7 + $0x7e0] sm:$0xff]  ;;  %v2172_v18 = vld [vmem:[#allocation7 + $0x7f0] sm:$0xff] }
 0x36e   :  { %2257 = vmatmul.mubr.f32.gmra.mxu0 %v6365_v31  ;;  %2412 = vmatmul.mubr.f32.gmra.mxu1 %v6365_v31  ;;  %v6383_v8 = vpop.f32.mrf.mxu1 }
 0x36f   :  { %2497 = vmatpush1.msra.mxu0 %v1994_v62  ;;  %2652 = vmatpush1.msra.mxu1 %v1996_v23  ;;  %v2163_v62 = vld [vmem:[#allocation7 + $0x7a8] sm:$0xff]  ;;  %v2165_v23 = vld [vmem:[#allocation7 + $0x7b8] sm:$0xff] }
 0x370   :  { %2498 = vmatprep.subr.mxu0 %v1987_v58  ;;  %2653 = vmatprep.subr.mxu1 %v1989_v44  ;;  %v6385_v60 = vpop.f32.mrf.mxu1  ;;  %v2162_v44 = vld [vmem:[#allocation7 + $0x7a0] sm:$0xff] }
 0x371   :  { %2499 = vmatpush1.msra.mxu0 %v1986_v2  ;;  %2654 = vmatpush1.msra.mxu1 %v1988_v9  ;;  %v2164_v2 = vld [vmem:[#allocation7 + $0x7b0] sm:$0xff]  ;;  %v2155_v9 = vld [vmem:[#allocation7 + $0x768] sm:$0xff] }
 0x372   :  { %2262 = vmatprep.mubr.f32.mxu0 %v6375_v22  ;;  %2417 = vmatprep.mubr.f32.mxu1 %v6375_v22  ;;  %v6389_v19 = vpop.f32.mrf.mxu1 }
 0x373   :  { %2500 = vmatprep.subr.mxu0 %v1979_v52  ;;  %2655 = vmatprep.subr.mxu1 %v1981_v25  ;;  %v2157_v52 = vld [vmem:[#allocation7 + $0x778] sm:$0xff] }
 0x374   :  { %2263 = vmatmul.mubr.f32.gmra.mxu0 %v6373_v46  ;;  %2418 = vmatmul.mubr.f32.gmra.mxu1 %v6373_v46  ;;  %v6393_v4 = vpop.f32.mrf.mxu1 }
 0x375   :  { %2501 = vmatpush1.msra.mxu0 %v1978_v20  ;;  %2656 = vmatpush1.msra.mxu1 %v1980_v35  ;;  %v2154_v20 = vld [vmem:[#allocation7 + $0x760] sm:$0xff]  ;;  %v2156_v35 = vld [vmem:[#allocation7 + $0x770] sm:$0xff] }
 0x376   :  { %2502 = vmatprep.subr.mxu0 %v1971_v56  ;;  %2657 = vmatprep.subr.mxu1 %v1973_v48  ;;  %v6395_v12 = vpop.f32.mrf.mxu1  ;;  %v2147_v56 = vld [vmem:[#allocation7 + $0x728] sm:$0xff]  ;;  %v2149_v48 = vld [vmem:[#allocation7 + $0x738] sm:$0xff] }
 0x377   :  { %2503 = vmatpush1.msra.mxu0 %v1970_v15  ;;  %2658 = vmatpush1.msra.mxu1 %v1972_v50  ;;  %v2146_v15 = vld [vmem:[#allocation7 + $0x720] sm:$0xff]  ;;  %v2148_v50 = vld [vmem:[#allocation7 + $0x730] sm:$0xff] }
 0x378   :  { %2268 = vmatprep.mubr.f32.mxu0 %v6383_v8  ;;  %2423 = vmatprep.mubr.f32.mxu1 %v6383_v8  ;;  %v6399_v16 = vpop.f32.mrf.mxu1 }
 0x379   :  { %2504 = vmatprep.subr.mxu0 %v1963_v51  ;;  %2659 = vmatprep.subr.mxu1 %v1965_v42  ;;  %v2139_v42 = vld [vmem:[#allocation7 + $0x6e8] sm:$0xff] }
 0x37a   :  { %2269 = vmatmul.mubr.f32.gmra.mxu0 %v6379_v17  ;;  %2424 = vmatmul.mubr.f32.gmra.mxu1 %v6379_v17  ;;  %v6403_v36 = vpop.f32.mrf.mxu1 }
 0x37b   :  { %2505 = vmatpush1.msra.mxu0 %v1962_v59  ;;  %2660 = vmatpush1.msra.mxu1 %v1964_v24  ;;  %v2141_v59 = vld [vmem:[#allocation7 + $0x6f8] sm:$0xff]  ;;  %v2138_v24 = vld [vmem:[#allocation7 + $0x6e0] sm:$0xff] }
 0x37c   :  { %2506 = vmatprep.subr.mxu0 %v1955_v33  ;;  %2661 = vmatprep.subr.mxu1 %v1957_v14  ;;  %v6407_v6 = vpop.f32.mrf.mxu1  ;;  %v2140_v33 = vld [vmem:[#allocation7 + $0x6f0] sm:$0xff]  ;;  %v2131_v14 = vld [vmem:[#allocation7 + $0x6a8] sm:$0xff] }
 0x37d   :  { %2507 = vmatpush1.msra.mxu0 %v1954_v63  ;;  %2662 = vmatpush1.msra.mxu1 %v1956_v43  ;;  %v2133_v63 = vld [vmem:[#allocation7 + $0x6b8] sm:$0xff] }
 0x37e   :  { %2274 = vmatprep.mubr.f32.mxu0 %v6389_v19  ;;  %2429 = vmatprep.mubr.f32.mxu1 %v6389_v19  ;;  %v6411_v57 = vpop.f32.mrf.mxu1 }
 0x37f   :  { %2508 = vmatprep.subr.mxu0 %v1947_v27  ;;  %2663 = vmatprep.subr.mxu1 %v1949_v21  ;;  %v2130_v27 = vld [vmem:[#allocation7 + $0x6a0] sm:$0xff]  ;;  %v2132_v21 = vld [vmem:[#allocation7 + $0x6b0] sm:$0xff] }
 0x380   :  { %2275 = vmatmul.mubr.f32.gmra.mxu0 %v6385_v60  ;;  %2430 = vmatmul.mubr.f32.gmra.mxu1 %v6385_v60  ;;  %v6417_v11 = vpop.f32.mrf.mxu1 }
 0x381   :  { %2509 = vmatpush1.msra.mxu0 %v1946_v55  ;;  %2664 = vmatpush1.msra.mxu1 %v1948_v37  ;;  %v2123_v55 = vld [vmem:[#allocation7 + $0x668] sm:$0xff]  ;;  %v2125_v37 = vld [vmem:[#allocation7 + $0x678] sm:$0xff] }
 0x382   :  { %2510 = vmatprep.subr.mxu0 %v1939_v49  ;;  %2665 = vmatprep.subr.mxu1 %v1941_v41  ;;  %v6421_v58 = vpop.f32.mrf.mxu1  ;;  %v2122_v41 = vld [vmem:[#allocation7 + $0x660] sm:$0xff] }
 0x383   :  { %2511 = vmatpush1.msra.mxu0 %v1938_v53  ;;  %2666 = vmatpush1.msra.mxu1 %v1940_v26  ;;  %v2124_v53 = vld [vmem:[#allocation7 + $0x670] sm:$0xff]  ;;  %v2115_v26 = vld [vmem:[#allocation7 + $0x628] sm:$0xff] }
 0x384   :  { %2280 = vmatprep.mubr.f32.mxu0 %v6395_v12  ;;  %2435 = vmatprep.mubr.f32.mxu1 %v6395_v12  ;;  %v6425_v25 = vpop.f32.mrf.mxu1 }
 0x385   :  { %2512 = vmatprep.subr.mxu0 %v1931_v0  ;;  %2667 = vmatprep.subr.mxu1 %v1933_v30  ;;  %v2117_v0 = vld [vmem:[#allocation7 + $0x638] sm:$0xff]  ;;  %v2114_v30 = vld [vmem:[#allocation7 + $0x620] sm:$0xff] }
 0x386   :  { %2281 = vmatmul.mubr.f32.gmra.mxu0 %v6393_v4  ;;  %2436 = vmatmul.mubr.f32.gmra.mxu1 %v6393_v4  ;;  %v6431_v51 = vpop.f32.mrf.mxu1 }
 0x387   :  { %2513 = vmatpush1.msra.mxu0 %v1930_v61  ;;  %2668 = vmatpush1.msra.mxu1 %v1932_v38  ;;  %v2116_v61 = vld [vmem:[#allocation7 + $0x630] sm:$0xff] }
 0x388   :  { %2514 = vmatprep.subr.mxu0 %v1923_v54  ;;  %2669 = vmatprep.subr.mxu1 %v1925_v32  ;;  %v6435_v43 = vpop.f32.mrf.mxu1  ;;  %v2107_v54 = vld [vmem:[#allocation7 + $0x5e8] sm:$0xff]  ;;  %v2109_v32 = vld [vmem:[#allocation7 + $0x5f8] sm:$0xff] }
 0x389   :  { %2515 = vmatpush1.msra.mxu0 %v1922_v5  ;;  %2670 = vmatpush1.msra.mxu1 %v1924_v13  ;;  %v2106_v5 = vld [vmem:[#allocation7 + $0x5e0] sm:$0xff]  ;;  %v2108_v13 = vld [vmem:[#allocation7 + $0x5f0] sm:$0xff] }
 0x38a   :  { %2286 = vmatprep.mubr.f32.mxu0 %v6403_v36  ;;  %2441 = vmatprep.mubr.f32.mxu1 %v6403_v36  ;;  %v6439_v49 = vpop.f32.mrf.mxu1 }
 0x38b   :  { %2516 = vmatprep.subr.mxu0 %v2171_v34  ;;  %2671 = vmatprep.subr.mxu1 %v2173_v28  ;;  %v2099_v34 = vld [vmem:[#allocation7 + $0x5a8] sm:$0xff]  ;;  %v2101_v28 = vld [vmem:[#allocation7 + $0x5b8] sm:$0xff] }
 0x38c   :  { %2287 = vmatmul.mubr.f32.gmra.mxu0 %v6399_v16  ;;  %2442 = vmatmul.mubr.f32.gmra.mxu1 %v6399_v16  ;;  %v6445_v38 = vpop.f32.mrf.mxu1 }
 0x38d   :  { %2517 = vmatpush2.msra.mxu0 %v2170_v40  ;;  %2672 = vmatpush2.msra.mxu1 %v2172_v18  ;;  %v2098_v18 = vld [vmem:[#allocation7 + $0x5a0] sm:$0xff] }
 0x38e   :  { %2518 = vmatprep.subr.mxu0 %v2163_v62  ;;  %2673 = vmatprep.subr.mxu1 %v2165_v23  ;;  %v6449_v40 = vpop.f32.mrf.mxu1  ;;  %v2100_v62 = vld [vmem:[#allocation7 + $0x5b0] sm:$0xff]  ;;  %v2091_v23 = vld [vmem:[#allocation7 + $0x568] sm:$0xff] }
 0x38f   :  { %2519 = vmatpush2.msra.mxu0 %v2162_v44  ;;  %2674 = vmatpush2.msra.mxu1 %v2164_v2  ;;  %v2093_v44 = vld [vmem:[#allocation7 + $0x578] sm:$0xff] }
 0x390   :  { %2292 = vmatprep.mubr.f32.mxu0 %v6411_v57  ;;  %2447 = vmatprep.mubr.f32.mxu1 %v6411_v57  ;;  %v6453_v2 = vpop.f32.mrf.mxu1 }
 0x391   :  { %2520 = vmatprep.subr.mxu0 %v2155_v9  ;;  %2675 = vmatprep.subr.mxu1 %v2157_v52  ;;  %v2090_v9 = vld [vmem:[#allocation7 + $0x560] sm:$0xff]  ;;  %v2092_v52 = vld [vmem:[#allocation7 + $0x570] sm:$0xff] }
 0x392   :  { %2293 = vmatmul.mubr.f32.gmra.mxu0 %v6407_v6  ;;  %2448 = vmatmul.mubr.f32.gmra.mxu1 %v6407_v6 }
 0x393   :  { %2521 = vmatpush2.msra.mxu0 %v2154_v20  ;;  %2676 = vmatpush2.msra.mxu1 %v2156_v35  ;;  %v2083_v20 = vld [vmem:[#allocation7 + $0x528] sm:$0xff]  ;;  %v2085_v35 = vld [vmem:[#allocation7 + $0x538] sm:$0xff] }
 0x394   :  { %2522 = vmatprep.subr.mxu0 %v2147_v56  ;;  %2677 = vmatprep.subr.mxu1 %v2149_v48  ;;  %v2082_v56 = vld [vmem:[#allocation7 + $0x520] sm:$0xff]  ;;  %v2084_v48 = vld [vmem:[#allocation7 + $0x530] sm:$0xff] }
 0x395   :  { %2523 = vmatpush2.msra.mxu0 %v2146_v15  ;;  %2678 = vmatpush2.msra.mxu1 %v2148_v50  ;;  %v6459_v15 = vpop.f32.mrf.mxu1  ;;  %v2075_v50 = vld [vmem:[#allocation7 + $0x4e8] sm:$0xff] }
 0x396   :  { %2298 = vmatprep.mubr.f32.mxu0 %v6421_v58  ;;  %2453 = vmatprep.mubr.f32.mxu1 %v6421_v58 }
 0x397   :  { %2524 = vmatprep.subr.mxu0 %v2139_v42  ;;  %2679 = vmatprep.subr.mxu1 %v2141_v59  ;;  %v2077_v42 = vld [vmem:[#allocation7 + $0x4f8] sm:$0xff]  ;;  %v2074_v59 = vld [vmem:[#allocation7 + $0x4e0] sm:$0xff] }
 0x398   :  { %2299 = vmatmul.mubr.f32.gmra.mxu0 %v6417_v11  ;;  %2454 = vmatmul.mubr.f32.gmra.mxu1 %v6417_v11 }
 0x399   :  { %2525 = vmatpush2.msra.mxu0 %v2138_v24  ;;  %2680 = vmatpush2.msra.mxu1 %v2140_v33  ;;  %v2076_v24 = vld [vmem:[#allocation7 + $0x4f0] sm:$0xff]  ;;  %v2067_v33 = vld [vmem:[#allocation7 + $0x4a8] sm:$0xff] }
 0x39a   :  { %2526 = vmatprep.subr.mxu0 %v2131_v14  ;;  %2681 = vmatprep.subr.mxu1 %v2133_v63  ;;  %v2069_v14 = vld [vmem:[#allocation7 + $0x4b8] sm:$0xff]  ;;  %v2066_v63 = vld [vmem:[#allocation7 + $0x4a0] sm:$0xff] }
 0x39b   :  { %2527 = vmatpush2.msra.mxu0 %v2130_v27  ;;  %2682 = vmatpush2.msra.mxu1 %v2132_v21  ;;  %v2068_v27 = vld [vmem:[#allocation7 + $0x4b0] sm:$0xff]  ;;  %v2059_v21 = vld [vmem:[#allocation7 + $0x468] sm:$0xff] }
 0x39c   :  { %2304 = vmatprep.mubr.f32.mxu0 %v6431_v51  ;;  %2459 = vmatprep.mubr.f32.mxu1 %v6431_v51 }
 0x39d   :  { %2528 = vmatprep.subr.mxu0 %v2123_v55  ;;  %2683 = vmatprep.subr.mxu1 %v2125_v37  ;;  %v2061_v55 = vld [vmem:[#allocation7 + $0x478] sm:$0xff]  ;;  %v2058_v37 = vld [vmem:[#allocation7 + $0x460] sm:$0xff] }
 0x39e   :  { %2305 = vmatmul.mubr.f32.gmra.mxu0 %v6425_v25  ;;  %2460 = vmatmul.mubr.f32.gmra.mxu1 %v6425_v25 }
 0x39f   :  { %2529 = vmatpush2.msra.mxu0 %v2122_v41  ;;  %2684 = vmatpush2.msra.mxu1 %v2124_v53  ;;  %v2060_v41 = vld [vmem:[#allocation7 + $0x470] sm:$0xff]  ;;  %v2051_v53 = vld [vmem:[#allocation7 + $0x428] sm:$0xff] }
 0x3a0   :  { %2530 = vmatprep.subr.mxu0 %v2115_v26  ;;  %2685 = vmatprep.subr.mxu1 %v2117_v0  ;;  %v2053_v26 = vld [vmem:[#allocation7 + $0x438] sm:$0xff]  ;;  %v2050_v0 = vld [vmem:[#allocation7 + $0x420] sm:$0xff] }
 0x3a1   :  { %2531 = vmatpush2.msra.mxu0 %v2114_v30  ;;  %2686 = vmatpush2.msra.mxu1 %v2116_v61  ;;  %v2052_v30 = vld [vmem:[#allocation7 + $0x430] sm:$0xff] }
 0x3a2   :  { %2310 = vmatprep.mubr.f32.mxu0 %v6439_v49  ;;  %2465 = vmatprep.mubr.f32.mxu1 %v6439_v49 }
 0x3a3   :  { %2532 = vmatprep.subr.mxu0 %v2107_v54  ;;  %2687 = vmatprep.subr.mxu1 %v2109_v32 }
 0x3a4   :  { %2311 = vmatmul.mubr.f32.gmra.mxu0 %v6435_v43  ;;  %2466 = vmatmul.mubr.f32.gmra.mxu1 %v6435_v43 }
 0x3a5   :  { %2533 = vmatpush2.msra.mxu0 %v2106_v5  ;;  %2688 = vmatpush2.msra.mxu1 %v2108_v13 }
 0x3a6   :  { %2534 = vmatprep.subr.mxu0 %v2099_v34  ;;  %2689 = vmatprep.subr.mxu1 %v2101_v28 }
 0x3a7   :  { %2535 = vmatpush2.msra.mxu0 %v2098_v18  ;;  %2690 = vmatpush2.msra.mxu1 %v2100_v62 }
 0x3a8   :  { %2316 = vmatprep.mubr.f32.mxu0 %v6449_v40  ;;  %2471 = vmatprep.mubr.f32.mxu1 %v6449_v40 }
 0x3a9   :  { %2536 = vmatprep.subr.mxu0 %v2091_v23  ;;  %2691 = vmatprep.subr.mxu1 %v2093_v44 }
 0x3aa   :  { %2317 = vmatmul.mubr.f32.gmra.mxu0 %v6445_v38  ;;  %2472 = vmatmul.mubr.f32.gmra.mxu1 %v6445_v38 }
 0x3ab   :  { %2537 = vmatpush2.msra.mxu0 %v2090_v9  ;;  %2692 = vmatpush2.msra.mxu1 %v2092_v52 }
 0x3ac   :  { %2538 = vmatprep.subr.mxu0 %v2083_v20  ;;  %2693 = vmatprep.subr.mxu1 %v2085_v35 }
 0x3ad   :  { %2539 = vmatpush2.msra.mxu0 %v2082_v56  ;;  %2694 = vmatpush2.msra.mxu1 %v2084_v48 }
 0x3ae   :  { %2322 = vmatprep.mubr.f32.mxu0 %v6459_v15  ;;  %2477 = vmatprep.mubr.f32.mxu1 %v6459_v15 }
 0x3af   :  { %2540 = vmatprep.subr.mxu0 %v2075_v50  ;;  %2695 = vmatprep.subr.mxu1 %v2077_v42 }
 0x3b0   :  { %2323 = vmatmul.mubr.f32.gmra.mxu0 %v6453_v2  ;;  %2478 = vmatmul.mubr.f32.gmra.mxu1 %v6453_v2 }
 0x3b1   :  { %2541 = vmatpush2.msra.mxu0 %v2074_v59  ;;  %2696 = vmatpush2.msra.mxu1 %v2076_v24 }
 0x3b2   :  { %2542 = vmatprep.subr.mxu0 %v2067_v33  ;;  %2548 = vmatprep.mubr.f32.mxu0 %v6347_v47 }
 0x3b3   :  { %2697 = vmatprep.subr.mxu1 %v2069_v14  ;;  %2703 = vmatprep.mubr.f32.mxu1 %v6347_v47 }
 0x3b4   :  { %2543 = vmatpush2.msra.mxu0 %v2066_v63  ;;  %2698 = vmatpush2.msra.mxu1 %v2068_v27 }
 0x3b5   :  { %2544 = vmatprep.subr.mxu0 %v2059_v21  ;;  %2699 = vmatprep.subr.mxu1 %v2061_v55 }
 0x3b6   :  { %2545 = vmatpush2.msra.mxu0 %v2058_v37  ;;  %2700 = vmatpush2.msra.mxu1 %v2060_v41  ;;  %v2907_v41 = vld [vmem:[#allocation9 + $0x388] sm:$0xff] }
 0x3b7   :  { %2546 = vmatprep.subr.mxu0 %v2051_v53  ;;  %2701 = vmatprep.subr.mxu1 %v2053_v26  ;;  %v2909_v53 = vld [vmem:[#allocation9 + $0x398] sm:$0xff]  ;;  %v2906_v26 = vld [vmem:[#allocation9 + $0x380] sm:$0xff] }
 0x3b8   :  { %2547 = vmatpush2.msra.mxu0 %v2050_v0  ;;  %2702 = vmatpush2.msra.mxu1 %v2052_v30  ;;  %v2908_v0 = vld [vmem:[#allocation9 + $0x390] sm:$0xff]  ;;  %v2899_v30 = vld [vmem:[#allocation9 + $0x348] sm:$0xff] }
 0x3b9   :  { %2549 = vmatmul.mubr.f32.vlgmr.msra.gmra.mxu0 %v6345_v7  ;;  %2704 = vmatmul.mubr.f32.vlgmr.msra.gmra.mxu1 %v6345_v7 }
 0x3ba   :  { %2554 = vmatprep.mubr.f32.mxu0 %v6355_v3  ;;  %2709 = vmatprep.mubr.f32.mxu1 %v6355_v3 }
 0x3bd   :  { %2555 = vmatmul.mubr.f32.gmra.mxu0 %v6351_v45  ;;  %2710 = vmatmul.mubr.f32.gmra.mxu1 %v6351_v45 }
 0x3be   :  { %2560 = vmatprep.mubr.f32.mxu0 %v6363_v10  ;;  %2715 = vmatprep.mubr.f32.mxu1 %v6363_v10 }
 0x3c1   :  { %2561 = vmatmul.mubr.f32.gmra.mxu0 %v6359_v39  ;;  %2716 = vmatmul.mubr.f32.gmra.mxu1 %v6359_v39 }
 0x3c2   :  { %2566 = vmatprep.mubr.f32.mxu0 %v6369_v29  ;;  %2721 = vmatprep.mubr.f32.mxu1 %v6369_v29 }
 0x3c5   :  { %2567 = vmatmul.mubr.f32.gmra.mxu0 %v6365_v31  ;;  %2722 = vmatmul.mubr.f32.gmra.mxu1 %v6365_v31 }
 0x3c6   :  { %2572 = vmatprep.mubr.f32.mxu0 %v6375_v22  ;;  %2727 = vmatprep.mubr.f32.mxu1 %v6375_v22 }
 0x3c9   :  { %2573 = vmatmul.mubr.f32.gmra.mxu0 %v6373_v46  ;;  %2728 = vmatmul.mubr.f32.gmra.mxu1 %v6373_v46 }
 0x3ca   :  { %2578 = vmatprep.mubr.f32.mxu0 %v6383_v8  ;;  %2733 = vmatprep.mubr.f32.mxu1 %v6383_v8 }
 0x3cd   :  { %2579 = vmatmul.mubr.f32.gmra.mxu0 %v6379_v17  ;;  %2734 = vmatmul.mubr.f32.gmra.mxu1 %v6379_v17 }
 0x3ce   :  { %2584 = vmatprep.mubr.f32.mxu0 %v6389_v19  ;;  %2739 = vmatprep.mubr.f32.mxu1 %v6389_v19 }
 0x3d1   :  { %2585 = vmatmul.mubr.f32.gmra.mxu0 %v6385_v60  ;;  %2740 = vmatmul.mubr.f32.gmra.mxu1 %v6385_v60 }
 0x3d2   :  { %2590 = vmatprep.mubr.f32.mxu0 %v6395_v12  ;;  %2745 = vmatprep.mubr.f32.mxu1 %v6395_v12 }
 0x3d5   :  { %2591 = vmatmul.mubr.f32.gmra.mxu0 %v6393_v4  ;;  %2746 = vmatmul.mubr.f32.gmra.mxu1 %v6393_v4 }
 0x3d6   :  { %2596 = vmatprep.mubr.f32.mxu0 %v6403_v36  ;;  %2751 = vmatprep.mubr.f32.mxu1 %v6403_v36 }
 0x3d9   :  { %2597 = vmatmul.mubr.f32.gmra.mxu0 %v6399_v16  ;;  %2752 = vmatmul.mubr.f32.gmra.mxu1 %v6399_v16 }
 0x3da   :  { %2602 = vmatprep.mubr.f32.mxu0 %v6411_v57  ;;  %2757 = vmatprep.mubr.f32.mxu1 %v6411_v57 }
 0x3dd   :  { %2603 = vmatmul.mubr.f32.gmra.mxu0 %v6407_v6  ;;  %2758 = vmatmul.mubr.f32.gmra.mxu1 %v6407_v6 }
 0x3de   :  { %2608 = vmatprep.mubr.f32.mxu0 %v6421_v58  ;;  %2763 = vmatprep.mubr.f32.mxu1 %v6421_v58 }
 0x3e1   :  { %2609 = vmatmul.mubr.f32.gmra.mxu0 %v6417_v11  ;;  %2764 = vmatmul.mubr.f32.gmra.mxu1 %v6417_v11 }
 0x3e2   :  { %2614 = vmatprep.mubr.f32.mxu0 %v6431_v51  ;;  %2769 = vmatprep.mubr.f32.mxu1 %v6431_v51 }
 0x3e5   :  { %2615 = vmatmul.mubr.f32.gmra.mxu0 %v6425_v25  ;;  %2770 = vmatmul.mubr.f32.gmra.mxu1 %v6425_v25 }
 0x3e6   :  { %2620 = vmatprep.mubr.f32.mxu0 %v6439_v49  ;;  %2775 = vmatprep.mubr.f32.mxu1 %v6439_v49 }
 0x3e9   :  { %2621 = vmatmul.mubr.f32.gmra.mxu0 %v6435_v43  ;;  %2776 = vmatmul.mubr.f32.gmra.mxu1 %v6435_v43 }
 0x3ea   :  { %2626 = vmatprep.mubr.f32.mxu0 %v6449_v40  ;;  %2781 = vmatprep.mubr.f32.mxu1 %v6449_v40 }
 0x3ed   :  { %2627 = vmatmul.mubr.f32.gmra.mxu0 %v6445_v38  ;;  %2782 = vmatmul.mubr.f32.gmra.mxu1 %v6445_v38 }
 0x3ee   :  { %2632 = vmatprep.mubr.f32.mxu0 %v6459_v15  ;;  %2787 = vmatprep.mubr.f32.mxu1 %v6459_v15 }
 0x3f1   :  { %2633 = vmatmul.mubr.f32.gmra.mxu0 %v6453_v2  ;;  %2788 = vmatmul.mubr.f32.gmra.mxu1 %v6453_v2 }
 0x3f2   :  { %3102 = vmatprep.mubr.f32.mxu0 %v7481_v1  ;;  %3173 = vmatprep.mubr.f32.mxu1 %v7481_v1  ;;  %v2901_v1 = vld [vmem:[#allocation9 + $0x358] sm:$0xff] }
 0x41c   :  { %v6527_v7 = vpop.f32.mrf.mxu0  ;;  %v6529_v47 = vpop.f32.mrf.mxu1 }
 0x41d   :  { %7482 = vst [vmem:[#allocation56_spill] sm:$0xff] %v6527_v7  ;;  %7483 = vst [vmem:[#allocation57_spill] sm:$0xff] %v6529_v47 }
 0x41e   :  { %v6531_v45 = vpop.f32.mrf.mxu0  ;;  %v6533_v3 = vpop.f32.mrf.mxu1 }
 0x41f   :  { %7484 = vst [vmem:[#allocation58_spill] sm:$0xff] %v6531_v45  ;;  %7485 = vst [vmem:[#allocation62_spill] sm:$0xff] %v6533_v3  ;;  %v2898_v3 = vld [vmem:[#allocation9 + $0x340] sm:$0xff]  ;;  %v2900_v45 = vld [vmem:[#allocation9 + $0x350] sm:$0xff] }
 0x422   :  { %v6535_v39 = vpop.f32.mrf.mxu0  ;;  %v6537_v10 = vpop.f32.mrf.mxu1 }
 0x423   :  { %7486 = vst [vmem:[#allocation63_spill] sm:$0xff] %v6535_v39  ;;  %7487 = vst [vmem:[#allocation64_spill] sm:$0xff] %v6537_v10 }
 0x424   :  { %v6539_v31 = vpop.f32.mrf.mxu0  ;;  %v6541_v29 = vpop.f32.mrf.mxu1 }
 0x425   :  { %7488 = vst [vmem:[#allocation65_spill] sm:$0xff] %v6539_v31  ;;  %7489 = vst [vmem:[#allocation36_spill] sm:$0xff] %v6541_v29  ;;  %v2891_v29 = vld [vmem:[#allocation9 + $0x308] sm:$0xff]  ;;  %v2893_v31 = vld [vmem:[#allocation9 + $0x318] sm:$0xff] }
 0x428   :  { %v6543_v46 = vpop.f32.mrf.mxu0  ;;  %v6545_v22 = vpop.f32.mrf.mxu1 }
 0x429   :  { %7490 = vst [vmem:[#allocation40_spill] sm:$0xff] %v6543_v46  ;;  %7491 = vst [vmem:[#allocation68_spill] sm:$0xff] %v6545_v22 }
 0x42a   :  { %v6547_v17 = vpop.f32.mrf.mxu0  ;;  %v6549_v8 = vpop.f32.mrf.mxu1 }
 0x42b   :  { %7492 = vst [vmem:[#allocation55_spill] sm:$0xff] %v6547_v17  ;;  %7493 = vst [vmem:[#allocation44_spill] sm:$0xff] %v6549_v8  ;;  %v2890_v8 = vld [vmem:[#allocation9 + $0x300] sm:$0xff]  ;;  %v2892_v17 = vld [vmem:[#allocation9 + $0x310] sm:$0xff] }
 0x42e   :  { %v6551_v60 = vpop.f32.mrf.mxu0  ;;  %v6553_v19 = vpop.f32.mrf.mxu1 }
 0x42f   :  { %7494 = vst [vmem:[#allocation80_spill] sm:$0xff] %v6551_v60  ;;  %7495 = vst [vmem:[#allocation39_spill] sm:$0xff] %v6553_v19 }
 0x430   :  { %v6555_v4 = vpop.f32.mrf.mxu0  ;;  %v6557_v12 = vpop.f32.mrf.mxu1 }
 0x431   :  { %7496 = vst [vmem:[#allocation51_spill] sm:$0xff] %v6555_v4  ;;  %7497 = vst [vmem:[#allocation76_spill] sm:$0xff] %v6557_v12  ;;  %v2883_v12 = vld [vmem:[#allocation9 + $0x2c8] sm:$0xff]  ;;  %v2885_v4 = vld [vmem:[#allocation9 + $0x2d8] sm:$0xff] }
 0x434   :  { %v6559_v16 = vpop.f32.mrf.mxu0  ;;  %v6561_v36 = vpop.f32.mrf.mxu1 }
 0x435   :  { %7498 = vst [vmem:[#allocation53_spill] sm:$0xff] %v6559_v16  ;;  %7499 = vst [vmem:[#allocation38_spill] sm:$0xff] %v6561_v36 }
 0x436   :  { %v6563_v6 = vpop.f32.mrf.mxu0  ;;  %v6565_v57 = vpop.f32.mrf.mxu1 }
 0x437   :  { %7500 = vst [vmem:[#allocation52_spill] sm:$0xff] %v6563_v6  ;;  %7501 = vst [vmem:[#allocation87_spill] sm:$0xff] %v6565_v57  ;;  %v2882_v57 = vld [vmem:[#allocation9 + $0x2c0] sm:$0xff]  ;;  %v2884_v6 = vld [vmem:[#allocation9 + $0x2d0] sm:$0xff] }
 0x43a   :  { %v6567_v11 = vpop.f32.mrf.mxu0  ;;  %v6569_v58 = vpop.f32.mrf.mxu1 }
 0x43c   :  { %v6571_v25 = vpop.f32.mrf.mxu0  ;;  %v6573_v51 = vpop.f32.mrf.mxu1 }
 0x440   :  { %v6575_v43 = vpop.f32.mrf.mxu0  ;;  %v6577_v49 = vpop.f32.mrf.mxu1 }
 0x442   :  { %v6579_v61 = vpop.f32.mrf.mxu0  ;;  %v6581_v38 = vpop.f32.mrf.mxu1 }
 0x446   :  { %v6583_v54 = vpop.f32.mrf.mxu0  ;;  %v6585_v32 = vpop.f32.mrf.mxu1 }
 0x448   :  { %v6587_v5 = vpop.f32.mrf.mxu0  ;;  %v6589_v13 = vpop.f32.mrf.mxu1 }
 0x44c   :  { %v6591_v34 = vpop.f32.mrf.mxu0  ;;  %v6593_v28 = vpop.f32.mrf.mxu1 }
 0x44e   :  { %v6595_v40 = vpop.f32.mrf.mxu0  ;;  %v6597_v18 = vpop.f32.mrf.mxu1 }
 0x452   :  { %v6599_v62 = vpop.f32.mrf.mxu0  ;;  %v6601_v23 = vpop.f32.mrf.mxu1 }
 0x454   :  { %v6603_v44 = vpop.f32.mrf.mxu0  ;;  %v6605_v2 = vpop.f32.mrf.mxu1 }
 0x458   :  { %v6607_v9 = vpop.f32.mrf.mxu0  ;;  %v6609_v52 = vpop.f32.mrf.mxu1 }
 0x45a   :  { %v6611_v20 = vpop.f32.mrf.mxu0  ;;  %v6613_v35 = vpop.f32.mrf.mxu1 }
 0x45e   :  { %v6615_v56 = vpop.f32.mrf.mxu0  ;;  %v6617_v48 = vpop.f32.mrf.mxu1 }
 0x460   :  { %v2308_v15 = vpop.f32.mrf.mxu0  ;;  %v2463_v50 = vpop.f32.mrf.mxu1 }
 0x464   :  { %v2312_v42 = vpop.f32.mrf.mxu0  ;;  %v2467_v59 = vpop.f32.mrf.mxu1 }
 0x466   :  { %v2314_v24 = vpop.f32.mrf.mxu0  ;;  %v2469_v33 = vpop.f32.mrf.mxu1 }
 0x46a   :  { %v2318_v14 = vpop.f32.mrf.mxu0  ;;  %v2473_v63 = vpop.f32.mrf.mxu1 }
 0x46b   :  { %v3018_v36 = vmul.f32 %v2898_v3, %v2318_v14  ;;  %v3020_v16 = vmul.f32 %v2900_v45, %v2473_v63 }
 0x46c   :  { %v2320_v27 = vpop.f32.mrf.mxu0  ;;  %v2475_v21 = vpop.f32.mrf.mxu1 }
 0x46d   :  { %v3019_v19 = vmul.f32 %v2899_v30, %v2320_v27  ;;  %v3021_v60 = vmul.f32 %v2901_v1, %v2475_v21  ;;  %v2874_v1 = vld [vmem:[#allocation9 + $0x280] sm:$0xff]  ;;  %v3005_v27 = vmul.f32 %v2885_v4, %v2463_v50  ;;  %v2843_v21 = vld [vmem:[#allocation9 + $0x188] sm:$0xff]  ;;  %v2844_v30 = vld [vmem:[#allocation9 + $0x190] sm:$0xff] }
 0x470   :  { %v2324_v55 = vpop.f32.mrf.mxu0  ;;  %v2479_v37 = vpop.f32.mrf.mxu1 }
 0x471   :  { %v3026_v22 = vmul.f32 %v2906_v26, %v2324_v55  ;;  %v3028_v46 = vmul.f32 %v2908_v0, %v2479_v37  ;;  %v2875_v55 = vld [vmem:[#allocation9 + $0x288] sm:$0xff]  ;;  %v2877_v37 = vld [vmem:[#allocation9 + $0x298] sm:$0xff]  ;;  %v2842_v0 = vld [vmem:[#allocation9 + $0x180] sm:$0xff] }
 0x472   :  { %v2326_v47 = vpop.f32.mrf.mxu0  ;;  %v2481_v7 = vpop.f32.mrf.mxu1  ;;  %v2845_v26 = vld [vmem:[#allocation9 + $0x198] sm:$0xff] }
 0x473   :  { %v3027_v10 = vmul.f32 %v2907_v41, %v2326_v47  ;;  %v3029_v39 = vmul.f32 %v2909_v53, %v2481_v7  ;;  %v3011_v47 = vmul.f32 %v2891_v29, %v2314_v24  ;;  %v3013_v7 = vmul.f32 %v2893_v31, %v2469_v33  ;;  %v2867_v29 = vld [vmem:[#allocation9 + $0x248] sm:$0xff]  ;;  %v2869_v31 = vld [vmem:[#allocation9 + $0x258] sm:$0xff]  ;;  %v2850_v24 = vld [vmem:[#allocation9 + $0x1c0] sm:$0xff] }
 0x474   :  { %v3010_v41 = vmul.f32 %v2890_v8, %v2312_v42  ;;  %v3012_v53 = vmul.f32 %v2892_v17, %v2467_v59  ;;  %v2866_v17 = vld [vmem:[#allocation9 + $0x240] sm:$0xff]  ;;  %v2868_v8 = vld [vmem:[#allocation9 + $0x250] sm:$0xff]  ;;  %v2851_v42 = vld [vmem:[#allocation9 + $0x1c8] sm:$0xff] }
 0x475   :  { %3040 = vmatprep.subr.mxu0 %v3027_v10  ;;  %3111 = vmatprep.subr.mxu1 %v3029_v39  ;;  %v2876_v39 = vld [vmem:[#allocation9 + $0x290] sm:$0xff]  ;;  %v3003_v10 = vmul.f32 %v2883_v12, %v2308_v15  ;;  %v2853_v59 = vld [vmem:[#allocation9 + $0x1d8] sm:$0xff] }
 0x476   :  { %3041 = vmatpush1.msra.mxu0 %v3026_v22  ;;  %3112 = vmatpush1.msra.mxu1 %v3028_v46  ;;  %v3002_v46 = vmul.f32 %v2882_v57, %v6615_v56  ;;  %v3004_v22 = vmul.f32 %v2884_v6, %v6617_v48  ;;  %v2994_v57 = vmul.f32 %v2874_v1, %v6607_v9  ;;  %v2858_v56 = vld [vmem:[#allocation9 + $0x200] sm:$0xff]  ;;  %v2860_v48 = vld [vmem:[#allocation9 + $0x210] sm:$0xff] }
 0x477   :  { %3042 = vmatprep.subr.mxu0 %v3019_v19  ;;  %3113 = vmatprep.subr.mxu1 %v3021_v60  ;;  %v2995_v60 = vmul.f32 %v2875_v55, %v6611_v20  ;;  %v2997_v19 = vmul.f32 %v2877_v37, %v6613_v35  ;;  %v2996_v6 = vmul.f32 %v2876_v39, %v6609_v52  ;;  %v2852_v33 = vld [vmem:[#allocation9 + $0x1d0] sm:$0xff]  ;;  %v2835_v55 = vld [vmem:[#allocation9 + $0x148] sm:$0xff]  ;;  %v2837_v37 = vld [vmem:[#allocation9 + $0x158] sm:$0xff] }
 0x478   :  { %3043 = vmatpush1.msra.mxu0 %v3018_v36  ;;  %3114 = vmatpush1.msra.mxu1 %v3020_v16  ;;  %v2859_v16 = vld [vmem:[#allocation9 + $0x208] sm:$0xff]  ;;  %v2861_v36 = vld [vmem:[#allocation9 + $0x218] sm:$0xff]  ;;  %v2987_v20 = vmul.f32 %v2867_v29, %v6603_v44  ;;  %v2989_v35 = vmul.f32 %v2869_v31, %v6605_v2  ;;  %v2986_v9 = vmul.f32 %v2866_v17, %v6599_v62  ;;  %v2826_v29 = vld [vmem:[#allocation9 + $0x100] sm:$0xff] }
 0x479   :  { %v6619_v3 = vpop.f32.mrf.mxu0  ;;  %v6621_v45 = vpop.f32.mrf.mxu1  ;;  %3044 = vmatprep.subr.mxu0 %v3011_v47  ;;  %3115 = vmatprep.subr.mxu1 %v3013_v7  ;;  %v2988_v52 = vmul.f32 %v2868_v8, %v6601_v23  ;;  %v2979_v44 = vmul.f32 %v2859_v16, %v6595_v40  ;;  %v2981_v2 = vmul.f32 %v2861_v36, %v6597_v18  ;;  %v2828_v31 = vld [vmem:[#allocation9 + $0x110] sm:$0xff]  ;;  %v2819_v17 = vld [vmem:[#allocation9 + $0xc8] sm:$0xff]  ;;  %v2821_v8 = vld [vmem:[#allocation9 + $0xd8] sm:$0xff] }
 0x47a   :  { %7502 = vst [vmem:[#allocation49_spill] sm:$0xff] %v6619_v3  ;;  %7503 = vst [vmem:[#allocation37_spill] sm:$0xff] %v6621_v45  ;;  %3045 = vmatpush1.msra.mxu0 %v3010_v41  ;;  %3116 = vmatpush1.msra.mxu1 %v3012_v53  ;;  %v2978_v62 = vmul.f32 %v2858_v56, %v6591_v34  ;;  %v2980_v23 = vmul.f32 %v2860_v48, %v6593_v28  ;;  %v2834_v41 = vld [vmem:[#allocation9 + $0x140] sm:$0xff]  ;;  %v2836_v53 = vld [vmem:[#allocation9 + $0x150] sm:$0xff] }
 0x47b   :  { %v6627_v4 = vpop.f32.mrf.mxu0  ;;  %v6629_v12 = vpop.f32.mrf.mxu1  ;;  %3046 = vmatprep.subr.mxu0 %v3003_v10  ;;  %3117 = vmatprep.subr.mxu1 %v3005_v27  ;;  %v2971_v40 = vmul.f32 %v2851_v42, %v6587_v5  ;;  %v2973_v18 = vmul.f32 %v2853_v59, %v6589_v13  ;;  %v2970_v34 = vmul.f32 %v2850_v24, %v6583_v54  ;;  %v2827_v10 = vld [vmem:[#allocation9 + $0x108] sm:$0xff]  ;;  %v2829_v27 = vld [vmem:[#allocation9 + $0x118] sm:$0xff]  ;;  %v7517_v36 = vld [vmem:[#allocation87_spill] sm:$0xff] }
 0x47c   :  { %7504 = vst [vmem:[#allocation50_spill] sm:$0xff] %v6627_v4  ;;  %7505 = vst [vmem:[#allocation86_spill] sm:$0xff] %v6629_v12  ;;  %3047 = vmatpush1.msra.mxu0 %v3002_v46  ;;  %3118 = vmatpush1.msra.mxu1 %v3004_v22  ;;  %v2972_v28 = vmul.f32 %v2852_v33, %v6585_v32  ;;  %v2963_v5 = vmul.f32 %v2843_v21, %v6579_v61  ;;  %v7516_v16 = vld [vmem:[#allocation52_spill] sm:$0xff]  ;;  %v2813_v48 = vld [vmem:[#allocation9 + $0x98] sm:$0xff] }
 0x47d   :  { %v6635_v15 = vpop.f32.mrf.mxu0  ;;  %v6637_v50 = vpop.f32.mrf.mxu1  ;;  %3048 = vmatprep.subr.mxu0 %v2995_v60  ;;  %3119 = vmatprep.subr.mxu1 %v2997_v19  ;;  %v2965_v13 = vmul.f32 %v2845_v26, %v6581_v38  ;;  %v2962_v54 = vmul.f32 %v2842_v0, %v6575_v43  ;;  %v2964_v32 = vmul.f32 %v2844_v30, %v6577_v49  ;;  %v2818_v60 = vld [vmem:[#allocation9 + $0xc0] sm:$0xff]  ;;  %v2820_v19 = vld [vmem:[#allocation9 + $0xd0] sm:$0xff]  ;;  %v2811_v56 = vld [vmem:[#allocation9 + $0x88] sm:$0xff] }
 0x47e   :  { %7506 = vst [vmem:[#allocation48_spill] sm:$0xff] %v6635_v15  ;;  %7507 = vst [vmem:[#allocation35_spill] sm:$0xff] %v6637_v50  ;;  %3049 = vmatpush1.msra.mxu0 %v2994_v57  ;;  %3120 = vmatpush1.msra.mxu1 %v2996_v6  ;;  %v2955_v61 = vmul.f32 %v2835_v55, %v6571_v25  ;;  %v2957_v38 = vmul.f32 %v2837_v37, %v6573_v51  ;;  %v2810_v42 = vld [vmem:[#allocation9 + $0x80] sm:$0xff]  ;;  %v2812_v59 = vld [vmem:[#allocation9 + $0x90] sm:$0xff] }
 0x47f   :  { %v6643_v14 = vpop.f32.mrf.mxu0  ;;  %v6645_v63 = vpop.f32.mrf.mxu1  ;;  %3050 = vmatprep.subr.mxu0 %v2987_v20  ;;  %3121 = vmatprep.subr.mxu1 %v2989_v35  ;;  %v2954_v43 = vmul.f32 %v2834_v41, %v6567_v11  ;;  %v2956_v49 = vmul.f32 %v2836_v53, %v6569_v58  ;;  %v2947_v25 = vmul.f32 %v2827_v10, %v7516_v16  ;;  %v7520_v20 = vld [vmem:[#allocation53_spill] sm:$0xff]  ;;  %v7521_v35 = vld [vmem:[#allocation38_spill] sm:$0xff]  ;;  %v7523_v24 = vld [vmem:[#allocation76_spill] sm:$0xff] }
 0x480   :  { %7508 = vst [vmem:[#allocation43_spill] sm:$0xff] %v6643_v14  ;;  %7509 = vst [vmem:[#allocation46_spill] sm:$0xff] %v6645_v63  ;;  %3051 = vmatpush1.msra.mxu0 %v2986_v9  ;;  %3122 = vmatpush1.msra.mxu1 %v2988_v52  ;;  %v2949_v51 = vmul.f32 %v2829_v27, %v7517_v36  ;;  %v2946_v11 = vmul.f32 %v2826_v29, %v7520_v20  ;;  %v7522_v9 = vld [vmem:[#allocation51_spill] sm:$0xff]  ;;  %v2803_v21 = vld [vmem:[#allocation9 + $0x48] sm:$0xff] }
 0x481   :  { %v6651_v47 = vpop.f32.mrf.mxu0  ;;  %v6653_v7 = vpop.f32.mrf.mxu1  ;;  %3052 = vmatprep.subr.mxu0 %v2979_v44  ;;  %3123 = vmatprep.subr.mxu1 %v2981_v2  ;;  %v2948_v58 = vmul.f32 %v2828_v31, %v7521_v35  ;;  %v2939_v52 = vmul.f32 %v2819_v17, %v7522_v9  ;;  %v2941_v33 = vmul.f32 %v2821_v8, %v7523_v24  ;;  %v2805_v26 = vld [vmem:[#allocation9 + $0x58] sm:$0xff]  ;;  %v7527_v0 = vld [vmem:[#allocation39_spill] sm:$0xff]  ;;  %v7532_v10 = vld [vmem:[#allocation40_spill] sm:$0xff] }
 0x482   :  { %7510 = vst [vmem:[#allocation72_spill] sm:$0xff] %v6651_v47  ;;  %7511 = vst [vmem:[#allocation32_spill] sm:$0xff] %v6653_v7  ;;  %3053 = vmatpush1.msra.mxu0 %v2978_v62  ;;  %3124 = vmatpush1.msra.mxu1 %v2980_v23  ;;  %v7526_v62 = vld [vmem:[#allocation80_spill] sm:$0xff]  ;;  %v2940_v30 = vmul.f32 %v2820_v19, %v7527_v0  ;;  %v7528_v55 = vld [vmem:[#allocation55_spill] sm:$0xff]  ;;  %v2930_v27 = vmul.f32 %v2810_v42, %v7532_v10 }
 0x483   :  { %v6659_v1 = vpop.f32.mrf.mxu0  ;;  %v6661_v39 = vpop.f32.mrf.mxu1  ;;  %3054 = vmatprep.subr.mxu0 %v2971_v40  ;;  %3125 = vmatprep.subr.mxu1 %v2973_v18  ;;  %v2938_v23 = vmul.f32 %v2818_v60, %v7526_v62  ;;  %v2802_v40 = vld [vmem:[#allocation9 + $0x40] sm:$0xff]  ;;  %v2804_v18 = vld [vmem:[#allocation9 + $0x50] sm:$0xff]  ;;  %v2931_v37 = vmul.f32 %v2811_v56, %v7528_v55  ;;  %v7535_v17 = vld [vmem:[#allocation36_spill] sm:$0xff] }
 0x484   :  { %7512 = vst [vmem:[#allocation42_spill] sm:$0xff] %v6659_v1  ;;  %7513 = vst [vmem:[#allocation45_spill] sm:$0xff] %v6661_v39  ;;  %3055 = vmatpush1.msra.mxu0 %v2970_v34  ;;  %3126 = vmatpush1.msra.mxu1 %v2972_v28  ;;  %v7529_v34 = vld [vmem:[#allocation44_spill] sm:$0xff]  ;;  %v2794_v29 = vld [vmem:[#allocation9] sm:$0xff]  ;;  %v2925_v8 = vmul.f32 %v2805_v26, %v7535_v17  ;;  %v7543_v26 = vmov 0.0  }
 0x485   :  { %v6667_v46 = vpop.f32.mrf.mxu0  ;;  %v6669_v22 = vpop.f32.mrf.mxu1  ;;  %3056 = vmatprep.subr.mxu0 %v2963_v5  ;;  %3127 = vmatprep.subr.mxu1 %v2965_v13  ;;  %v2933_v28 = vmul.f32 %v2813_v48, %v7529_v34  ;;  %v2795_v5 = vld [vmem:[#allocation9 + $0x8] sm:$0xff]  ;;  %v2797_v13 = vld [vmem:[#allocation9 + $0x18] sm:$0xff]  ;;  %v2796_v31 = vld [vmem:[#allocation9 + $0x10] sm:$0xff] }
 0x486   :  { %7514 = vst [vmem:[#allocation85_spill] sm:$0xff] %v6667_v46  ;;  %7515 = vst [vmem:[#allocation31_spill] sm:$0xff] %v6669_v22  ;;  %3057 = vmatpush1.msra.mxu0 %v2962_v54  ;;  %3128 = vmatpush1.msra.mxu1 %v2964_v32  ;;  %v7533_v54 = vld [vmem:[#allocation68_spill] sm:$0xff]  ;;  %v7536_v60 = vld [vmem:[#allocation63_spill] sm:$0xff] }
 0x487   :  { %v6675_v57 = vpop.f32.mrf.mxu0  ;;  %v6677_v6 = vpop.f32.mrf.mxu1  ;;  %3058 = vmatprep.subr.mxu0 %v2955_v61  ;;  %3129 = vmatprep.subr.mxu1 %v2957_v38  ;;  %v2932_v32 = vmul.f32 %v2812_v59, %v7533_v54  ;;  %v7534_v61 = vld [vmem:[#allocation65_spill] sm:$0xff]  ;;  %v2922_v19 = vmul.f32 %v2802_v40, %v7536_v60  ;;  %v7537_v16 = vld [vmem:[#allocation64_spill] sm:$0xff]  ;;  %v7538_v36 = vld [vmem:[#allocation58_spill] sm:$0xff] }
 0x488   :  { %7518 = vst [vmem:[#allocation83_spill] sm:$0xff] %v6675_v57  ;;  %7519 = vst [vmem:[#allocation41_spill] sm:$0xff] %v6677_v6  ;;  %3059 = vmatpush1.msra.mxu0 %v2954_v43  ;;  %3130 = vmatpush1.msra.mxu1 %v2956_v49  ;;  %v2923_v38 = vmul.f32 %v2803_v21, %v7534_v61  ;;  %v7539_v56 = vld [vmem:[#allocation62_spill] sm:$0xff]  ;;  %v7540_v35 = vld [vmem:[#allocation56_spill] sm:$0xff] }
 0x489   :  { %v6683_v44 = vpop.f32.mrf.mxu0  ;;  %v6685_v2 = vpop.f32.mrf.mxu1  ;;  %3060 = vmatprep.subr.mxu0 %v2947_v25  ;;  %3131 = vmatprep.subr.mxu1 %v2949_v51  ;;  %v2924_v25 = vmul.f32 %v2804_v18, %v7537_v16  ;;  %v2915_v51 = vmul.f32 %v2795_v5, %v7538_v36  ;;  %v2917_v48 = vmul.f32 %v2797_v13, %v7539_v56  ;;  %v7541_v42 = vld [vmem:[#allocation57_spill] sm:$0xff]  ;;  %v6713_v9 = vld [vmem:[#allocation10] sm:$0xf]  ;;  %v2895_v63 = vld [vmem:[#allocation9 + $0x328] sm:$0xff] }
 0x48a   :  { %7524 = vst [vmem:[#allocation84_spill] sm:$0xff] %v6683_v44  ;;  %7525 = vst [vmem:[#allocation30_spill] sm:$0xff] %v6685_v2  ;;  %3061 = vmatpush1.msra.mxu0 %v2946_v11  ;;  %3132 = vmatpush1.msra.mxu1 %v2948_v58  ;;  %v2914_v58 = vmul.f32 %v2794_v29, %v7540_v35  ;;  %v2916_v59 = vmul.f32 %v2796_v31, %v7541_v42  ;;  %v2911_v35 = vld [vmem:[#allocation9 + $0x3a8] sm:$0xff]  ;;  %v2910_v42 = vld [vmem:[#allocation9 + $0x3a0] sm:$0xff] }
 0x48b   :  { %v6691_v41 = vpop.f32.mrf.mxu0  ;;  %v6693_v53 = vpop.f32.mrf.mxu1  ;;  %3062 = vmatprep.subr.mxu0 %v2939_v52  ;;  %3133 = vmatprep.subr.mxu1 %v2941_v33  ;;  %7542 = vst [vmem:[#allocation77_spill] sm:$0xff] %v6713_v9  ;;  %v2902_v12 = vld [vmem:[#allocation9 + $0x360] sm:$0xff]  ;;  %v2904_v4 = vld [vmem:[#allocation9 + $0x370] sm:$0xff]  ;;  %v2897_v14 = vld [vmem:[#allocation9 + $0x338] sm:$0xff] }
 0x48c   :  { %7530 = vst [vmem:[#allocation81_spill] sm:$0xff] %v6691_v41  ;;  %7531 = vst [vmem:[#allocation82_spill] sm:$0xff] %v6693_v53  ;;  %3063 = vmatpush1.msra.mxu0 %v2938_v23  ;;  %3134 = vmatpush1.msra.mxu1 %v2940_v30  ;;  %v2894_v39 = vld [vmem:[#allocation9 + $0x320] sm:$0xff]  ;;  %v2896_v1 = vld [vmem:[#allocation9 + $0x330] sm:$0xff] }
 0x48d   :  { %v6699_v43 = vpop.f32.mrf.mxu0  ;;  %v6701_v49 = vpop.f32.mrf.mxu1  ;;  %3064 = vmatprep.subr.mxu0 %v2931_v37  ;;  %3135 = vmatprep.subr.mxu1 %v2933_v28  ;;  %v2887_v6 = vld [vmem:[#allocation9 + $0x2e8] sm:$0xff]  ;;  %v2889_v57 = vld [vmem:[#allocation9 + $0x2f8] sm:$0xff]  ;;  %v2886_v53 = vld [vmem:[#allocation9 + $0x2e0] sm:$0xff] }
 0x48e   :  { %3065 = vmatpush1.msra.mxu0 %v2930_v27  ;;  %3136 = vmatpush1.msra.mxu1 %v2932_v32  ;;  %v2888_v41 = vld [vmem:[#allocation9 + $0x2f0] sm:$0xff] }
 0x48f   :  { %v6707_v20 = vpop.f32.mrf.mxu0  ;;  %v6709_v11 = vpop.f32.mrf.mxu1  ;;  %3066 = vmatprep.subr.mxu0 %v2923_v38  ;;  %3137 = vmatprep.subr.mxu1 %v2925_v8 }
 0x490   :  { %3067 = vmatpush1.msra.mxu0 %v2922_v19  ;;  %3138 = vmatpush1.msra.mxu1 %v2924_v25 }
 0x491   :  { %v6715_v52 = vpop.f32.mrf.mxu0  ;;  %v6717_v24 = vpop.f32.mrf.mxu1  ;;  %3068 = vmatprep.subr.mxu0 %v2915_v51  ;;  %3139 = vmatprep.subr.mxu1 %v2917_v48 }
 0x492   :  { %3069 = vmatpush1.msra.mxu0 %v2914_v58  ;;  %3140 = vmatpush1.msra.mxu1 %v2916_v59  ;;  %v2913_v58 = vld [vmem:[#allocation9 + $0x3b8] sm:$0xff]  ;;  %v2912_v59 = vld [vmem:[#allocation9 + $0x3b0] sm:$0xff] }
 0x493   :  { %v6719_v33 = vpop.f32.mrf.mxu0  ;;  %v6721_v21 = vpop.f32.mrf.mxu1  ;;  %4314 = vmatmul.mubr.msk.f32.vlgmr.msra.gmra.mxu0 %vm242_vm0, %v6713_v9  ;;  %4315 = vmatmul.mubr.msk.f32.vlgmr.msra.gmra.mxu1 %vm242_vm0, %v6713_v9  ;;  %v2905_v9 = vld [vmem:[#allocation9 + $0x378] sm:$0xff] }
 0x494   :  { %3244 = vmatprep.mubr.f32.mxu0 %v7543_v26  ;;  %3315 = vmatprep.mubr.f32.mxu1 %v7543_v26  ;;  %v2903_v26 = vld [vmem:[#allocation9 + $0x368] sm:$0xff] }
 0x495   :  { %v6729_v62 = vpop.f32.mrf.mxu0  ;;  %v6731_v23 = vpop.f32.mrf.mxu1 }
 0x497   :  { %v6733_v0 = vpop.f32.mrf.mxu0  ;;  %v6735_v30 = vpop.f32.mrf.mxu1 }
 0x499   :  { %v6737_v40 = vpop.f32.mrf.mxu0  ;;  %v6739_v18 = vpop.f32.mrf.mxu1 }
 0x49b   :  { %v6741_v55 = vpop.f32.mrf.mxu0  ;;  %v6743_v37 = vpop.f32.mrf.mxu1 }
 0x49d   :  { %v6745_v34 = vpop.f32.mrf.mxu0  ;;  %v6747_v28 = vpop.f32.mrf.mxu1 }
 0x49f   :  { %v6749_v5 = vpop.f32.mrf.mxu0  ;;  %v6751_v13 = vpop.f32.mrf.mxu1 }
 0x4a1   :  { %v6753_v10 = vpop.f32.mrf.mxu0  ;;  %v6755_v27 = vpop.f32.mrf.mxu1 }
 0x4a3   :  { %v6757_v54 = vpop.f32.mrf.mxu0  ;;  %v6759_v32 = vpop.f32.mrf.mxu1 }
 0x4a5   :  { %v2616_v29 = vpop.f32.mrf.mxu0  ;;  %v2771_v31 = vpop.f32.mrf.mxu1 }
 0x4a7   :  { %v2618_v61 = vpop.f32.mrf.mxu0  ;;  %v2773_v38 = vpop.f32.mrf.mxu1 }
 0x4a9   :  { %v2622_v17 = vpop.f32.mrf.mxu0  ;;  %v2777_v8 = vpop.f32.mrf.mxu1 }
 0x4ab   :  { %v2624_v60 = vpop.f32.mrf.mxu0  ;;  %v2779_v19 = vpop.f32.mrf.mxu1 }
 0x4ad   :  { %v2628_v16 = vpop.f32.mrf.mxu0  ;;  %v2783_v25 = vpop.f32.mrf.mxu1 }
 0x4ae   :  { %v3022_v2 = vmul.f32 %v2902_v12, %v2628_v16  ;;  %v3024_v44 = vmul.f32 %v2904_v4, %v2783_v25  ;;  %v2871_v4 = vld [vmem:[#allocation9 + $0x268] sm:$0xff]  ;;  %v2873_v12 = vld [vmem:[#allocation9 + $0x278] sm:$0xff] }
 0x4af   :  { %v2630_v36 = vpop.f32.mrf.mxu0  ;;  %v2785_v51 = vpop.f32.mrf.mxu1 }
 0x4b0   :  { %v3023_v22 = vmul.f32 %v2903_v26, %v2630_v36  ;;  %v3025_v46 = vmul.f32 %v2905_v9, %v2785_v51  ;;  %v3007_v9 = vmul.f32 %v2887_v6, %v2618_v61  ;;  %v3009_v26 = vmul.f32 %v2889_v57, %v2773_v38 }
 0x4b1   :  { %v2634_v56 = vpop.f32.mrf.mxu0  ;;  %v2789_v48 = vpop.f32.mrf.mxu1 }
 0x4b2   :  { %v3030_v7 = vmul.f32 %v2910_v42, %v2634_v56  ;;  %v3032_v47 = vmul.f32 %v2912_v59, %v2789_v48  ;;  %v2879_v56 = vld [vmem:[#allocation9 + $0x2a8] sm:$0xff]  ;;  %v2881_v48 = vld [vmem:[#allocation9 + $0x2b8] sm:$0xff] }
 0x4b3   :  { %v2636_v45 = vpop.f32.mrf.mxu0  ;;  %v2791_v3 = vpop.f32.mrf.mxu1 }
 0x4b4   :  { %v3031_v50 = vmul.f32 %v2911_v35, %v2636_v45  ;;  %v3033_v15 = vmul.f32 %v2913_v58, %v2791_v3  ;;  %v3015_v45 = vmul.f32 %v2895_v63, %v2624_v60  ;;  %v3017_v3 = vmul.f32 %v2897_v14, %v2779_v19  ;;  %v2870_v14 = vld [vmem:[#allocation9 + $0x260] sm:$0xff]  ;;  %v2872_v63 = vld [vmem:[#allocation9 + $0x270] sm:$0xff] }
 0x4b5   :  { %v3014_v35 = vmul.f32 %v2894_v39, %v2622_v17  ;;  %v3016_v58 = vmul.f32 %v2896_v1, %v2777_v8  ;;  %v3001_v1 = vmul.f32 %v2881_v48, %v6759_v32  ;;  %v2863_v39 = vld [vmem:[#allocation9 + $0x228] sm:$0xff]  ;;  %v2857_v32 = vld [vmem:[#allocation9 + $0x1f8] sm:$0xff] }
 0x4b6   :  { %3182 = vmatprep.subr.mxu0 %v3031_v50  ;;  %3253 = vmatprep.subr.mxu1 %v3033_v15  ;;  %v2878_v50 = vld [vmem:[#allocation9 + $0x2a0] sm:$0xff]  ;;  %v2880_v15 = vld [vmem:[#allocation9 + $0x2b0] sm:$0xff]  ;;  %v2983_v61 = vmul.f32 %v2863_v39, %v6741_v55  ;;  %v2977_v19 = vmul.f32 %v2857_v32, %v6735_v30  ;;  %v2839_v55 = vld [vmem:[#allocation9 + $0x168] sm:$0xff] }
 0x4b7   :  { %3183 = vmatpush1.msra.mxu0 %v3030_v7  ;;  %3254 = vmatpush1.msra.mxu1 %v3032_v47  ;;  %v3006_v47 = vmul.f32 %v2886_v53, %v2616_v29  ;;  %v3008_v7 = vmul.f32 %v2888_v41, %v2771_v31  ;;  %v2998_v57 = vmul.f32 %v2878_v50, %v6753_v10  ;;  %v2854_v10 = vld [vmem:[#allocation9 + $0x1e0] sm:$0xff]  ;;  %v2833_v30 = vld [vmem:[#allocation9 + $0x138] sm:$0xff]  ;;  %v7550_v39 = vld [vmem:[#allocation85_spill] sm:$0xff] }
 0x4b8   :  { %3184 = vmatprep.subr.mxu0 %v3023_v22  ;;  %3255 = vmatprep.subr.mxu1 %v3025_v46  ;;  %v2999_v46 = vmul.f32 %v2879_v56, %v6757_v54  ;;  %v2865_v22 = vld [vmem:[#allocation9 + $0x238] sm:$0xff]  ;;  %v3000_v6 = vmul.f32 %v2880_v15, %v6755_v27  ;;  %v2991_v41 = vmul.f32 %v2871_v4, %v6749_v5  ;;  %v2855_v54 = vld [vmem:[#allocation9 + $0x1e8] sm:$0xff]  ;;  %v2856_v27 = vld [vmem:[#allocation9 + $0x1f0] sm:$0xff] }
 0x4b9   :  { %3185 = vmatpush1.msra.mxu0 %v3022_v2  ;;  %3256 = vmatpush1.msra.mxu1 %v3024_v44  ;;  %v2862_v44 = vld [vmem:[#allocation9 + $0x220] sm:$0xff]  ;;  %v2864_v2 = vld [vmem:[#allocation9 + $0x230] sm:$0xff]  ;;  %v2993_v53 = vmul.f32 %v2873_v12, %v6751_v13  ;;  %v2990_v29 = vmul.f32 %v2870_v14, %v6745_v34  ;;  %v2992_v31 = vmul.f32 %v2872_v63, %v6747_v28  ;;  %v2847_v5 = vld [vmem:[#allocation9 + $0x1a8] sm:$0xff] }
 0x4ba   :  { %3186 = vmatprep.subr.mxu0 %v3015_v45  ;;  %3257 = vmatprep.subr.mxu1 %v3017_v3  ;;  %v2985_v38 = vmul.f32 %v2865_v22, %v6743_v37  ;;  %v2849_v13 = vld [vmem:[#allocation9 + $0x1b8] sm:$0xff]  ;;  %v2982_v17 = vmul.f32 %v2862_v44, %v6737_v40  ;;  %v2984_v8 = vmul.f32 %v2864_v2, %v6739_v18  ;;  %v2846_v34 = vld [vmem:[#allocation9 + $0x1a0] sm:$0xff]  ;;  %v2848_v28 = vld [vmem:[#allocation9 + $0x1b0] sm:$0xff] }
 0x4bb   :  { %3187 = vmatpush1.msra.mxu0 %v3014_v35  ;;  %3258 = vmatpush1.msra.mxu1 %v3016_v58  ;;  %v2975_v60 = vmul.f32 %v2855_v54, %v6733_v0  ;;  %v2841_v37 = vld [vmem:[#allocation9 + $0x178] sm:$0xff]  ;;  %v2974_v16 = vmul.f32 %v2854_v10, %v6729_v62  ;;  %v2976_v25 = vmul.f32 %v2856_v27, %v6731_v23  ;;  %v2838_v40 = vld [vmem:[#allocation9 + $0x160] sm:$0xff]  ;;  %v2840_v18 = vld [vmem:[#allocation9 + $0x170] sm:$0xff] }
 0x4bc   :  { %3188 = vmatprep.subr.mxu0 %v3007_v9  ;;  %3259 = vmatprep.subr.mxu1 %v3009_v26  ;;  %v2967_v36 = vmul.f32 %v2847_v5, %v6719_v33  ;;  %v2969_v51 = vmul.f32 %v2849_v13, %v6721_v21  ;;  %v2831_v0 = vld [vmem:[#allocation9 + $0x128] sm:$0xff]  ;;  %v2966_v42 = vmul.f32 %v2846_v34, %v6715_v52  ;;  %v2830_v62 = vld [vmem:[#allocation9 + $0x120] sm:$0xff]  ;;  %v2832_v23 = vld [vmem:[#allocation9 + $0x130] sm:$0xff] }
 0x4bd   :  { %3189 = vmatpush1.msra.mxu0 %v3006_v47  ;;  %3260 = vmatpush1.msra.mxu1 %v3008_v7  ;;  %v2968_v59 = vmul.f32 %v2848_v28, %v6717_v24  ;;  %v2959_v45 = vmul.f32 %v2839_v55, %v6707_v20  ;;  %v2961_v3 = vmul.f32 %v2841_v37, %v6709_v11  ;;  %v2823_v33 = vld [vmem:[#allocation9 + $0xe8] sm:$0xff]  ;;  %v2825_v21 = vld [vmem:[#allocation9 + $0xf8] sm:$0xff]  ;;  %v2822_v52 = vld [vmem:[#allocation9 + $0xe0] sm:$0xff] }
 0x4be   :  { %3190 = vmatprep.subr.mxu0 %v2999_v46  ;;  %3261 = vmatprep.subr.mxu1 %v3001_v1  ;;  %v2958_v56 = vmul.f32 %v2838_v40, %v6699_v43  ;;  %v2960_v48 = vmul.f32 %v2840_v18, %v6701_v49  ;;  %v2824_v24 = vld [vmem:[#allocation9 + $0xf0] sm:$0xff]  ;;  %v7545_v50 = vld [vmem:[#allocation82_spill] sm:$0xff]  ;;  %v2815_v20 = vld [vmem:[#allocation9 + $0xa8] sm:$0xff]  ;;  %v2942_v22 = vmul.f32 %v2822_v52, %v7550_v39 }
 0x4bf   :  { %3191 = vmatpush1.msra.mxu0 %v2998_v57  ;;  %3262 = vmatpush1.msra.mxu1 %v3000_v6  ;;  %v7544_v35 = vld [vmem:[#allocation81_spill] sm:$0xff]  ;;  %v2953_v15 = vmul.f32 %v2833_v30, %v7545_v50  ;;  %v2817_v11 = vld [vmem:[#allocation9 + $0xb8] sm:$0xff]  ;;  %v7546_v9 = vld [vmem:[#allocation84_spill] sm:$0xff] }
 0x4c0   :  { %3192 = vmatprep.subr.mxu0 %v2991_v41  ;;  %3263 = vmatprep.subr.mxu1 %v2993_v53  ;;  %v2951_v58 = vmul.f32 %v2831_v0, %v7544_v35  ;;  %v2950_v26 = vmul.f32 %v2830_v62, %v7546_v9  ;;  %v7547_v4 = vld [vmem:[#allocation30_spill] sm:$0xff]  ;;  %v2814_v43 = vld [vmem:[#allocation9 + $0xa0] sm:$0xff]  ;;  %v2816_v49 = vld [vmem:[#allocation9 + $0xb0] sm:$0xff] }
 0x4c1   :  { %3193 = vmatpush1.msra.mxu0 %v2990_v29  ;;  %3264 = vmatpush1.msra.mxu1 %v2992_v31  ;;  %v2952_v12 = vmul.f32 %v2832_v23, %v7547_v4  ;;  %v7548_v47 = vld [vmem:[#allocation83_spill] sm:$0xff]  ;;  %v7549_v14 = vld [vmem:[#allocation41_spill] sm:$0xff]  ;;  %v2807_v46 = vld [vmem:[#allocation9 + $0x68] sm:$0xff] }
 0x4c2   :  { %3194 = vmatprep.subr.mxu0 %v2983_v61  ;;  %3265 = vmatprep.subr.mxu1 %v2985_v38  ;;  %v2943_v7 = vmul.f32 %v2823_v33, %v7548_v47  ;;  %v2945_v63 = vmul.f32 %v2825_v21, %v7549_v14  ;;  %v2809_v1 = vld [vmem:[#allocation9 + $0x78] sm:$0xff]  ;;  %v7551_v57 = vld [vmem:[#allocation31_spill] sm:$0xff]  ;;  %v2808_v2 = vld [vmem:[#allocation9 + $0x70] sm:$0xff] }
 0x4c3   :  { %3195 = vmatpush1.msra.mxu0 %v2982_v17  ;;  %3266 = vmatpush1.msra.mxu1 %v2984_v8  ;;  %v2944_v6 = vmul.f32 %v2824_v24, %v7551_v57  ;;  %v2806_v44 = vld [vmem:[#allocation9 + $0x60] sm:$0xff]  ;;  %v7552_v41 = vld [vmem:[#allocation42_spill] sm:$0xff]  ;;  %v7553_v54 = vld [vmem:[#allocation45_spill] sm:$0xff] }
 0x4c4   :  { %3196 = vmatprep.subr.mxu0 %v2975_v60  ;;  %3267 = vmatprep.subr.mxu1 %v2977_v19  ;;  %v2935_v53 = vmul.f32 %v2815_v20, %v7552_v41  ;;  %v2937_v32 = vmul.f32 %v2817_v11, %v7553_v54  ;;  %v2799_v29 = vld [vmem:[#allocation9 + $0x28] sm:$0xff]  ;;  %v2801_v31 = vld [vmem:[#allocation9 + $0x38] sm:$0xff]  ;;  %v2798_v5 = vld [vmem:[#allocation9 + $0x20] sm:$0xff] }
 0x4c5   :  { %3197 = vmatpush1.msra.mxu0 %v2974_v16  ;;  %3268 = vmatpush1.msra.mxu1 %v2976_v25  ;;  %v7554_v10 = vld [vmem:[#allocation72_spill] sm:$0xff]  ;;  %v2800_v13 = vld [vmem:[#allocation9 + $0x30] sm:$0xff]  ;;  %v7556_v17 = vld [vmem:[#allocation43_spill] sm:$0xff] }
 0x4c6   :  { %3198 = vmatprep.subr.mxu0 %v2967_v36  ;;  %3269 = vmatprep.subr.mxu1 %v2969_v51  ;;  %v2934_v27 = vmul.f32 %v2814_v43, %v7554_v10  ;;  %v7555_v61 = vld [vmem:[#allocation32_spill] sm:$0xff]  ;;  %v2927_v8 = vmul.f32 %v2807_v46, %v7556_v17  ;;  %v7557_v34 = vld [vmem:[#allocation46_spill] sm:$0xff]  ;;  %v7559_v55 = vld [vmem:[#allocation35_spill] sm:$0xff] }
 0x4c7   :  { %3199 = vmatpush1.msra.mxu0 %v2966_v42  ;;  %3270 = vmatpush1.msra.mxu1 %v2968_v59  ;;  %v2936_v38 = vmul.f32 %v2816_v49, %v7555_v61  ;;  %v2929_v28 = vmul.f32 %v2809_v1, %v7557_v34  ;;  %v7558_v60 = vld [vmem:[#allocation48_spill] sm:$0xff]  ;;  %v2928_v37 = vmul.f32 %v2808_v2, %v7559_v55  ;;  %v7560_v16 = vld [vmem:[#allocation50_spill] sm:$0xff]  ;;  %v7562_v36 = vld [vmem:[#allocation49_spill] sm:$0xff] }
 0x4c8   :  { %3200 = vmatprep.subr.mxu0 %v2959_v45  ;;  %3271 = vmatprep.subr.mxu1 %v2961_v3  ;;  %v2926_v19 = vmul.f32 %v2806_v44, %v7558_v60  ;;  %v2919_v25 = vmul.f32 %v2799_v29, %v7560_v16  ;;  %v7561_v40 = vld [vmem:[#allocation86_spill] sm:$0xff]  ;;  %v2918_v51 = vmul.f32 %v2798_v5, %v7562_v36  ;;  %v7563_v0 = vld [vmem:[#allocation37_spill] sm:$0xff]  ;;  %v3382_v50 = vld [vmem:[#allocation12 + $0x1e0] sm:$0xff] }
 0x4c9   :  { %3201 = vmatpush1.msra.mxu0 %v2958_v56  ;;  %3272 = vmatpush1.msra.mxu1 %v2960_v48  ;;  %v2921_v18 = vmul.f32 %v2801_v31, %v7561_v40  ;;  %v2920_v30 = vmul.f32 %v2800_v13, %v7563_v0  ;;  %v3353_v42 = vld [vmem:[#allocation12 + $0xf8] sm:$0xff]  ;;  %v7564_v45 = vld [vmem:[#allocation77_spill] sm:$0xff]  ;;  %v3366_v20 = vld [vmem:[#allocation12 + $0x160] sm:$0xff] }
 0x4ca   :  { %3202 = vmatprep.subr.mxu0 %v2951_v58  ;;  %3273 = vmatprep.subr.mxu1 %v2953_v15  ;;  %v3385_v59 = vld [vmem:[#allocation12 + $0x1f8] sm:$0xff]  ;;  %v3352_v3 = vld [vmem:[#allocation12 + $0xf0] sm:$0xff]  ;;  %v3351_v48 = vld [vmem:[#allocation12 + $0xe8] sm:$0xff] }
 0x4cb   :  { %3203 = vmatpush1.msra.mxu0 %v2950_v26  ;;  %3274 = vmatpush1.msra.mxu1 %v2952_v12  ;;  %v3337_v62 = vld [vmem:[#allocation12 + $0x78] sm:$0xff]  ;;  %v3384_v33 = vld [vmem:[#allocation12 + $0x1f0] sm:$0xff]  ;;  %v3383_v52 = vld [vmem:[#allocation12 + $0x1e8] sm:$0xff] }
 0x4cc   :  { %3204 = vmatprep.subr.mxu0 %v2943_v7  ;;  %3275 = vmatprep.subr.mxu1 %v2945_v63  ;;  %v3369_v23 = vld [vmem:[#allocation12 + $0x178] sm:$0xff]  ;;  %v3336_v21 = vld [vmem:[#allocation12 + $0x70] sm:$0xff]  ;;  %v3335_v24 = vld [vmem:[#allocation12 + $0x68] sm:$0xff] }
 0x4cd   :  { %3205 = vmatpush1.msra.mxu0 %v2942_v22  ;;  %3276 = vmatpush1.msra.mxu1 %v2944_v6  ;;  %v3368_v56 = vld [vmem:[#allocation12 + $0x170] sm:$0xff]  ;;  %v3367_v35 = vld [vmem:[#allocation12 + $0x168] sm:$0xff]  ;;  %v3350_v58 = vld [vmem:[#allocation12 + $0xe0] sm:$0xff] }
 0x4ce   :  { %3206 = vmatprep.subr.mxu0 %v2935_v53  ;;  %3277 = vmatprep.subr.mxu1 %v2937_v32  ;;  %v3334_v15 = vld [vmem:[#allocation12 + $0x60] sm:$0xff]  ;;  %v3349_v11 = vld [vmem:[#allocation12 + $0xd8] sm:$0xff]  ;;  %v3348_v12 = vld [vmem:[#allocation12 + $0xd0] sm:$0xff] }
 0x4cf   :  { %3207 = vmatpush1.msra.mxu0 %v2934_v27  ;;  %3278 = vmatpush1.msra.mxu1 %v2936_v38  ;;  %v3381_v9 = vld [vmem:[#allocation12 + $0x1d8] sm:$0xff]  ;;  %v3380_v43 = vld [vmem:[#allocation12 + $0x1d0] sm:$0xff]  ;;  %v3347_v7 = vld [vmem:[#allocation12 + $0xc8] sm:$0xff] }
 0x4d0   :  { %3208 = vmatprep.subr.mxu0 %v2927_v8  ;;  %3279 = vmatprep.subr.mxu1 %v2929_v28  ;;  %v3333_v26 = vld [vmem:[#allocation12 + $0x58] sm:$0xff]  ;;  %v3332_v49 = vld [vmem:[#allocation12 + $0x50] sm:$0xff]  ;;  %v3379_v14 = vld [vmem:[#allocation12 + $0x1c8] sm:$0xff] }
 0x4d1   :  { %3209 = vmatpush1.msra.mxu0 %v2926_v19  ;;  %3280 = vmatpush1.msra.mxu1 %v2928_v37  ;;  %v3365_v4 = vld [vmem:[#allocation12 + $0x158] sm:$0xff]  ;;  %v3364_v47 = vld [vmem:[#allocation12 + $0x150] sm:$0xff]  ;;  %v3331_v63 = vld [vmem:[#allocation12 + $0x48] sm:$0xff] }
 0x4d2   :  { %3210 = vmatprep.subr.mxu0 %v2919_v25  ;;  %3281 = vmatprep.subr.mxu1 %v2921_v18  ;;  %v3363_v46 = vld [vmem:[#allocation12 + $0x148] sm:$0xff]  ;;  %v3346_v1 = vld [vmem:[#allocation12 + $0xc0] sm:$0xff]  ;;  %v3345_v6 = vld [vmem:[#allocation12 + $0xb8] sm:$0xff] }
 0x4d3   :  { %3211 = vmatpush1.msra.mxu0 %v2918_v51  ;;  %3282 = vmatpush1.msra.mxu1 %v2920_v30  ;;  %v3378_v39 = vld [vmem:[#allocation12 + $0x1c0] sm:$0xff]  ;;  %v3377_v44 = vld [vmem:[#allocation12 + $0x1b8] sm:$0xff]  ;;  %v3344_v53 = vld [vmem:[#allocation12 + $0xb0] sm:$0xff] }
 0x4d4   :  { %4316 = vmatmul.mubr.msk.f32.vlgmr.msra.gmra.mxu0 %vm242_vm0, %v7564_v45  ;;  %4317 = vmatmul.mubr.msk.f32.vlgmr.msra.gmra.mxu1 %vm242_vm0, %v7564_v45  ;;  %v3330_v22 = vld [vmem:[#allocation12 + $0x40] sm:$0xff]  ;;  %v3329_v2 = vld [vmem:[#allocation12 + $0x38] sm:$0xff]  ;;  %v3376_v54 = vld [vmem:[#allocation12 + $0x1b0] sm:$0xff] }
 0x4d5   :  { %4320 = vmatprep.subr.mxu0 %v3353_v42  ;;  %4355 = vmatprep.subr.mxu1 %v3385_v59  ;;  %v3362_v57 = vld [vmem:[#allocation12 + $0x140] sm:$0xff]  ;;  %v3361_v41 = vld [vmem:[#allocation12 + $0x138] sm:$0xff]  ;;  %v3328_v32 = vld [vmem:[#allocation12 + $0x30] sm:$0xff] }
 0x4d6   :  { %4321 = vmatpush3.msra.mxu0 %v3337_v62  ;;  %4356 = vmatpush3.msra.mxu1 %v3369_v23  ;;  %v3360_v29 = vld [vmem:[#allocation12 + $0x130] sm:$0xff]  ;;  %v3343_v31 = vld [vmem:[#allocation12 + $0xa8] sm:$0xff]  ;;  %v3342_v38 = vld [vmem:[#allocation12 + $0xa0] sm:$0xff] }
 0x4d7   :  { %4322 = vmatprep.subr.mxu0 %v3352_v3  ;;  %4357 = vmatprep.subr.mxu1 %v3384_v33  ;;  %v3375_v10 = vld [vmem:[#allocation12 + $0x1a8] sm:$0xff]  ;;  %v3374_v5 = vld [vmem:[#allocation12 + $0x1a0] sm:$0xff]  ;;  %v3341_v8 = vld [vmem:[#allocation12 + $0x98] sm:$0xff] }
 0x4d8   :  { %4323 = vmatpush3.msra.mxu0 %v3336_v21  ;;  %4358 = vmatpush3.msra.mxu1 %v3368_v56  ;;  %v3327_v27 = vld [vmem:[#allocation12 + $0x28] sm:$0xff]  ;;  %v3326_v13 = vld [vmem:[#allocation12 + $0x20] sm:$0xff]  ;;  %v3373_v34 = vld [vmem:[#allocation12 + $0x198] sm:$0xff] }
 0x4d9   :  { %4324 = vmatprep.subr.mxu0 %v3351_v48  ;;  %4359 = vmatprep.subr.mxu1 %v3383_v52  ;;  %v3359_v61 = vld [vmem:[#allocation12 + $0x128] sm:$0xff]  ;;  %v3358_v17 = vld [vmem:[#allocation12 + $0x120] sm:$0xff]  ;;  %v3325_v28 = vld [vmem:[#allocation12 + $0x18] sm:$0xff] }
 0x4da   :  { %4325 = vmatpush3.msra.mxu0 %v3335_v24  ;;  %4360 = vmatpush3.msra.mxu1 %v3367_v35  ;;  %v3357_v60 = vld [vmem:[#allocation12 + $0x118] sm:$0xff]  ;;  %v3340_v19 = vld [vmem:[#allocation12 + $0x90] sm:$0xff]  ;;  %v3339_v25 = vld [vmem:[#allocation12 + $0x88] sm:$0xff] }
 0x4db   :  { %4326 = vmatprep.subr.mxu0 %v3350_v58  ;;  %4361 = vmatprep.subr.mxu1 %v3382_v50  ;;  %v3372_v55 = vld [vmem:[#allocation12 + $0x190] sm:$0xff]  ;;  %v3371_v40 = vld [vmem:[#allocation12 + $0x188] sm:$0xff]  ;;  %v3338_v51 = vld [vmem:[#allocation12 + $0x80] sm:$0xff] }
 0x4dc   :  { %4327 = vmatpush3.msra.mxu0 %v3334_v15  ;;  %4362 = vmatpush3.msra.mxu1 %v3366_v20  ;;  %v3324_v37 = vld [vmem:[#allocation12 + $0x10] sm:$0xff]  ;;  %v3323_v18 = vld [vmem:[#allocation12 + $0x8] sm:$0xff]  ;;  %v3370_v0 = vld [vmem:[#allocation12 + $0x180] sm:$0xff] }
 0x4dd   :  { %4328 = vmatprep.subr.mxu0 %v3349_v11  ;;  %4363 = vmatprep.subr.mxu1 %v3381_v9  ;;  %v3356_v16 = vld [vmem:[#allocation12 + $0x110] sm:$0xff]  ;;  %v3355_v36 = vld [vmem:[#allocation12 + $0x108] sm:$0xff]  ;;  %v3322_v30 = vld [vmem:[#allocation12] sm:$0xff] }
 0x4de   :  { %4329 = vmatpush3.msra.mxu0 %v3333_v26  ;;  %4364 = vmatpush3.msra.mxu1 %v3365_v4  ;;  %v3354_v42 = vld [vmem:[#allocation12 + $0x100] sm:$0xff]  ;;  %v3417_v59 = vld [vmem:[#allocation12 + $0x2f8] sm:$0xff]  ;;  %v3416_v48 = vld [vmem:[#allocation12 + $0x2f0] sm:$0xff] }
 0x4df   :  { %4330 = vmatprep.subr.mxu0 %v3348_v12  ;;  %4365 = vmatprep.subr.mxu1 %v3380_v43  ;;  %v3449_v62 = vld [vmem:[#allocation12 + $0x3f8] sm:$0xff]  ;;  %v3448_v52 = vld [vmem:[#allocation12 + $0x3f0] sm:$0xff]  ;;  %v3415_v58 = vld [vmem:[#allocation12 + $0x2e8] sm:$0xff] }
 0x4e0   :  { %4331 = vmatpush3.msra.mxu0 %v3332_v49  ;;  %4366 = vmatpush3.msra.mxu1 %v3364_v47  ;;  %v3401_v21 = vld [vmem:[#allocation12 + $0x278] sm:$0xff]  ;;  %v3400_v24 = vld [vmem:[#allocation12 + $0x270] sm:$0xff]  ;;  %v3447_v50 = vld [vmem:[#allocation12 + $0x3e8] sm:$0xff] }
 0x4e1   :  { %4332 = vmatprep.subr.mxu0 %v3347_v7  ;;  %4367 = vmatprep.subr.mxu1 %v3379_v14  ;;  %v3433_v56 = vld [vmem:[#allocation12 + $0x378] sm:$0xff]  ;;  %v3432_v35 = vld [vmem:[#allocation12 + $0x370] sm:$0xff]  ;;  %v3399_v15 = vld [vmem:[#allocation12 + $0x268] sm:$0xff] }
 0x4e2   :  { %4333 = vmatpush3.msra.mxu0 %v3331_v63  ;;  %4368 = vmatpush3.msra.mxu1 %v3363_v46  ;;  %v3431_v20 = vld [vmem:[#allocation12 + $0x368] sm:$0xff]  ;;  %v3414_v11 = vld [vmem:[#allocation12 + $0x2e0] sm:$0xff]  ;;  %v3413_v12 = vld [vmem:[#allocation12 + $0x2d8] sm:$0xff] }
 0x4e3   :  { %4334 = vmatprep.subr.mxu0 %v3346_v1  ;;  %4369 = vmatprep.subr.mxu1 %v3378_v39  ;;  %v3446_v9 = vld [vmem:[#allocation12 + $0x3e0] sm:$0xff]  ;;  %v3445_v43 = vld [vmem:[#allocation12 + $0x3d8] sm:$0xff]  ;;  %v3412_v7 = vld [vmem:[#allocation12 + $0x2d0] sm:$0xff] }
 0x4e4   :  { %4335 = vmatpush3.msra.mxu0 %v3330_v22  ;;  %4370 = vmatpush3.msra.mxu1 %v3362_v57  ;;  %v3398_v26 = vld [vmem:[#allocation12 + $0x260] sm:$0xff]  ;;  %v3397_v49 = vld [vmem:[#allocation12 + $0x258] sm:$0xff]  ;;  %v3444_v14 = vld [vmem:[#allocation12 + $0x3d0] sm:$0xff] }
 0x4e5   :  { %4336 = vmatprep.subr.mxu0 %v3345_v6  ;;  %4371 = vmatprep.subr.mxu1 %v3377_v44  ;;  %v3430_v4 = vld [vmem:[#allocation12 + $0x360] sm:$0xff]  ;;  %v3429_v47 = vld [vmem:[#allocation12 + $0x358] sm:$0xff]  ;;  %v3396_v63 = vld [vmem:[#allocation12 + $0x250] sm:$0xff] }
 0x4e6   :  { %4337 = vmatpush3.msra.mxu0 %v3329_v2  ;;  %4372 = vmatpush3.msra.mxu1 %v3361_v41  ;;  %v3428_v46 = vld [vmem:[#allocation12 + $0x350] sm:$0xff]  ;;  %v3411_v1 = vld [vmem:[#allocation12 + $0x2c8] sm:$0xff]  ;;  %v3410_v6 = vld [vmem:[#allocation12 + $0x2c0] sm:$0xff] }
 0x4e7   :  { %4338 = vmatprep.subr.mxu0 %v3344_v53  ;;  %4373 = vmatprep.subr.mxu1 %v3376_v54  ;;  %v3443_v39 = vld [vmem:[#allocation12 + $0x3c8] sm:$0xff]  ;;  %v3442_v44 = vld [vmem:[#allocation12 + $0x3c0] sm:$0xff]  ;;  %v3409_v53 = vld [vmem:[#allocation12 + $0x2b8] sm:$0xff] }
 0x4e8   :  { %4339 = vmatpush3.msra.mxu0 %v3328_v32  ;;  %4374 = vmatpush3.msra.mxu1 %v3360_v29  ;;  %v3395_v22 = vld [vmem:[#allocation12 + $0x248] sm:$0xff]  ;;  %v3394_v2 = vld [vmem:[#allocation12 + $0x240] sm:$0xff]  ;;  %v3441_v54 = vld [vmem:[#allocation12 + $0x3b8] sm:$0xff] }
 0x4e9   :  { %4340 = vmatprep.subr.mxu0 %v3343_v31  ;;  %4375 = vmatprep.subr.mxu1 %v3375_v10  ;;  %v3427_v57 = vld [vmem:[#allocation12 + $0x348] sm:$0xff]  ;;  %v3426_v41 = vld [vmem:[#allocation12 + $0x340] sm:$0xff]  ;;  %v3393_v32 = vld [vmem:[#allocation12 + $0x238] sm:$0xff] }
 0x4ea   :  { %4341 = vmatpush3.msra.mxu0 %v3327_v27  ;;  %4376 = vmatpush3.msra.mxu1 %v3359_v61  ;;  %v3425_v29 = vld [vmem:[#allocation12 + $0x338] sm:$0xff]  ;;  %v3408_v31 = vld [vmem:[#allocation12 + $0x2b0] sm:$0xff] }
 0x4eb   :  { %4342 = vmatprep.subr.mxu0 %v3342_v38  ;;  %4377 = vmatprep.subr.mxu1 %v3374_v5  ;;  %v3440_v10 = vld [vmem:[#allocation12 + $0x3b0] sm:$0xff]  ;;  %v3407_v38 = vld [vmem:[#allocation12 + $0x2a8] sm:$0xff] }
 0x4ec   :  { %4343 = vmatpush3.msra.mxu0 %v3326_v13  ;;  %4378 = vmatpush3.msra.mxu1 %v3358_v17  ;;  %v3392_v27 = vld [vmem:[#allocation12 + $0x230] sm:$0xff]  ;;  %v3439_v5 = vld [vmem:[#allocation12 + $0x3a8] sm:$0xff] }
 0x4ed   :  { %4344 = vmatprep.subr.mxu0 %v3341_v8  ;;  %4379 = vmatprep.subr.mxu1 %v3373_v34  ;;  %v3424_v61 = vld [vmem:[#allocation12 + $0x330] sm:$0xff]  ;;  %v3391_v13 = vld [vmem:[#allocation12 + $0x228] sm:$0xff]  ;;  %v3406_v8 = vld [vmem:[#allocation12 + $0x2a0] sm:$0xff] }
 0x4ee   :  { %4345 = vmatpush3.msra.mxu0 %v3325_v28  ;;  %4380 = vmatpush3.msra.mxu1 %v3357_v60  ;;  %v3423_v17 = vld [vmem:[#allocation12 + $0x328] sm:$0xff]  ;;  %v3438_v34 = vld [vmem:[#allocation12 + $0x3a0] sm:$0xff] }
 0x4ef   :  { %4346 = vmatprep.subr.mxu0 %v3340_v19  ;;  %4381 = vmatprep.subr.mxu1 %v3372_v55  ;;  %v3390_v28 = vld [vmem:[#allocation12 + $0x220] sm:$0xff]  ;;  %v3405_v19 = vld [vmem:[#allocation12 + $0x298] sm:$0xff] }
 0x4f0   :  { %4347 = vmatpush3.msra.mxu0 %v3324_v37  ;;  %4382 = vmatpush3.msra.mxu1 %v3356_v16  ;;  %v3422_v60 = vld [vmem:[#allocation12 + $0x320] sm:$0xff]  ;;  %v3437_v55 = vld [vmem:[#allocation12 + $0x398] sm:$0xff] }
 0x4f1   :  { %4348 = vmatprep.subr.mxu0 %v3339_v25  ;;  %4383 = vmatprep.subr.mxu1 %v3371_v40  ;;  %v3389_v37 = vld [vmem:[#allocation12 + $0x218] sm:$0xff]  ;;  %v3404_v25 = vld [vmem:[#allocation12 + $0x290] sm:$0xff] }
 0x4f2   :  { %4349 = vmatpush3.msra.mxu0 %v3323_v18  ;;  %4384 = vmatpush3.msra.mxu1 %v3355_v36  ;;  %v3421_v16 = vld [vmem:[#allocation12 + $0x318] sm:$0xff]  ;;  %v3436_v40 = vld [vmem:[#allocation12 + $0x390] sm:$0xff] }
 0x4f3   :  { %4350 = vmatprep.subr.mxu0 %v3338_v51  ;;  %4385 = vmatprep.subr.mxu1 %v3370_v0  ;;  %v3388_v18 = vld [vmem:[#allocation12 + $0x210] sm:$0xff]  ;;  %v3403_v51 = vld [vmem:[#allocation12 + $0x288] sm:$0xff] }
 0x4f4   :  { %4351 = vmatpush3.msra.mxu0 %v3322_v30  ;;  %4386 = vmatpush3.msra.mxu1 %v3354_v42  ;;  %v3420_v36 = vld [vmem:[#allocation12 + $0x310] sm:$0xff]  ;;  %v3435_v0 = vld [vmem:[#allocation12 + $0x388] sm:$0xff] }
 0x4f5   :  { %4390 = vmatprep.subr.mxu0 %v3417_v59  ;;  %4425 = vmatprep.subr.mxu1 %v3449_v62  ;;  %v3387_v30 = vld [vmem:[#allocation12 + $0x208] sm:$0xff]  ;;  %v3402_v59 = vld [vmem:[#allocation12 + $0x280] sm:$0xff] }
 0x4f6   :  { %v3419_v42 = vld [vmem:[#allocation12 + $0x308] sm:$0xff]  ;;  %v3434_v62 = vld [vmem:[#allocation12 + $0x380] sm:$0xff] }
 0x553   :  { %v3104_v23 = vpop.f32.mrf.mxu0  ;;  %v3175_v45 = vpop.f32.mrf.mxu1 }
 0x555   :  { %v3106_v3 = vpop.f32.mrf.mxu0  ;;  %v3177_v33 = vpop.f32.mrf.mxu1 }
 0x556   :  { %3521 = vmatprep.mubr.f32.mxu0 %v3106_v3  ;;  %3591 = vmatprep.mubr.f32.mxu1 %v3177_v33 }
 0x557   :  { %3522 = vmatmul.mubr.f32.vlgmr.msra.gmra.mxu0 %v3104_v23  ;;  %3592 = vmatmul.mubr.f32.vlgmr.msra.gmra.mxu1 %v3175_v45  ;;  %v3386_v23 = vld [vmem:[#allocation12 + $0x200] sm:$0xff] }
 0x558   :  { %4391 = vmatpush3.msra.mxu0 %v3401_v21  ;;  %4426 = vmatpush3.msra.mxu1 %v3433_v56  ;;  %v3418_v45 = vld [vmem:[#allocation12 + $0x300] sm:$0xff] }
 0x559   :  { %4392 = vmatprep.subr.mxu0 %v3416_v48  ;;  %4427 = vmatprep.subr.mxu1 %v3448_v52  ;;  %v7565_v48 = vmov 0.0   ;;  %v3801_v52 = vld [vmem:[%s7220_s12 + $0x1e8] sm:$0xff] }
 0x55a   :  { %4393 = vmatpush3.msra.mxu0 %v3400_v24  ;;  %4428 = vmatpush3.msra.mxu1 %v3432_v35  ;;  %v3803_v24 = vld [vmem:[%s7220_s12 + $0x1f8] sm:$0xff]  ;;  %v3800_v35 = vld [vmem:[%s7220_s12 + $0x1e0] sm:$0xff] }
 0x55b   :  { %4394 = vmatprep.subr.mxu0 %v3415_v58  ;;  %4429 = vmatprep.subr.mxu1 %v3447_v50  ;;  %v3802_v58 = vld [vmem:[%s7220_s12 + $0x1f0] sm:$0xff]  ;;  %v3797_v50 = vld [vmem:[%s7220_s12 + $0x1c8] sm:$0xff] }
 0x55c   :  { %4395 = vmatpush3.msra.mxu0 %v3399_v15  ;;  %4430 = vmatpush3.msra.mxu1 %v3431_v20  ;;  %v3799_v15 = vld [vmem:[%s7220_s12 + $0x1d8] sm:$0xff]  ;;  %v3796_v20 = vld [vmem:[%s7220_s12 + $0x1c0] sm:$0xff] }
 0x55d   :  { %4396 = vmatprep.subr.mxu0 %v3414_v11  ;;  %4431 = vmatprep.subr.mxu1 %v3446_v9  ;;  %v3798_v11 = vld [vmem:[%s7220_s12 + $0x1d0] sm:$0xff]  ;;  %v3793_v9 = vld [vmem:[%s7220_s12 + $0x1a8] sm:$0xff] }
 0x55e   :  { %4397 = vmatpush3.msra.mxu0 %v3398_v26  ;;  %4432 = vmatpush3.msra.mxu1 %v3430_v4  ;;  %v3795_v26 = vld [vmem:[%s7220_s12 + $0x1b8] sm:$0xff]  ;;  %v3792_v4 = vld [vmem:[%s7220_s12 + $0x1a0] sm:$0xff] }
 0x55f   :  { %4398 = vmatprep.subr.mxu0 %v3413_v12  ;;  %4433 = vmatprep.subr.mxu1 %v3445_v43  ;;  %v3794_v12 = vld [vmem:[%s7220_s12 + $0x1b0] sm:$0xff]  ;;  %v3789_v43 = vld [vmem:[%s7220_s12 + $0x188] sm:$0xff] }
 0x560   :  { %4399 = vmatpush3.msra.mxu0 %v3397_v49  ;;  %4434 = vmatpush3.msra.mxu1 %v3429_v47  ;;  %v3791_v49 = vld [vmem:[%s7220_s12 + $0x198] sm:$0xff]  ;;  %v3788_v47 = vld [vmem:[%s7220_s12 + $0x180] sm:$0xff] }
 0x561   :  { %4400 = vmatprep.subr.mxu0 %v3412_v7  ;;  %4435 = vmatprep.subr.mxu1 %v3444_v14  ;;  %v3790_v7 = vld [vmem:[%s7220_s12 + $0x190] sm:$0xff]  ;;  %v3785_v14 = vld [vmem:[%s7220_s12 + $0x168] sm:$0xff] }
 0x562   :  { %4401 = vmatpush3.msra.mxu0 %v3396_v63  ;;  %4436 = vmatpush3.msra.mxu1 %v3428_v46  ;;  %v3787_v63 = vld [vmem:[%s7220_s12 + $0x178] sm:$0xff]  ;;  %v3784_v46 = vld [vmem:[%s7220_s12 + $0x160] sm:$0xff] }
 0x563   :  { %4402 = vmatprep.subr.mxu0 %v3411_v1  ;;  %4437 = vmatprep.subr.mxu1 %v3443_v39  ;;  %v3786_v1 = vld [vmem:[%s7220_s12 + $0x170] sm:$0xff]  ;;  %v3781_v39 = vld [vmem:[%s7220_s12 + $0x148] sm:$0xff] }
 0x564   :  { %4403 = vmatpush3.msra.mxu0 %v3395_v22  ;;  %4438 = vmatpush3.msra.mxu1 %v3427_v57  ;;  %v3783_v22 = vld [vmem:[%s7220_s12 + $0x158] sm:$0xff]  ;;  %v3780_v57 = vld [vmem:[%s7220_s12 + $0x140] sm:$0xff] }
 0x565   :  { %4404 = vmatprep.subr.mxu0 %v3410_v6  ;;  %4439 = vmatprep.subr.mxu1 %v3442_v44  ;;  %v3782_v6 = vld [vmem:[%s7220_s12 + $0x150] sm:$0xff]  ;;  %v3777_v44 = vld [vmem:[%s7220_s12 + $0x128] sm:$0xff] }
 0x566   :  { %4405 = vmatpush3.msra.mxu0 %v3394_v2  ;;  %4440 = vmatpush3.msra.mxu1 %v3426_v41  ;;  %v3779_v2 = vld [vmem:[%s7220_s12 + $0x138] sm:$0xff]  ;;  %v3776_v41 = vld [vmem:[%s7220_s12 + $0x120] sm:$0xff] }
 0x567   :  { %4406 = vmatprep.subr.mxu0 %v3409_v53  ;;  %4441 = vmatprep.subr.mxu1 %v3441_v54  ;;  %v3778_v53 = vld [vmem:[%s7220_s12 + $0x130] sm:$0xff]  ;;  %v3773_v54 = vld [vmem:[%s7220_s12 + $0x108] sm:$0xff] }
 0x568   :  { %4407 = vmatpush3.msra.mxu0 %v3393_v32  ;;  %4442 = vmatpush3.msra.mxu1 %v3425_v29  ;;  %v3775_v32 = vld [vmem:[%s7220_s12 + $0x118] sm:$0xff]  ;;  %v3772_v29 = vld [vmem:[%s7220_s12 + $0x100] sm:$0xff] }
 0x569   :  { %4408 = vmatprep.subr.mxu0 %v3408_v31  ;;  %4443 = vmatprep.subr.mxu1 %v3440_v10  ;;  %v3774_v31 = vld [vmem:[%s7220_s12 + $0x110] sm:$0xff]  ;;  %v3769_v10 = vld [vmem:[%s7220_s12 + $0xe8] sm:$0xff] }
 0x56a   :  { %4409 = vmatpush3.msra.mxu0 %v3392_v27  ;;  %4444 = vmatpush3.msra.mxu1 %v3424_v61  ;;  %v3771_v27 = vld [vmem:[%s7220_s12 + $0xf8] sm:$0xff]  ;;  %v3768_v61 = vld [vmem:[%s7220_s12 + $0xe0] sm:$0xff] }
 0x56b   :  { %4410 = vmatprep.subr.mxu0 %v3407_v38  ;;  %4445 = vmatprep.subr.mxu1 %v3439_v5  ;;  %v3770_v38 = vld [vmem:[%s7220_s12 + $0xf0] sm:$0xff]  ;;  %v3765_v5 = vld [vmem:[%s7220_s12 + $0xc8] sm:$0xff] }
 0x56c   :  { %4411 = vmatpush3.msra.mxu0 %v3391_v13  ;;  %4446 = vmatpush3.msra.mxu1 %v3423_v17  ;;  %v3767_v13 = vld [vmem:[%s7220_s12 + $0xd8] sm:$0xff]  ;;  %v3764_v17 = vld [vmem:[%s7220_s12 + $0xc0] sm:$0xff] }
 0x56d   :  { %4412 = vmatprep.subr.mxu0 %v3406_v8  ;;  %4447 = vmatprep.subr.mxu1 %v3438_v34  ;;  %v3766_v8 = vld [vmem:[%s7220_s12 + $0xd0] sm:$0xff]  ;;  %v3761_v34 = vld [vmem:[%s7220_s12 + $0xa8] sm:$0xff] }
 0x56e   :  { %4413 = vmatpush3.msra.mxu0 %v3390_v28  ;;  %4448 = vmatpush3.msra.mxu1 %v3422_v60  ;;  %v3763_v28 = vld [vmem:[%s7220_s12 + $0xb8] sm:$0xff]  ;;  %v3760_v60 = vld [vmem:[%s7220_s12 + $0xa0] sm:$0xff] }
 0x56f   :  { %4414 = vmatprep.subr.mxu0 %v3405_v19  ;;  %4449 = vmatprep.subr.mxu1 %v3437_v55  ;;  %v3762_v19 = vld [vmem:[%s7220_s12 + $0xb0] sm:$0xff]  ;;  %v3757_v55 = vld [vmem:[%s7220_s12 + $0x88] sm:$0xff] }
 0x570   :  { %4415 = vmatpush3.msra.mxu0 %v3389_v37  ;;  %4450 = vmatpush3.msra.mxu1 %v3421_v16  ;;  %v3759_v37 = vld [vmem:[%s7220_s12 + $0x98] sm:$0xff]  ;;  %v3756_v16 = vld [vmem:[%s7220_s12 + $0x80] sm:$0xff] }
 0x571   :  { %4416 = vmatprep.subr.mxu0 %v3404_v25  ;;  %4451 = vmatprep.subr.mxu1 %v3436_v40  ;;  %v3758_v25 = vld [vmem:[%s7220_s12 + $0x90] sm:$0xff]  ;;  %v3753_v40 = vld [vmem:[%s7220_s12 + $0x68] sm:$0xff] }
 0x572   :  { %4417 = vmatpush3.msra.mxu0 %v3388_v18  ;;  %4452 = vmatpush3.msra.mxu1 %v3420_v36  ;;  %v3755_v18 = vld [vmem:[%s7220_s12 + $0x78] sm:$0xff]  ;;  %v3752_v36 = vld [vmem:[%s7220_s12 + $0x60] sm:$0xff] }
 0x573   :  { %4418 = vmatprep.subr.mxu0 %v3403_v51  ;;  %4453 = vmatprep.subr.mxu1 %v3435_v0  ;;  %v3754_v51 = vld [vmem:[%s7220_s12 + $0x70] sm:$0xff]  ;;  %v3749_v0 = vld [vmem:[%s7220_s12 + $0x48] sm:$0xff] }
 0x574   :  { %4419 = vmatpush3.msra.mxu0 %v3387_v30  ;;  %4454 = vmatpush3.msra.mxu1 %v3419_v42  ;;  %v3751_v30 = vld [vmem:[%s7220_s12 + $0x58] sm:$0xff]  ;;  %v3748_v42 = vld [vmem:[%s7220_s12 + $0x40] sm:$0xff] }
 0x575   :  { %4420 = vmatprep.subr.mxu0 %v3402_v59  ;;  %4455 = vmatprep.subr.mxu1 %v3434_v62  ;;  %v3750_v59 = vld [vmem:[%s7220_s12 + $0x50] sm:$0xff]  ;;  %v3745_v62 = vld [vmem:[%s7220_s12 + $0x28] sm:$0xff] }
 0x576   :  { %4421 = vmatpush3.msra.mxu0 %v3386_v23  ;;  %4456 = vmatpush3.msra.mxu1 %v3418_v45  ;;  %v3747_v23 = vld [vmem:[%s7220_s12 + $0x38] sm:$0xff]  ;;  %v3744_v45 = vld [vmem:[%s7220_s12 + $0x20] sm:$0xff] }
 0x577   :  { %3826 = vmatprep.subr.mxu0 %v3801_v52  ;;  %3897 = vmatprep.subr.mxu1 %v3803_v24  ;;  %v4011_v52 = vld [vmem:[%s7222_s14 + $0xf8] sm:$0xff] }
 0x578   :  { %v4043_v24 = vld [vmem:[%s7222_s14 + $0x1f8] sm:$0xff] }
 0x594   :  { %v3246_v3 = vpop.f32.mrf.mxu0  ;;  %v3317_v33 = vpop.f32.mrf.mxu1 }
 0x596   :  { %v3248_v21 = vpop.f32.mrf.mxu0  ;;  %v3319_v56 = vpop.f32.mrf.mxu1 }
 0x597   :  { %3661 = vmatprep.mubr.f32.mxu0 %v3248_v21  ;;  %3731 = vmatprep.mubr.f32.mxu1 %v3319_v56  ;;  %v3743_v21 = vld [vmem:[%s7220_s12 + $0x18] sm:$0xff]  ;;  %v3740_v56 = vld [vmem:[%s7220_s12] sm:$0xff] }
 0x598   :  { %3662 = vmatmul.mubr.f32.vlgmr.msra.gmra.mxu0 %v3246_v3  ;;  %3732 = vmatmul.mubr.f32.vlgmr.msra.gmra.mxu1 %v3317_v33  ;;  %v3746_v3 = vld [vmem:[%s7220_s12 + $0x30] sm:$0xff]  ;;  %v3741_v33 = vld [vmem:[%s7220_s12 + $0x8] sm:$0xff] }
 0x599   :  { %3890 = vmatprep.mubr.f32.mxu0 %v7565_v48  ;;  %3961 = vmatprep.mubr.f32.mxu1 %v7565_v48  ;;  %v3742_v48 = vld [vmem:[%s7220_s12 + $0x10] sm:$0xff] }
 0x59a   :  { %3827 = vmatpush1.msra.mxu0 %v3800_v35  ;;  %3898 = vmatpush1.msra.mxu1 %v3802_v58 }
 0x59b   :  { %3828 = vmatprep.subr.mxu0 %v3797_v50  ;;  %3899 = vmatprep.subr.mxu1 %v3799_v15 }
 0x59c   :  { %3829 = vmatpush1.msra.mxu0 %v3796_v20  ;;  %3900 = vmatpush1.msra.mxu1 %v3798_v11  ;;  %v4318_v20 = vld [vmem:[%s7219_s11] ss:$0 sm:$0xff] }
 0x59d   :  { %3830 = vmatprep.subr.mxu0 %v3793_v9  ;;  %3901 = vmatprep.subr.mxu1 %v3795_v26 }
 0x59e   :  { %3831 = vmatpush1.msra.mxu0 %v3792_v4  ;;  %3902 = vmatpush1.msra.mxu1 %v3794_v12 }
 0x59f   :  { %3832 = vmatprep.subr.mxu0 %v3789_v43  ;;  %3903 = vmatprep.subr.mxu1 %v3791_v49 }
 0x5a0   :  { %3833 = vmatpush1.msra.mxu0 %v3788_v47  ;;  %3904 = vmatpush1.msra.mxu1 %v3790_v7 }
 0x5a1   :  { %3834 = vmatprep.subr.mxu0 %v3785_v14  ;;  %3905 = vmatprep.subr.mxu1 %v3787_v63 }
 0x5a2   :  { %3835 = vmatpush1.msra.mxu0 %v3784_v46  ;;  %3906 = vmatpush1.msra.mxu1 %v3786_v1 }
 0x5a3   :  { %3836 = vmatprep.subr.mxu0 %v3781_v39  ;;  %3907 = vmatprep.subr.mxu1 %v3783_v22  ;;  %v3995_v39 = vld [vmem:[%s7222_s14 + $0x78] sm:$0xff] }
 0x5a4   :  { %3837 = vmatpush1.msra.mxu0 %v3780_v57  ;;  %3908 = vmatpush1.msra.mxu1 %v3782_v6  ;;  %v4027_v22 = vld [vmem:[%s7222_s14 + $0x178] sm:$0xff]  ;;  %v4010_v6 = vld [vmem:[%s7222_s14 + $0xf0] sm:$0xff] }
 0x5a5   :  { %3838 = vmatprep.subr.mxu0 %v3777_v44  ;;  %3909 = vmatprep.subr.mxu1 %v3779_v2  ;;  %v4042_v44 = vld [vmem:[%s7222_s14 + $0x1f0] sm:$0xff] }
 0x5a6   :  { %3839 = vmatpush1.msra.mxu0 %v3776_v41  ;;  %3910 = vmatpush1.msra.mxu1 %v3778_v53  ;;  %v3994_v2 = vld [vmem:[%s7222_s14 + $0x70] sm:$0xff]  ;;  %v4009_v53 = vld [vmem:[%s7222_s14 + $0xe8] sm:$0xff] }
 0x5a7   :  { %3840 = vmatprep.subr.mxu0 %v3773_v54  ;;  %3911 = vmatprep.subr.mxu1 %v3775_v32  ;;  %v4026_v41 = vld [vmem:[%s7222_s14 + $0x170] sm:$0xff]  ;;  %v4041_v54 = vld [vmem:[%s7222_s14 + $0x1e8] sm:$0xff] }
 0x5a8   :  { %3841 = vmatpush1.msra.mxu0 %v3772_v29  ;;  %3912 = vmatpush1.msra.mxu1 %v3774_v31  ;;  %v3993_v32 = vld [vmem:[%s7222_s14 + $0x68] sm:$0xff]  ;;  %v4008_v31 = vld [vmem:[%s7222_s14 + $0xe0] sm:$0xff] }
 0x5a9   :  { %3842 = vmatprep.subr.mxu0 %v3769_v10  ;;  %3913 = vmatprep.subr.mxu1 %v3771_v27  ;;  %v4025_v29 = vld [vmem:[%s7222_s14 + $0x168] sm:$0xff]  ;;  %v4040_v10 = vld [vmem:[%s7222_s14 + $0x1e0] sm:$0xff] }
 0x5aa   :  { %3843 = vmatpush1.msra.mxu0 %v3768_v61  ;;  %3914 = vmatpush1.msra.mxu1 %v3770_v38  ;;  %v3992_v27 = vld [vmem:[%s7222_s14 + $0x60] sm:$0xff]  ;;  %v4007_v38 = vld [vmem:[%s7222_s14 + $0xd8] sm:$0xff] }
 0x5ab   :  { %3844 = vmatprep.subr.mxu0 %v3765_v5  ;;  %3915 = vmatprep.subr.mxu1 %v3767_v13  ;;  %v4024_v61 = vld [vmem:[%s7222_s14 + $0x160] sm:$0xff]  ;;  %v4039_v5 = vld [vmem:[%s7222_s14 + $0x1d8] sm:$0xff] }
 0x5ac   :  { %3845 = vmatpush1.msra.mxu0 %v3764_v17  ;;  %3916 = vmatpush1.msra.mxu1 %v3766_v8  ;;  %v3991_v13 = vld [vmem:[%s7222_s14 + $0x58] sm:$0xff]  ;;  %v4006_v8 = vld [vmem:[%s7222_s14 + $0xd0] sm:$0xff] }
 0x5ad   :  { %3846 = vmatprep.subr.mxu0 %v3761_v34  ;;  %3917 = vmatprep.subr.mxu1 %v3763_v28  ;;  %v4023_v17 = vld [vmem:[%s7222_s14 + $0x158] sm:$0xff]  ;;  %v4038_v34 = vld [vmem:[%s7222_s14 + $0x1d0] sm:$0xff] }
 0x5ae   :  { %3847 = vmatpush1.msra.mxu0 %v3760_v60  ;;  %3918 = vmatpush1.msra.mxu1 %v3762_v19  ;;  %v3990_v28 = vld [vmem:[%s7222_s14 + $0x50] sm:$0xff]  ;;  %v4005_v19 = vld [vmem:[%s7222_s14 + $0xc8] sm:$0xff] }
 0x5af   :  { %3848 = vmatprep.subr.mxu0 %v3757_v55  ;;  %3919 = vmatprep.subr.mxu1 %v3759_v37  ;;  %v4022_v60 = vld [vmem:[%s7222_s14 + $0x150] sm:$0xff]  ;;  %v4037_v55 = vld [vmem:[%s7222_s14 + $0x1c8] sm:$0xff] }
 0x5b0   :  { %3849 = vmatpush1.msra.mxu0 %v3756_v16  ;;  %3920 = vmatpush1.msra.mxu1 %v3758_v25  ;;  %v3989_v37 = vld [vmem:[%s7222_s14 + $0x48] sm:$0xff]  ;;  %v4004_v25 = vld [vmem:[%s7222_s14 + $0xc0] sm:$0xff] }
 0x5b1   :  { %3850 = vmatprep.subr.mxu0 %v3753_v40  ;;  %3921 = vmatprep.subr.mxu1 %v3755_v18  ;;  %v4021_v16 = vld [vmem:[%s7222_s14 + $0x148] sm:$0xff]  ;;  %v4036_v40 = vld [vmem:[%s7222_s14 + $0x1c0] sm:$0xff] }
 0x5b2   :  { %3851 = vmatpush1.msra.mxu0 %v3752_v36  ;;  %3922 = vmatpush1.msra.mxu1 %v3754_v51  ;;  %v3988_v18 = vld [vmem:[%s7222_s14 + $0x40] sm:$0xff]  ;;  %v4003_v51 = vld [vmem:[%s7222_s14 + $0xb8] sm:$0xff] }
 0x5b3   :  { %3852 = vmatprep.subr.mxu0 %v3749_v0  ;;  %3923 = vmatprep.subr.mxu1 %v3751_v30  ;;  %v4020_v36 = vld [vmem:[%s7222_s14 + $0x140] sm:$0xff]  ;;  %v4035_v0 = vld [vmem:[%s7222_s14 + $0x1b8] sm:$0xff] }
 0x5b4   :  { %3853 = vmatpush1.msra.mxu0 %v3748_v42  ;;  %3924 = vmatpush1.msra.mxu1 %v3750_v59  ;;  %v3987_v30 = vld [vmem:[%s7222_s14 + $0x38] sm:$0xff]  ;;  %v4002_v59 = vld [vmem:[%s7222_s14 + $0xb0] sm:$0xff] }
 0x5b5   :  { %3854 = vmatprep.subr.mxu0 %v3745_v62  ;;  %3925 = vmatprep.subr.mxu1 %v3747_v23  ;;  %v4019_v42 = vld [vmem:[%s7222_s14 + $0x138] sm:$0xff]  ;;  %v4034_v62 = vld [vmem:[%s7222_s14 + $0x1b0] sm:$0xff] }
 0x5b6   :  { %3855 = vmatpush1.msra.mxu0 %v3744_v45  ;;  %3926 = vmatpush1.msra.mxu1 %v3746_v3  ;;  %v3986_v23 = vld [vmem:[%s7222_s14 + $0x30] sm:$0xff]  ;;  %v4001_v3 = vld [vmem:[%s7222_s14 + $0xa8] sm:$0xff] }
 0x5b7   :  { %3856 = vmatprep.subr.mxu0 %v3741_v33  ;;  %3927 = vmatprep.subr.mxu1 %v3743_v21  ;;  %v4018_v45 = vld [vmem:[%s7222_s14 + $0x130] sm:$0xff]  ;;  %v4033_v33 = vld [vmem:[%s7222_s14 + $0x1a8] sm:$0xff] }
 0x5b8   :  { %3857 = vmatpush1.msra.mxu0 %v3740_v56  ;;  %3928 = vmatpush1.msra.mxu1 %v3742_v48  ;;  %v3985_v21 = vld [vmem:[%s7222_s14 + $0x28] sm:$0xff]  ;;  %v4000_v48 = vld [vmem:[%s7222_s14 + $0xa0] sm:$0xff] }
 0x5b9   :  { %4460 = vmatprep.subr.mxu0 %v4011_v52  ;;  %4495 = vmatprep.subr.mxu1 %v4043_v24  ;;  %v4017_v56 = vld [vmem:[%s7222_s14 + $0x128] sm:$0xff]  ;;  %v4032_v52 = vld [vmem:[%s7222_s14 + $0x1a0] sm:$0xff] }
 0x5ba   :  { %v3984_v24 = vld [vmem:[%s7222_s14 + $0x20] sm:$0xff] }
 0x617   :  { %v4352_v35 = vpop.f32.mrf.mxu0  ;;  %v4387_v50 = vpop.f32.mrf.mxu1 }
 0x619   :  { %v4353_v58 = vpop.f32.mrf.mxu0  ;;  %v4388_v11 = vpop.f32.mrf.mxu1 }
 0x61a   :  { %v4354_v15 = vadd.f32 %v4353_v58, %v4352_v35  ;;  %v4389_v26 = vadd.f32 %v4388_v11, %v4387_v50  ;;  %v4016_v35 = vld [vmem:[%s7222_s14 + $0x120] sm:$0xff]  ;;  %v3999_v58 = vld [vmem:[%s7222_s14 + $0x98] sm:$0xff]  ;;  %v3998_v11 = vld [vmem:[%s7222_s14 + $0x90] sm:$0xff] }
 0x61b   :  { %v4031_v50 = vld [vmem:[%s7222_s14 + $0x198] sm:$0xff] }
 0x61c   :  { %v3524_v9 = vadd.f32 %v4354_v15, %v4318_v20  ;;  %v3983_v15 = vld [vmem:[%s7222_s14 + $0x18] sm:$0xff] }
 0x61d   :  { %v4015_v20 = vld [vmem:[%s7222_s14 + $0x118] sm:$0xff] }
 0x61e   :  { %v3594_v47 = vadd.f32 %v4389_v26, %v3524_v9  ;;  %v4030_v9 = vld [vmem:[%s7222_s14 + $0x190] sm:$0xff] }
 0x61f   :  { %v3982_v26 = vld [vmem:[%s7222_s14 + $0x10] sm:$0xff] }
 0x658   :  { %v4422_v4 = vpop.f32.mrf.mxu0  ;;  %v4457_v12 = vpop.f32.mrf.mxu1 }
 0x65a   :  { %v4423_v43 = vpop.f32.mrf.mxu0  ;;  %v4458_v49 = vpop.f32.mrf.mxu1 }
 0x65b   :  { %v4424_v7 = vadd.f32 %v4423_v43, %v4422_v4  ;;  %v4459_v63 = vadd.f32 %v4458_v49, %v4457_v12  ;;  %v4014_v4 = vld [vmem:[%s7222_s14 + $0x110] sm:$0xff]  ;;  %v3997_v12 = vld [vmem:[%s7222_s14 + $0x88] sm:$0xff] }
 0x65c   :  { %v4029_v43 = vld [vmem:[%s7222_s14 + $0x188] sm:$0xff] }
 0x65d   :  { %v3664_v14 = vadd.f32 %v4424_v7, %v3594_v47  ;;  %v3981_v49 = vld [vmem:[%s7222_s14 + $0x8] sm:$0xff]  ;;  %v3996_v7 = vld [vmem:[%s7222_s14 + $0x80] sm:$0xff] }
 0x65e   :  { %v4013_v47 = vld [vmem:[%s7222_s14 + $0x108] sm:$0xff] }
 0x65f   :  { %v3734_v46 = vadd.f32 %v4459_v63, %v3664_v14  ;;  %v4028_v14 = vld [vmem:[%s7222_s14 + $0x180] sm:$0xff] }
 0x660   :  { %v3980_v63 = vld [vmem:[%s7222_s14] sm:$0xff] }
 0x661   :  { %v3738_v1 = vmul.f32 0.01, %v3734_v46  ;;  %vm3737_vm0 = vcmp.ge.f32.partialorder %v3734_v46, 0.0 }
 0x663   :  { %v3739_v57 = vsel %vm3737_vm0, %v3734_v46, %v3738_v1  ;;  %v4012_v46 = vld [vmem:[%s7222_s14 + $0x100] sm:$0xff] }
 0x664   :  { %3891 = vmatmul.mubr.f32.vlgmr.msra.gmra.mxu0 %v3739_v57  ;;  %3962 = vmatmul.mubr.f32.vlgmr.msra.gmra.mxu1 %v3739_v57  ;;  %v3804_v1 = vld [vmem:[#allocation13] sm:$0xf]  ;;  %v7567_v57 = vld [vmem:[#allocation33_spill] sm:$0xff] }
 0x665   :  { %4461 = vmatpush3.msra.mxu0 %v3995_v39  ;;  %4496 = vmatpush3.msra.mxu1 %v4027_v22  ;;  %v7566_v39 = vld [vmem:[#allocation21_spill] sm:$0xff] }
 0x666   :  { %4462 = vmatprep.subr.mxu0 %v4010_v6  ;;  %4497 = vmatprep.subr.mxu1 %v4042_v44  ;;  %v3809_v22 = vrot.slane %v3804_v1, %v7566_v39  ;;  %v3817_v6 = vrot.slane %v3804_v1, %v7567_v57 }
 0x667   :  { %4463 = vmatpush3.msra.mxu0 %v3994_v2  ;;  %4498 = vmatpush3.msra.mxu1 %v4026_v41  ;;  %v7568_v41 = vld [vmem:[#allocation20_spill] sm:$0xff] }
 0x668   :  { %4464 = vmatprep.subr.mxu0 %v4009_v53  ;;  %4499 = vmatprep.subr.mxu1 %v4041_v54  ;;  %v3813_v53 = vrot.slane %v3804_v1, %v7568_v41  ;;  %v7569_v54 = vld [vmem:[#allocation34_spill] sm:$0xff] }
 0x669   :  { %4465 = vmatpush3.msra.mxu0 %v3993_v32  ;;  %4500 = vmatpush3.msra.mxu1 %v4025_v29  ;;  %v3821_v32 = vrot.slane %v3804_v1, %v7569_v54 }
 0x66a   :  { %4466 = vmatprep.subr.mxu0 %v4008_v31  ;;  %4501 = vmatprep.subr.mxu1 %v4040_v10 }
 0x66b   :  { %4467 = vmatpush3.msra.mxu0 %v3992_v27  ;;  %4502 = vmatpush3.msra.mxu1 %v4024_v61 }
 0x66c   :  { %4468 = vmatprep.subr.mxu0 %v4007_v38  ;;  %4503 = vmatprep.subr.mxu1 %v4039_v5 }
 0x66d   :  { %4469 = vmatpush3.msra.mxu0 %v3991_v13  ;;  %4504 = vmatpush3.msra.mxu1 %v4023_v17 }
 0x66e   :  { %4470 = vmatprep.subr.mxu0 %v4006_v8  ;;  %4505 = vmatprep.subr.mxu1 %v4038_v34 }
 0x66f   :  { %4471 = vmatpush3.msra.mxu0 %v3990_v28  ;;  %4506 = vmatpush3.msra.mxu1 %v4022_v60 }
 0x670   :  { %4472 = vmatprep.subr.mxu0 %v4005_v19  ;;  %4507 = vmatprep.subr.mxu1 %v4037_v55 }
 0x671   :  { %4473 = vmatpush3.msra.mxu0 %v3989_v37  ;;  %4508 = vmatpush3.msra.mxu1 %v4021_v16  ;;  %v4319_v16 = vld [vmem:[%s7223_s15] ss:$0 sm:$0xff] }
 0x672   :  { %4474 = vmatprep.subr.mxu0 %v4004_v25  ;;  %4509 = vmatprep.subr.mxu1 %v4036_v40 }
 0x673   :  { %4475 = vmatpush3.msra.mxu0 %v3988_v18  ;;  %4510 = vmatpush3.msra.mxu1 %v4020_v36 }
 0x674   :  { %4476 = vmatprep.subr.mxu0 %v4003_v51  ;;  %4511 = vmatprep.subr.mxu1 %v4035_v0 }
 0x675   :  { %4477 = vmatpush3.msra.mxu0 %v3987_v30  ;;  %4512 = vmatpush3.msra.mxu1 %v4019_v42 }
 0x676   :  { %4478 = vmatprep.subr.mxu0 %v4002_v59  ;;  %4513 = vmatprep.subr.mxu1 %v4034_v62 }
 0x677   :  { %4479 = vmatpush3.msra.mxu0 %v3986_v23  ;;  %4514 = vmatpush3.msra.mxu1 %v4018_v45 }
 0x678   :  { %4480 = vmatprep.subr.mxu0 %v4001_v3  ;;  %4515 = vmatprep.subr.mxu1 %v4033_v33 }
 0x679   :  { %4481 = vmatpush3.msra.mxu0 %v3985_v21  ;;  %4516 = vmatpush3.msra.mxu1 %v4017_v56 }
 0x67a   :  { %4482 = vmatprep.subr.mxu0 %v4000_v48  ;;  %4517 = vmatprep.subr.mxu1 %v4032_v52 }
 0x67b   :  { %4483 = vmatpush3.msra.mxu0 %v3984_v24  ;;  %4518 = vmatpush3.msra.mxu1 %v4016_v35 }
 0x67c   :  { %4484 = vmatprep.subr.mxu0 %v3999_v58  ;;  %4519 = vmatprep.subr.mxu1 %v4031_v50 }
 0x67d   :  { %4485 = vmatpush3.msra.mxu0 %v3983_v15  ;;  %4520 = vmatpush3.msra.mxu1 %v4015_v20 }
 0x67e   :  { %4486 = vmatprep.subr.mxu0 %v3998_v11  ;;  %4521 = vmatprep.subr.mxu1 %v4030_v9 }
 0x67f   :  { %4487 = vmatpush3.msra.mxu0 %v3982_v26  ;;  %4522 = vmatpush3.msra.mxu1 %v4014_v4 }
 0x680   :  { %4488 = vmatprep.subr.mxu0 %v3997_v12  ;;  %4523 = vmatprep.subr.mxu1 %v4029_v43 }
 0x681   :  { %4489 = vmatpush3.msra.mxu0 %v3981_v49  ;;  %4524 = vmatpush3.msra.mxu1 %v4013_v47 }
 0x682   :  { %4490 = vmatprep.subr.mxu0 %v3996_v7  ;;  %4525 = vmatprep.subr.mxu1 %v4028_v14 }
 0x683   :  { %4491 = vmatpush3.msra.mxu0 %v3980_v63  ;;  %4526 = vmatpush3.msra.mxu1 %v4012_v46 }
 0x724   :  { %v3892_v44 = vpop.f32.mrf.mxu0  ;;  %v3963_v2 = vpop.f32.mrf.mxu1 }
 0x725   :  { %v3893_v29 = vadd.f32 %v3892_v44, %v3809_v22  ;;  %v3964_v31 = vadd.f32 %v3963_v2, %v3817_v6 }
 0x726   :  { %v3894_v10 = vpop.f32.mrf.mxu0  ;;  %v3965_v27 = vpop.f32.mrf.mxu1 }
 0x727   :  { %v3895_v61 = vadd.f32 %v3894_v10, %v3813_v53  ;;  %v3966_v38 = vadd.f32 %v3965_v27, %v3821_v32  ;;  %vm3968_vm13 = vcmp.ge.f32.partialorder %v3893_v29, 0.0  ;;  %v3972_v5 = vmul.f32 0.01, %v3893_v29 }
 0x728   :  { %vm3970_vm14 = vcmp.ge.f32.partialorder %v3964_v31, 0.0  ;;  %v3974_v13 = vmul.f32 0.01, %v3964_v31 }
 0x729   :  { %v3973_v17 = vmul.f32 0.01, %v3895_v61  ;;  %v3975_v8 = vmul.f32 0.01, %v3966_v38  ;;  %vm3969_vm15 = vcmp.ge.f32.partialorder %v3895_v61, 0.0  ;;  %vm3971_vm1 = vcmp.ge.f32.partialorder %v3966_v38, 0.0 }
 0x72a   :  { %v3976_v60 = vsel %vm3968_vm13, %v3893_v29, %v3972_v5  ;;  %v3978_v19 = vsel %vm3970_vm14, %v3964_v31, %v3974_v13 }
 0x72b   :  { %v3977_v34 = vsel %vm3969_vm15, %v3895_v61, %v3973_v17  ;;  %v3979_v28 = vsel %vm3971_vm1, %v3966_v38, %v3975_v8 }
 0x72c   :  { %4115 = vmatprep.mubr.f32.mxu0 %v3977_v34  ;;  %4185 = vmatprep.mubr.f32.mxu1 %v3979_v28 }
 0x72d   :  { %4116 = vmatmul.mubr.f32.vlgmr.msra.gmra.mxu0 %v3976_v60  ;;  %4186 = vmatmul.mubr.f32.vlgmr.msra.gmra.mxu1 %v3978_v19 }
 0x7ed   :  { %v4492_v55 = vpop.f32.mrf.mxu0  ;;  %v4527_v37 = vpop.f32.mrf.mxu1 }
 0x7ef   :  { %v4493_v25 = vpop.f32.mrf.mxu0  ;;  %v4528_v40 = vpop.f32.mrf.mxu1 }
 0x7f0   :  { %v4494_v18 = vadd.f32 %v4493_v25, %v4492_v55  ;;  %v4529_v51 = vadd.f32 %v4528_v40, %v4527_v37 }
 0x7f2   :  { %v4118_v36 = vadd.f32 %v4494_v18, %v4319_v16 }
 0x7f4   :  { %v4188_v0 = vadd.f32 %v4529_v51, %v4118_v36 }
 0x7f6   :  { %4192 = vst.msk [vmem:[%s7224_s16] sm:$0xf] %vm4191_vm2, %v4188_v0 }
 0x7f7   :  { %4197 = vsyncpa [#allocation3], 1 }
 0x7f8   :  { %4198 = vsyncpa [#allocation5], 1 }
 0x7f9   :  { %4199 = vsyncpa [#allocation8], 1 }
 0x7fa   :  { %4200 = vsyncpa [#allocation11], 1 }
 0x7fb   :  { %4201 = vsyncpa [#allocation14], 1 }

</bundles_post_ra>
